<compile_context>
chip_gen: v7x
topology: tpu7x:2x2x1
jax: 0.10.0
libtpu: 0.0.40
codegen_flags: <defaults>
</compile_context>

<pallas_src>
import functools

import jax
import jax.numpy as jnp
from jax.experimental import pallas as pl

Z_DIM = 20
H_DIM = 64
BATCH = 2
IMG = 28
LEAKY_SLOPE = 0.2


# ----------------------------- Pallas kernels -------------------------------
def _act(x, act):
    if act == "leaky_relu":
        return jnp.where(x > 0, x, LEAKY_SLOPE * x)
    if act == "relu":
        return jnp.maximum(x, 0.0)
    if act == "sigmoid":
        return 1.0 / (1.0 + jnp.exp(-x))
    return x


def _conv_mm_kernel(w_ref, col_ref, b_ref, o_ref, *, act):
    # out^T = W(oc,K) @ col^T(K,M) + b(oc,1); lane dim = M = N*Ho*Wo (dense).
    acc = jnp.dot(w_ref[...], col_ref[...], preferred_element_type=jnp.float32)
    acc = acc + b_ref[...]
    o_ref[...] = _act(acc, act).astype(o_ref.dtype)


def _conv_mm_call(w_t, col_t, b_col, act):
    oc, K = w_t.shape
    K2, M = col_t.shape
    assert K == K2
    kernel = functools.partial(_conv_mm_kernel, act=act)
    return pl.pallas_call(
        kernel,
        out_shape=jax.ShapeDtypeStruct((oc, M), jnp.float32),
        in_specs=[pl.BlockSpec((oc, K), lambda: (0, 0)),
                  pl.BlockSpec((K, M), lambda: (0, 0)),
                  pl.BlockSpec((oc, 1), lambda: (0, 0))],
        out_specs=pl.BlockSpec((oc, M), lambda: (0, 0)),
    )(w_t, col_t, b_col)


def _convt4_kernel(c0, c1, c2, c3, w0, w1, w2, w3, b_ref,
                   o0, o1, o2, o3, *, act):
    # Four independent sub-pixel-phase matmuls of one stride-2 ConvTranspose2d,
    # fused into a single launch (shared bias (oc, 1)).
    for c_ref, w_ref, o_ref in ((c0, w0, o0), (c1, w1, o1),
                                (c2, w2, o2), (c3, w3, o3)):
        acc = jnp.dot(w_ref[...], c_ref[...], preferred_element_type=jnp.float32)
        acc = acc + b_ref[...]
        o_ref[...] = _act(acc, act).astype(o_ref.dtype)


def _convt4_call(cols_t, ws_t, b_col, act):
    oc = b_col.shape[0]
    kernel = functools.partial(_convt4_kernel, act=act)
    in_specs = ([pl.BlockSpec(c.shape, lambda: (0, 0)) for c in cols_t]
                + [pl.BlockSpec(w.shape, lambda: (0, 0)) for w in ws_t]
                + [pl.BlockSpec((oc, 1), lambda: (0, 0))])
    out_shape = tuple(jax.ShapeDtypeStruct((oc, c.shape[1]), jnp.float32)
                      for c in cols_t)
    out_specs = tuple(pl.BlockSpec((oc, c.shape[1]), lambda: (0, 0))
                      for c in cols_t)
    return pl.pallas_call(kernel, out_shape=out_shape,
                          in_specs=in_specs, out_specs=out_specs)(
        *cols_t, *ws_t, b_col)


def _fused_middle_kernel(x_ref, eps_ref,
                         wfc1_ref, bfc1_ref,
                         wmu_ref, bmu_ref, wlv_ref, blv_ref,
                         wdl_ref, bdl_ref, wdc1_ref, bdc1_ref,
                         mu_ref, logvar_ref, d1_ref):
    # fc1(+LeakyReLU) -> mu / logvar -> reparameterize -> decoder linear1 ->
    # ConvT(64->128,k5,s2) on a 1x1 map == outer product, + ReLU.
    f32 = jnp.float32
    h1 = jnp.dot(x_ref[...], wfc1_ref[...], preferred_element_type=f32) + bfc1_ref[...]
    h1 = jnp.where(h1 > 0, h1, LEAKY_SLOPE * h1)
    mu = jnp.dot(h1, wmu_ref[...], preferred_element_type=f32) + bmu_ref[...]
    logvar = jnp.dot(h1, wlv_ref[...], preferred_element_type=f32) + blv_ref[...]
    z = mu + jnp.exp(0.5 * logvar) * eps_ref[...]
    d = jnp.dot(z, wdl_ref[...], preferred_element_type=f32) + bdl_ref[...]
    d1 = jnp.dot(d, wdc1_ref[...], preferred_element_type=f32) + bdc1_ref[...]
    mu_ref[...] = mu
    logvar_ref[...] = logvar
    d1_ref[...] = jnp.maximum(d1, 0.0)          # ReLU after ConvT1


def _fused_middle_call(p, flat, eps):
    N = flat.shape[0]
    d1_cols = p["dc1_wM"].shape[1]              # 5*5*128 = 3200 (lane-dense)
    args = (flat, eps,
            p["efc1_wT"], p["efc1_b"],
            p["emu_wT"], p["emu_b"], p["elv_wT"], p["elv_b"],
            p["dl1_wT"], p["dl1_b"], p["dc1_wM"], p["dc1_bM"])
    return pl.pallas_call(
        _fused_middle_kernel,
        out_shape=(jax.ShapeDtypeStruct((N, Z_DIM), jnp.float32),
                   jax.ShapeDtypeStruct((N, Z_DIM), jnp.float32),
                   jax.ShapeDtypeStruct((N, d1_cols), jnp.float32)),
        in_specs=[pl.BlockSpec(a.shape, lambda: (0, 0)) for a in args],
        out_specs=(pl.BlockSpec((N, Z_DIM), lambda: (0, 0)),
                   pl.BlockSpec((N, Z_DIM), lambda: (0, 0)),
                   pl.BlockSpec((N, d1_cols), lambda: (0, 0))),
    )(*args)


# ------------------ thin XLA layout glue feeding the kernels ----------------
def _im2col_T(x_nhwc, k, stride, pad):
    """col^T with rows ordered (tap_i, tap_j, c), columns ordered (n, ho, wo)."""
    if pad:
        x_nhwc = jnp.pad(x_nhwc, ((0, 0), (pad, pad), (pad, pad), (0, 0)))
    N, H, W, C = x_nhwc.shape
    Ho = (H - k) // stride + 1
    Wo = (W - k) // stride + 1
    taps = [x_nhwc[:, i:i + stride * Ho:stride, j:j + stride * Wo:stride, :]
            for i in range(k) for j in range(k)]
    col = jnp.transpose(jnp.stack(taps, axis=0), (0, 4, 1, 2, 3))  # (k*k,C,N,Ho,Wo)
    return col.reshape(k * k * C, N * Ho * Wo), N, Ho, Wo


def conv2d(x_nhwc, w_t, b_col, k, stride, pad, act):
    col_t, N, Ho, Wo = _im2col_T(x_nhwc, k, stride, pad)
    oc = w_t.shape[0]
    y_t = _conv_mm_call(w_t, col_t, b_col, act)            # (oc, N*Ho*Wo)
    return jnp.transpose(y_t.reshape(oc, N, Ho, Wo), (1, 2, 3, 0))


def conv_transpose2d(x_nhwc, w_phases, b_col, k, act, stride=2):
    """Sub-pixel (phase-decomposed) ConvTranspose2d, stride 2, padding 0.
    Each of the 4 output phases is a small stride-1 conv; no dilation zeros."""
    N, Hin, Win, ic = x_nhwc.shape
    oc = b_col.shape[0]
    Hout = (Hin - 1) * stride + k
    Wout = (Win - 1) * stride + k
    cols, metas = [], []
    for py in range(stride):
        for px in range(stride):
            T = len(range(py, k, stride))
            S = len(range(px, k, stride))
            U = Hin + T - 1
            V = Win + S - 1
            xp = jnp.pad(x_nhwc, ((0, 0), (T - 1, T - 1), (S - 1, S - 1), (0, 0)))
            taps = [xp[:, T - 1 - t:T - 1 - t + U, S - 1 - s:S - 1 - s + V, :]
                    for t in range(T) for s in range(S)]
            col = jnp.transpose(jnp.stack(taps, axis=0), (0, 4, 1, 2, 3))
            cols.append(col.reshape(T * S * ic, N * U * V))
            metas.append((py, px, U, V))
    outs = _convt4_call(cols, w_phases, b_col, act)         # 4 x (oc, N*U*V)
    y = jnp.zeros((N, Hout, Wout, oc), jnp.float32)
    for (py, px, U, V), o in zip(metas, outs):
        o = jnp.transpose(o.reshape(oc, N, U, V), (1, 2, 3, 0))
        y = y.at[:, py::stride, px::stride, :].set(o)       # interleave phases
    return y


# --------------------------- forward pass ------------------------------------
def vae_cnn_forward(params, x_nchw, eps):
    x = jnp.transpose(x_nchw, (0, 2, 3, 1)).astype(jnp.float32)    # NCHW -> NHWC

    # Encoder convs (im2col is thin layout glue; matmul+bias+LeakyReLU in Pallas)
    h = conv2d(x, params["ec1_wT"], params["ec1_b"], 3, 2, 1, "leaky_relu")
    h = conv2d(h, params["ec2_wT"], params["ec2_b"], 3, 2, 1, "leaky_relu")
    N = h.shape[0]
    flat = h.reshape(N, -1)        # NHWC flatten; efc1 weight was permuted to match

    # Fused: fc1 -> (mu, logvar) -> reparameterize -> decoder linear1 -> ConvT1+ReLU
    mu, logvar, d1 = _fused_middle_call(params, flat, eps)

    # Decoder ConvT2 / ConvT3 as phase-decomposed (sub-pixel) convolutions
    d = d1.reshape(N, 5, 5, 128)                                   # ConvT1 out, NHWC
    d = conv_transpose2d(d, params["dc2_wT"], params["dc2_b"], 5, "relu")
    d = conv_transpose2d(d, params["dc3_wT"], params["dc3_b"], 4, "sigmoid")
    return jnp.transpose(d, (0, 3, 1, 2)), mu, logvar              # NHWC -> NCHW


# ------------------------ parameters & layout prep ----------------------------
def init_raw_params(key):
    """Raw parameters with exactly the PyTorch shapes of this VAE_CNN instance."""
    ks = jax.random.split(key, 16)
    w = lambda k_, shape, s=0.05: (s * jax.random.normal(k_, shape)).astype(jnp.float32)
    return {
        "ec1_w": w(ks[0], (4, 1, 3, 3)),   "ec1_b": w(ks[1], (4,)),
        "ec2_w": w(ks[2], (8, 4, 3, 3)),   "ec2_b": w(ks[3], (8,)),
        "efc1_w": w(ks[4], (H_DIM, 8 * 7 * 7)), "efc1_b": w(ks[5], (H_DIM,)),
        "efc2_w": w(ks[6], (2 * Z_DIM, H_DIM)), "efc2_b": w(ks[7], (2 * Z_DIM,)),
        "dl1_w": w(ks[8], (H_DIM, Z_DIM)),      "dl1_b": w(ks[9], (H_DIM,)),
        "dc1_w": w(ks[10], (H_DIM, 128, 5, 5)), "dc1_b": w(ks[11], (128,)),
        "dc2_w": w(ks[12], (128, 32, 5, 5)),    "dc2_b": w(ks[13], (32,)),
        "dc3_w": w(ks[14], (32, 1, 4, 4)),      "dc3_b": w(ks[15], (1,)),
    }


def prepare_params(raw):
    """One-time weight layout transforms (hoisted out of the forward pass)."""
    def conv_wT(w):                       # (oc,ic,kh,kw) -> (oc, kh*kw*ic)
        oc, ic, kh, kw = w.shape
        return jnp.transpose(w, (2, 3, 1, 0)).reshape(kh * kw * ic, oc).T

    def convT_phase_wT(w, stride=2):      # (ic,oc,k,k) -> 4 x (oc, T*S*ic)
        ic, oc, k, _ = w.shape
        ws = []
        for py in range(stride):
            for px in range(stride):
                sub = w[:, :, py::stride, px::stride]          # (ic, oc, T, S)
                sub = jnp.transpose(sub, (2, 3, 0, 1))         # (T, S, ic, oc)
                ws.append(sub.reshape(-1, oc).T)               # (oc, T*S*ic)
        return ws

    p = {}
    p["ec1_wT"] = conv_wT(raw["ec1_w"]); p["ec1_b"] = raw["ec1_b"].reshape(-1, 1)
    p["ec2_wT"] = conv_wT(raw["ec2_w"]); p["ec2_b"] = raw["ec2_b"].reshape(-1, 1)

    # efc1: fold nn.Flatten's NCHW ordering into the weight (acts are NHWC-flat)
    w = raw["efc1_w"].reshape(H_DIM, 8, 7, 7)
    p["efc1_wT"] = jnp.transpose(w, (0, 2, 3, 1)).reshape(H_DIM, -1).T
    p["efc1_b"] = raw["efc1_b"].reshape(1, -1)

    # efc2 split into mu / logvar halves (== torch.chunk(h, 2, dim=1))
    p["emu_wT"] = raw["efc2_w"][:Z_DIM].T
    p["emu_b"] = raw["efc2_b"][:Z_DIM].reshape(1, -1)
    p["elv_wT"] = raw["efc2_w"][Z_DIM:].T
    p["elv_b"] = raw["efc2_b"][Z_DIM:].reshape(1, -1)

    p["dl1_wT"] = raw["dl1_w"].T
    p["dl1_b"] = raw["dl1_b"].reshape(1, -1)

    # dc1 on a 1x1 map: ConvT == outer product; columns ordered (kh, kw, oc) = NHWC
    p["dc1_wM"] = jnp.transpose(raw["dc1_w"], (0, 2, 3, 1)).reshape(H_DIM, -1)
    p["dc1_bM"] = jnp.tile(raw["dc1_b"], 25).reshape(1, -1)

    p["dc2_wT"] = convT_phase_wT(raw["dc2_w"]); p["dc2_b"] = raw["dc2_b"].reshape(-1, 1)
    p["dc3_wT"] = convT_phase_wT(raw["dc3_w"]); p["dc3_b"] = raw["dc3_b"].reshape(-1, 1)
    return p


# ----------------- plain-JAX reference (mirrors the PyTorch module) ----------
def _ref_forward(raw, x_nchw, eps):
    hp = jax.lax.Precision.HIGHEST

    def conv(x, w, b, stride, pad):
        y = jax.lax.conv_general_dilated(
            x, w, (stride, stride), [(pad, pad), (pad, pad)],
            dimension_numbers=("NCHW", "OIHW", "NCHW"), precision=hp)
        return y + b.reshape(1, -1, 1, 1)

    def convT(x, w, b, stride):
        k = w.shape[2]
        w_conv = jnp.transpose(jnp.flip(w, (2, 3)), (1, 0, 2, 3))  # OIHW
        y = jax.lax.conv_general_dilated(
            x, w_conv, (1, 1), [(k - 1, k - 1), (k - 1, k - 1)],
            lhs_dilation=(stride, stride),
            dimension_numbers=("NCHW", "OIHW", "NCHW"), precision=hp)
        return y + b.reshape(1, -1, 1, 1)

    lrelu = lambda v: jnp.where(v > 0, v, LEAKY_SLOPE * v)
    x = x_nchw.astype(jnp.float32)
    h = lrelu(conv(x, raw["ec1_w"], raw["ec1_b"], 2, 1))
    h = lrelu(conv(h, raw["ec2_w"], raw["ec2_b"], 2, 1))
    h = h.reshape(h.shape[0], -1)                                  # NCHW flatten
    h = lrelu(jnp.dot(h, raw["efc1_w"].T, precision=hp) + raw["efc1_b"])
    h = jnp.dot(h, raw["efc2_w"].T, precision=hp) + raw["efc2_b"]
    mu, logvar = h[:, :Z_DIM], h[:, Z_DIM:]
    z = mu + jnp.exp(0.5 * logvar) * eps
    d = jnp.dot(z, raw["dl1_w"].T, precision=hp) + raw["dl1_b"]
    d = d.reshape(-1, H_DIM, 1, 1)
    d = jnp.maximum(convT(d, raw["dc1_w"], raw["dc1_b"], 2), 0.0)
    d = jnp.maximum(convT(d, raw["dc2_w"], raw["dc2_b"], 2), 0.0)
    d = jax.nn.sigmoid(convT(d, raw["dc3_w"], raw["dc3_b"], 2))
    return d, mu, logvar


# --------------------------- main --------------------------------------------
if __name__ == "__main__":
    root = jax.random.PRNGKey(0)
    k_params, k_x, k_eps = jax.random.split(root, 3)

    raw = init_raw_params(k_params)
    params = prepare_params(raw)
    x = jax.random.uniform(k_x, (BATCH, 1, IMG, IMG), dtype=jnp.float32)   # NCHW
    eps = jax.random.normal(k_eps, (BATCH, Z_DIM), dtype=jnp.float32)      # ~ torch.randn

    fwd = jax.jit(vae_cnn_forward)
    recon, mu, logvar = fwd(params, x, eps)
    jax.block_until_ready((recon, mu, logvar))

    assert recon.shape == (BATCH, 1, 28, 28), recon.shape     # Decoder assert: H == 28
    assert mu.shape == (BATCH, Z_DIM) and logvar.shape == (BATCH, Z_DIM)
    assert bool(jnp.all((recon >= 0.0) & (recon <= 1.0)))     # sigmoid output

    # numerical cross-check against a plain-JAX mirror of the PyTorch module
    r_recon, r_mu, r_logvar = jax.jit(_ref_forward)(raw, x, eps)
    for name, a, b in (("recon", recon, r_recon), ("mu", mu, r_mu),
                       ("logvar", logvar, r_logvar)):
        err = float(jnp.max(jnp.abs(a - b)))
        assert err < 1e-2, f"{name} mismatch vs reference: max abs err {err}"

    print("KERNEL_OK")
</pallas_src>

<mosaic_0001>
module attributes {stable_mosaic.version = 11 : i64} {
  func.func @_conv_mm_kernel(%arg0: memref<4x9xf32, #tpu.memory_space<vmem>>, %arg1: memref<9x392xf32, #tpu.memory_space<vmem>>, %arg2: memref<4x1xf32, #tpu.memory_space<vmem>>, %arg3: memref<4x392xf32, #tpu.memory_space<vmem>>) attributes {dimension_semantics = [], scalar_prefetch = 0 : i64, scratch_operands = 0 : i64, tpu.core_type = #tpu.core_type<tc>} {
    %c0 = arith.constant 0 : index
    %c0_0 = arith.constant 0 : index
    %0 = vector.load %arg0[%c0, %c0_0] : memref<4x9xf32, #tpu.memory_space<vmem>>, vector<4x9xf32>
    %c0_1 = arith.constant 0 : index
    %c0_2 = arith.constant 0 : index
    %1 = vector.load %arg1[%c0_1, %c0_2] : memref<9x392xf32, #tpu.memory_space<vmem>>, vector<9x392xf32>
    %cst = arith.constant dense<0.000000e+00> : vector<4x392xf32>
    %2 = tpu.matmul %0, %1, %cst {dimension_numbers = #tpu.dot_dimension_numbers<[1], [0], [0], [1], [0, 0, 1, 1], [], []>} : vector<4x9xf32>, vector<9x392xf32>, vector<4x392xf32> -> vector<4x392xf32>
    %c0_3 = arith.constant 0 : index
    %c0_4 = arith.constant 0 : index
    %3 = vector.load %arg2[%c0_3, %c0_4] : memref<4x1xf32, #tpu.memory_space<vmem>>, vector<4x1xf32>
    %4 = vector.broadcast %3 : vector<4x1xf32> to vector<4x392xf32>
    %5 = arith.addf %2, %4 : vector<4x392xf32>
    %cst_5 = arith.constant 0.000000e+00 : f32
    %6 = vector.broadcast %cst_5 : f32 to vector<4x392xf32>
    %7 = arith.cmpf ogt, %5, %6 : vector<4x392xf32>
    %cst_6 = arith.constant 2.000000e-01 : f32
    %8 = vector.broadcast %cst_6 : f32 to vector<4x392xf32>
    %9 = arith.mulf %8, %5 : vector<4x392xf32>
    %10 = arith.select %7, %5, %9 : vector<4x392xi1>, vector<4x392xf32>
    %c0_7 = arith.constant 0 : index
    %c0_8 = arith.constant 0 : index
    %11 = vector.load %arg3[%c0_7, %c0_8] : memref<4x392xf32, #tpu.memory_space<vmem>>, vector<4x392xf32>
    tpu.vector_store %arg3[%c0_7, %c0_8], %10 {strides = array<i32>} : memref<4x392xf32, #tpu.memory_space<vmem>>, vector<4x392xf32>,
    return
  }
}

module attributes {stable_mosaic.version = 11 : i64} {
  func.func @_conv_mm_kernel(%arg0: memref<8x36xf32, #tpu.memory_space<vmem>>, %arg1: memref<36x98xf32, #tpu.memory_space<vmem>>, %arg2: memref<8x1xf32, #tpu.memory_space<vmem>>, %arg3: memref<8x98xf32, #tpu.memory_space<vmem>>) attributes {dimension_semantics = [], scalar_prefetch = 0 : i64, scratch_operands = 0 : i64, tpu.core_type = #tpu.core_type<tc>} {
    %c0 = arith.constant 0 : index
    %c0_0 = arith.constant 0 : index
    %0 = vector.load %arg0[%c0, %c0_0] : memref<8x36xf32, #tpu.memory_space<vmem>>, vector<8x36xf32>
    %c0_1 = arith.constant 0 : index
    %c0_2 = arith.constant 0 : index
    %1 = vector.load %arg1[%c0_1, %c0_2] : memref<36x98xf32, #tpu.memory_space<vmem>>, vector<36x98xf32>
    %cst = arith.constant dense<0.000000e+00> : vector<8x98xf32>
    %2 = tpu.matmul %0, %1, %cst {dimension_numbers = #tpu.dot_dimension_numbers<[1], [0], [0], [1], [0, 0, 1, 1], [], []>} : vector<8x36xf32>, vector<36x98xf32>, vector<8x98xf32> -> vector<8x98xf32>
    %c0_3 = arith.constant 0 : index
    %c0_4 = arith.constant 0 : index
    %3 = vector.load %arg2[%c0_3, %c0_4] : memref<8x1xf32, #tpu.memory_space<vmem>>, vector<8x1xf32>
    %4 = vector.broadcast %3 : vector<8x1xf32> to vector<8x98xf32>
    %5 = arith.addf %2, %4 : vector<8x98xf32>
    %cst_5 = arith.constant 0.000000e+00 : f32
    %6 = vector.broadcast %cst_5 : f32 to vector<8x98xf32>
    %7 = arith.cmpf ogt, %5, %6 : vector<8x98xf32>
    %cst_6 = arith.constant 2.000000e-01 : f32
    %8 = vector.broadcast %cst_6 : f32 to vector<8x98xf32>
    %9 = arith.mulf %8, %5 : vector<8x98xf32>
    %10 = arith.select %7, %5, %9 : vector<8x98xi1>, vector<8x98xf32>
    %c0_7 = arith.constant 0 : index
    %c0_8 = arith.constant 0 : index
    %11 = vector.load %arg3[%c0_7, %c0_8] : memref<8x98xf32, #tpu.memory_space<vmem>>, vector<8x98xf32>
    tpu.vector_store %arg3[%c0_7, %c0_8], %10 {strides = array<i32>} : memref<8x98xf32, #tpu.memory_space<vmem>>, vector<8x98xf32>,
    return
  }
}

module attributes {stable_mosaic.version = 11 : i64} {
  func.func @_fused_middle_kernel(%arg0: memref<2x392xf32, #tpu.memory_space<vmem>>, %arg1: memref<2x20xf32, #tpu.memory_space<vmem>>, %arg2: memref<392x64xf32, #tpu.memory_space<vmem>>, %arg3: memref<1x64xf32, #tpu.memory_space<vmem>>, %arg4: memref<64x20xf32, #tpu.memory_space<vmem>>, %arg5: memref<1x20xf32, #tpu.memory_space<vmem>>, %arg6: memref<64x20xf32, #tpu.memory_space<vmem>>, %arg7: memref<1x20xf32, #tpu.memory_space<vmem>>, %arg8: memref<20x64xf32, #tpu.memory_space<vmem>>, %arg9: memref<1x64xf32, #tpu.memory_space<vmem>>, %arg10: memref<64x3200xf32, #tpu.memory_space<vmem>>, %arg11: memref<1x3200xf32, #tpu.memory_space<vmem>>, %arg12: memref<2x20xf32, #tpu.memory_space<vmem>>, %arg13: memref<2x20xf32, #tpu.memory_space<vmem>>, %arg14: memref<2x3200xf32, #tpu.memory_space<vmem>>) attributes {dimension_semantics = [], scalar_prefetch = 0 : i64, scratch_operands = 0 : i64, tpu.core_type = #tpu.core_type<tc>} {
    %c0 = arith.constant 0 : index
    %c0_0 = arith.constant 0 : index
    %0 = vector.load %arg0[%c0, %c0_0] : memref<2x392xf32, #tpu.memory_space<vmem>>, vector<2x392xf32>
    %c0_1 = arith.constant 0 : index
    %c0_2 = arith.constant 0 : index
    %1 = vector.load %arg2[%c0_1, %c0_2] : memref<392x64xf32, #tpu.memory_space<vmem>>, vector<392x64xf32>
    %cst = arith.constant dense<0.000000e+00> : vector<2x64xf32>
    %2 = tpu.matmul %0, %1, %cst {dimension_numbers = #tpu.dot_dimension_numbers<[1], [0], [0], [1], [0, 0, 1, 1], [], []>} : vector<2x392xf32>, vector<392x64xf32>, vector<2x64xf32> -> vector<2x64xf32>
    %c0_3 = arith.constant 0 : index
    %c0_4 = arith.constant 0 : index
    %3 = vector.load %arg3[%c0_3, %c0_4] : memref<1x64xf32, #tpu.memory_space<vmem>>, vector<1x64xf32>
    %4 = vector.broadcast %3 : vector<1x64xf32> to vector<2x64xf32>
    %5 = arith.addf %2, %4 : vector<2x64xf32>
    %cst_5 = arith.constant 0.000000e+00 : f32
    %6 = vector.broadcast %cst_5 : f32 to vector<2x64xf32>
    %7 = arith.cmpf ogt, %5, %6 : vector<2x64xf32>
    %cst_6 = arith.constant 2.000000e-01 : f32
    %8 = vector.broadcast %cst_6 : f32 to vector<2x64xf32>
    %9 = arith.mulf %8, %5 : vector<2x64xf32>
    %10 = arith.select %7, %5, %9 : vector<2x64xi1>, vector<2x64xf32>
    %c0_7 = arith.constant 0 : index
    %c0_8 = arith.constant 0 : index
    %11 = vector.load %arg4[%c0_7, %c0_8] : memref<64x20xf32, #tpu.memory_space<vmem>>, vector<64x20xf32>
    %cst_9 = arith.constant dense<0.000000e+00> : vector<2x20xf32>
    %12 = tpu.matmul %10, %11, %cst_9 {dimension_numbers = #tpu.dot_dimension_numbers<[1], [0], [0], [1], [0, 0, 1, 1], [], []>} : vector<2x64xf32>, vector<64x20xf32>, vector<2x20xf32> -> vector<2x20xf32>
    %c0_10 = arith.constant 0 : index
    %c0_11 = arith.constant 0 : index
    %13 = vector.load %arg5[%c0_10, %c0_11] : memref<1x20xf32, #tpu.memory_space<vmem>>, vector<1x20xf32>
    %14 = vector.broadcast %13 : vector<1x20xf32> to vector<2x20xf32>
    %15 = arith.addf %12, %14 : vector<2x20xf32>
    %c0_12 = arith.constant 0 : index
    %c0_13 = arith.constant 0 : index
    %16 = vector.load %arg6[%c0_12, %c0_13] : memref<64x20xf32, #tpu.memory_space<vmem>>, vector<64x20xf32>
    %cst_14 = arith.constant dense<0.000000e+00> : vector<2x20xf32>
    %17 = tpu.matmul %10, %16, %cst_14 {dimension_numbers = #tpu.dot_dimension_numbers<[1], [0], [0], [1], [0, 0, 1, 1], [], []>} : vector<2x64xf32>, vector<64x20xf32>, vector<2x20xf32> -> vector<2x20xf32>
    %c0_15 = arith.constant 0 : index
    %c0_16 = arith.constant 0 : index
    %18 = vector.load %arg7[%c0_15, %c0_16] : memref<1x20xf32, #tpu.memory_space<vmem>>, vector<1x20xf32>
    %19 = vector.broadcast %18 : vector<1x20xf32> to vector<2x20xf32>
    %20 = arith.addf %17, %19 : vector<2x20xf32>
    %cst_17 = arith.constant 5.000000e-01 : f32
    %21 = vector.broadcast %cst_17 : f32 to vector<2x20xf32>
    %22 = arith.mulf %21, %20 : vector<2x20xf32>
    %23 = math.exp %22 : vector<2x20xf32>
    %c0_18 = arith.constant 0 : index
    %c0_19 = arith.constant 0 : index
    %24 = vector.load %arg1[%c0_18, %c0_19] : memref<2x20xf32, #tpu.memory_space<vmem>>, vector<2x20xf32>
    %25 = arith.mulf %23, %24 : vector<2x20xf32>
    %26 = arith.addf %15, %25 : vector<2x20xf32>
    %c0_20 = arith.constant 0 : index
    %c0_21 = arith.constant 0 : index
    %27 = vector.load %arg8[%c0_20, %c0_21] : memref<20x64xf32, #tpu.memory_space<vmem>>, vector<20x64xf32>
    %cst_22 = arith.constant dense<0.000000e+00> : vector<2x64xf32>
    %28 = tpu.matmul %26, %27, %cst_22 {dimension_numbers = #tpu.dot_dimension_numbers<[1], [0], [0], [1], [0, 0, 1, 1], [], []>} : vector<2x20xf32>, vector<20x64xf32>, vector<2x64xf32> -> vector<2x64xf32>
    %c0_23 = arith.constant 0 : index
    %c0_24 = arith.constant 0 : index
    %29 = vector.load %arg9[%c0_23, %c0_24] : memref<1x64xf32, #tpu.memory_space<vmem>>, vector<1x64xf32>
    %30 = vector.broadcast %29 : vector<1x64xf32> to vector<2x64xf32>
    %31 = arith.addf %28, %30 : vector<2x64xf32>
    %c0_25 = arith.constant 0 : index
    %c0_26 = arith.constant 0 : index
    %32 = vector.load %arg10[%c0_25, %c0_26] : memref<64x3200xf32, #tpu.memory_space<vmem>>, vector<64x3200xf32>
    %cst_27 = arith.constant dense<0.000000e+00> : vector<2x3200xf32>
    %33 = tpu.matmul %31, %32, %cst_27 {dimension_numbers = #tpu.dot_dimension_numbers<[1], [0], [0], [1], [0, 0, 1, 1], [], []>} : vector<2x64xf32>, vector<64x3200xf32>, vector<2x3200xf32> -> vector<2x3200xf32>
    %c0_28 = arith.constant 0 : index
    %c0_29 = arith.constant 0 : index
    %34 = vector.load %arg11[%c0_28, %c0_29] : memref<1x3200xf32, #tpu.memory_space<vmem>>, vector<1x3200xf32>
    %35 = vector.broadcast %34 : vector<1x3200xf32> to vector<2x3200xf32>
    %36 = arith.addf %33, %35 : vector<2x3200xf32>
    %c0_30 = arith.constant 0 : index
    %c0_31 = arith.constant 0 : index
    %37 = vector.load %arg12[%c0_30, %c0_31] : memref<2x20xf32, #tpu.memory_space<vmem>>, vector<2x20xf32>
    tpu.vector_store %arg12[%c0_30, %c0_31], %15 {strides = array<i32>} : memref<2x20xf32, #tpu.memory_space<vmem>>, vector<2x20xf32>,
    %c0_32 = arith.constant 0 : index
    %c0_33 = arith.constant 0 : index
    %38 = vector.load %arg13[%c0_32, %c0_33] : memref<2x20xf32, #tpu.memory_space<vmem>>, vector<2x20xf32>
    tpu.vector_store %arg13[%c0_32, %c0_33], %20 {strides = array<i32>} : memref<2x20xf32, #tpu.memory_space<vmem>>, vector<2x20xf32>,
    %cst_34 = arith.constant 0.000000e+00 : f32
    %39 = vector.broadcast %cst_34 : f32 to vector<2x3200xf32>
    %40 = arith.maximumf %36, %39 : vector<2x3200xf32>
    %c0_35 = arith.constant 0 : index
    %c0_36 = arith.constant 0 : index
    %41 = vector.load %arg14[%c0_35, %c0_36] : memref<2x3200xf32, #tpu.memory_space<vmem>>, vector<2x3200xf32>
    tpu.vector_store %arg14[%c0_35, %c0_36], %40 {strides = array<i32>} : memref<2x3200xf32, #tpu.memory_space<vmem>>, vector<2x3200xf32>,
    return
  }
}

module attributes {stable_mosaic.version = 11 : i64} {
  func.func @_convt4_kernel(%arg0: memref<1152x98xf32, #tpu.memory_space<vmem>>, %arg1: memref<768x84xf32, #tpu.memory_space<vmem>>, %arg2: memref<768x84xf32, #tpu.memory_space<vmem>>, %arg3: memref<512x72xf32, #tpu.memory_space<vmem>>, %arg4: memref<32x1152xf32, #tpu.memory_space<vmem>>, %arg5: memref<32x768xf32, #tpu.memory_space<vmem>>, %arg6: memref<32x768xf32, #tpu.memory_space<vmem>>, %arg7: memref<32x512xf32, #tpu.memory_space<vmem>>, %arg8: memref<32x1xf32, #tpu.memory_space<vmem>>, %arg9: memref<32x98xf32, #tpu.memory_space<vmem>>, %arg10: memref<32x84xf32, #tpu.memory_space<vmem>>, %arg11: memref<32x84xf32, #tpu.memory_space<vmem>>, %arg12: memref<32x72xf32, #tpu.memory_space<vmem>>) attributes {dimension_semantics = [], scalar_prefetch = 0 : i64, scratch_operands = 0 : i64, tpu.core_type = #tpu.core_type<tc>} {
    %c0 = arith.constant 0 : index
    %c0_0 = arith.constant 0 : index
    %0 = vector.load %arg4[%c0, %c0_0] : memref<32x1152xf32, #tpu.memory_space<vmem>>, vector<32x1152xf32>
    %c0_1 = arith.constant 0 : index
    %c0_2 = arith.constant 0 : index
    %1 = vector.load %arg0[%c0_1, %c0_2] : memref<1152x98xf32, #tpu.memory_space<vmem>>, vector<1152x98xf32>
    %cst = arith.constant dense<0.000000e+00> : vector<32x98xf32>
    %2 = tpu.matmul %0, %1, %cst {dimension_numbers = #tpu.dot_dimension_numbers<[1], [0], [0], [1], [0, 0, 1, 1], [], []>} : vector<32x1152xf32>, vector<1152x98xf32>, vector<32x98xf32> -> vector<32x98xf32>
    %c0_3 = arith.constant 0 : index
    %c0_4 = arith.constant 0 : index
    %3 = vector.load %arg8[%c0_3, %c0_4] : memref<32x1xf32, #tpu.memory_space<vmem>>, vector<32x1xf32>
    %4 = vector.broadcast %3 : vector<32x1xf32> to vector<32x98xf32>
    %5 = arith.addf %2, %4 : vector<32x98xf32>
    %cst_5 = arith.constant 0.000000e+00 : f32
    %6 = vector.broadcast %cst_5 : f32 to vector<32x98xf32>
    %7 = arith.maximumf %5, %6 : vector<32x98xf32>
    %c0_6 = arith.constant 0 : index
    %c0_7 = arith.constant 0 : index
    %8 = vector.load %arg9[%c0_6, %c0_7] : memref<32x98xf32, #tpu.memory_space<vmem>>, vector<32x98xf32>
    tpu.vector_store %arg9[%c0_6, %c0_7], %7 {strides = array<i32>} : memref<32x98xf32, #tpu.memory_space<vmem>>, vector<32x98xf32>,
    %c0_8 = arith.constant 0 : index
    %c0_9 = arith.constant 0 : index
    %9 = vector.load %arg5[%c0_8, %c0_9] : memref<32x768xf32, #tpu.memory_space<vmem>>, vector<32x768xf32>
    %c0_10 = arith.constant 0 : index
    %c0_11 = arith.constant 0 : index
    %10 = vector.load %arg1[%c0_10, %c0_11] : memref<768x84xf32, #tpu.memory_space<vmem>>, vector<768x84xf32>
    %cst_12 = arith.constant dense<0.000000e+00> : vector<32x84xf32>
    %11 = tpu.matmul %9, %10, %cst_12 {dimension_numbers = #tpu.dot_dimension_numbers<[1], [0], [0], [1], [0, 0, 1, 1], [], []>} : vector<32x768xf32>, vector<768x84xf32>, vector<32x84xf32> -> vector<32x84xf32>
    %c0_13 = arith.constant 0 : index
    %c0_14 = arith.constant 0 : index
    %12 = vector.load %arg8[%c0_13, %c0_14] : memref<32x1xf32, #tpu.memory_space<vmem>>, vector<32x1xf32>
    %13 = vector.broadcast %12 : vector<32x1xf32> to vector<32x84xf32>
    %14 = arith.addf %11, %13 : vector<32x84xf32>
    %cst_15 = arith.constant 0.000000e+00 : f32
    %15 = vector.broadcast %cst_15 : f32 to vector<32x84xf32>
    %16 = arith.maximumf %14, %15 : vector<32x84xf32>
    %c0_16 = arith.constant 0 : index
    %c0_17 = arith.constant 0 : index
    %17 = vector.load %arg10[%c0_16, %c0_17] : memref<32x84xf32, #tpu.memory_space<vmem>>, vector<32x84xf32>
    tpu.vector_store %arg10[%c0_16, %c0_17], %16 {strides = array<i32>} : memref<32x84xf32, #tpu.memory_space<vmem>>, vector<32x84xf32>,
    %c0_18 = arith.constant 0 : index
    %c0_19 = arith.constant 0 : index
    %18 = vector.load %arg6[%c0_18, %c0_19] : memref<32x768xf32, #tpu.memory_space<vmem>>, vector<32x768xf32>
    %c0_20 = arith.constant 0 : index
    %c0_21 = arith.constant 0 : index
    %19 = vector.load %arg2[%c0_20, %c0_21] : memref<768x84xf32, #tpu.memory_space<vmem>>, vector<768x84xf32>
    %cst_22 = arith.constant dense<0.000000e+00> : vector<32x84xf32>
    %20 = tpu.matmul %18, %19, %cst_22 {dimension_numbers = #tpu.dot_dimension_numbers<[1], [0], [0], [1], [0, 0, 1, 1], [], []>} : vector<32x768xf32>, vector<768x84xf32>, vector<32x84xf32> -> vector<32x84xf32>
    %c0_23 = arith.constant 0 : index
    %c0_24 = arith.constant 0 : index
    %21 = vector.load %arg8[%c0_23, %c0_24] : memref<32x1xf32, #tpu.memory_space<vmem>>, vector<32x1xf32>
    %22 = vector.broadcast %21 : vector<32x1xf32> to vector<32x84xf32>
    %23 = arith.addf %20, %22 : vector<32x84xf32>
    %cst_25 = arith.constant 0.000000e+00 : f32
    %24 = vector.broadcast %cst_25 : f32 to vector<32x84xf32>
    %25 = arith.maximumf %23, %24 : vector<32x84xf32>
    %c0_26 = arith.constant 0 : index
    %c0_27 = arith.constant 0 : index
    %26 = vector.load %arg11[%c0_26, %c0_27] : memref<32x84xf32, #tpu.memory_space<vmem>>, vector<32x84xf32>
    tpu.vector_store %arg11[%c0_26, %c0_27], %25 {strides = array<i32>} : memref<32x84xf32, #tpu.memory_space<vmem>>, vector<32x84xf32>,
    %c0_28 = arith.constant 0 : index
    %c0_29 = arith.constant 0 : index
    %27 = vector.load %arg7[%c0_28, %c0_29] : memref<32x512xf32, #tpu.memory_space<vmem>>, vector<32x512xf32>
    %c0_30 = arith.constant 0 : index
    %c0_31 = arith.constant 0 : index
    %28 = vector.load %arg3[%c0_30, %c0_31] : memref<512x72xf32, #tpu.memory_space<vmem>>, vector<512x72xf32>
    %cst_32 = arith.constant dense<0.000000e+00> : vector<32x72xf32>
    %29 = tpu.matmul %27, %28, %cst_32 {dimension_numbers = #tpu.dot_dimension_numbers<[1], [0], [0], [1], [0, 0, 1, 1], [], []>} : vector<32x512xf32>, vector<512x72xf32>, vector<32x72xf32> -> vector<32x72xf32>
    %c0_33 = arith.constant 0 : index
    %c0_34 = arith.constant 0 : index
    %30 = vector.load %arg8[%c0_33, %c0_34] : memref<32x1xf32, #tpu.memory_space<vmem>>, vector<32x1xf32>
    %31 = vector.broadcast %30 : vector<32x1xf32> to vector<32x72xf32>
    %32 = arith.addf %29, %31 : vector<32x72xf32>
    %cst_35 = arith.constant 0.000000e+00 : f32
    %33 = vector.broadcast %cst_35 : f32 to vector<32x72xf32>
    %34 = arith.maximumf %32, %33 : vector<32x72xf32>
    %c0_36 = arith.constant 0 : index
    %c0_37 = arith.constant 0 : index
    %35 = vector.load %arg12[%c0_36, %c0_37] : memref<32x72xf32, #tpu.memory_space<vmem>>, vector<32x72xf32>
    tpu.vector_store %arg12[%c0_36, %c0_37], %34 {strides = array<i32>} : memref<32x72xf32, #tpu.memory_space<vmem>>, vector<32x72xf32>,
    return
  }
}

module attributes {stable_mosaic.version = 11 : i64} {
  func.func @_convt4_kernel(%arg0: memref<128x392xf32, #tpu.memory_space<vmem>>, %arg1: memref<128x392xf32, #tpu.memory_space<vmem>>, %arg2: memref<128x392xf32, #tpu.memory_space<vmem>>, %arg3: memref<128x392xf32, #tpu.memory_space<vmem>>, %arg4: memref<1x128xf32, #tpu.memory_space<vmem>>, %arg5: memref<1x128xf32, #tpu.memory_space<vmem>>, %arg6: memref<1x128xf32, #tpu.memory_space<vmem>>, %arg7: memref<1x128xf32, #tpu.memory_space<vmem>>, %arg8: memref<1x1xf32, #tpu.memory_space<vmem>>, %arg9: memref<1x392xf32, #tpu.memory_space<vmem>>, %arg10: memref<1x392xf32, #tpu.memory_space<vmem>>, %arg11: memref<1x392xf32, #tpu.memory_space<vmem>>, %arg12: memref<1x392xf32, #tpu.memory_space<vmem>>) attributes {dimension_semantics = [], scalar_prefetch = 0 : i64, scratch_operands = 0 : i64, tpu.core_type = #tpu.core_type<tc>} {
    %c0 = arith.constant 0 : index
    %c0_0 = arith.constant 0 : index
    %0 = vector.load %arg4[%c0, %c0_0] : memref<1x128xf32, #tpu.memory_space<vmem>>, vector<1x128xf32>
    %c0_1 = arith.constant 0 : index
    %c0_2 = arith.constant 0 : index
    %1 = vector.load %arg0[%c0_1, %c0_2] : memref<128x392xf32, #tpu.memory_space<vmem>>, vector<128x392xf32>
    %cst = arith.constant dense<0.000000e+00> : vector<1x392xf32>
    %2 = tpu.matmul %0, %1, %cst {dimension_numbers = #tpu.dot_dimension_numbers<[1], [0], [0], [1], [0, 0, 1, 1], [], []>} : vector<1x128xf32>, vector<128x392xf32>, vector<1x392xf32> -> vector<1x392xf32>
    %c0_3 = arith.constant 0 : index
    %c0_4 = arith.constant 0 : index
    %3 = vector.load %arg8[%c0_3, %c0_4] : memref<1x1xf32, #tpu.memory_space<vmem>>, vector<1x1xf32>
    %4 = vector.broadcast %3 : vector<1x1xf32> to vector<1x392xf32>
    %5 = arith.addf %2, %4 : vector<1x392xf32>
    %cst_5 = arith.constant 0.000000e+00 : f32
    %6 = vector.broadcast %cst_5 : f32 to vector<1x392xf32>
    %7 = arith.subf %6, %5 : vector<1x392xf32>
    %8 = math.exp %7 : vector<1x392xf32>
    %cst_6 = arith.constant 1.000000e+00 : f32
    %9 = vector.broadcast %cst_6 : f32 to vector<1x392xf32>
    %10 = arith.addf %9, %8 : vector<1x392xf32>
    %cst_7 = arith.constant 1.000000e+00 : f32
    %11 = vector.broadcast %cst_7 : f32 to vector<1x392xf32>
    %12 = arith.divf %11, %10 : vector<1x392xf32>
    %c0_8 = arith.constant 0 : index
    %c0_9 = arith.constant 0 : index
    %13 = vector.load %arg9[%c0_8, %c0_9] : memref<1x392xf32, #tpu.memory_space<vmem>>, vector<1x392xf32>
    tpu.vector_store %arg9[%c0_8, %c0_9], %12 {strides = array<i32>} : memref<1x392xf32, #tpu.memory_space<vmem>>, vector<1x392xf32>,
    %c0_10 = arith.constant 0 : index
    %c0_11 = arith.constant 0 : index
    %14 = vector.load %arg5[%c0_10, %c0_11] : memref<1x128xf32, #tpu.memory_space<vmem>>, vector<1x128xf32>
    %c0_12 = arith.constant 0 : index
    %c0_13 = arith.constant 0 : index
    %15 = vector.load %arg1[%c0_12, %c0_13] : memref<128x392xf32, #tpu.memory_space<vmem>>, vector<128x392xf32>
    %cst_14 = arith.constant dense<0.000000e+00> : vector<1x392xf32>
    %16 = tpu.matmul %14, %15, %cst_14 {dimension_numbers = #tpu.dot_dimension_numbers<[1], [0], [0], [1], [0, 0, 1, 1], [], []>} : vector<1x128xf32>, vector<128x392xf32>, vector<1x392xf32> -> vector<1x392xf32>
    %c0_15 = arith.constant 0 : index
    %c0_16 = arith.constant 0 : index
    %17 = vector.load %arg8[%c0_15, %c0_16] : memref<1x1xf32, #tpu.memory_space<vmem>>, vector<1x1xf32>
    %18 = vector.broadcast %17 : vector<1x1xf32> to vector<1x392xf32>
    %19 = arith.addf %16, %18 : vector<1x392xf32>
    %cst_17 = arith.constant 0.000000e+00 : f32
    %20 = vector.broadcast %cst_17 : f32 to vector<1x392xf32>
    %21 = arith.subf %20, %19 : vector<1x392xf32>
    %22 = math.exp %21 : vector<1x392xf32>
    %cst_18 = arith.constant 1.000000e+00 : f32
    %23 = vector.broadcast %cst_18 : f32 to vector<1x392xf32>
    %24 = arith.addf %23, %22 : vector<1x392xf32>
    %cst_19 = arith.constant 1.000000e+00 : f32
    %25 = vector.broadcast %cst_19 : f32 to vector<1x392xf32>
    %26 = arith.divf %25, %24 : vector<1x392xf32>
    %c0_20 = arith.constant 0 : index
    %c0_21 = arith.constant 0 : index
    %27 = vector.load %arg10[%c0_20, %c0_21] : memref<1x392xf32, #tpu.memory_space<vmem>>, vector<1x392xf32>
    tpu.vector_store %arg10[%c0_20, %c0_21], %26 {strides = array<i32>} : memref<1x392xf32, #tpu.memory_space<vmem>>, vector<1x392xf32>,
    %c0_22 = arith.constant 0 : index
    %c0_23 = arith.constant 0 : index
    %28 = vector.load %arg6[%c0_22, %c0_23] : memref<1x128xf32, #tpu.memory_space<vmem>>, vector<1x128xf32>
    %c0_24 = arith.constant 0 : index
    %c0_25 = arith.constant 0 : index
    %29 = vector.load %arg2[%c0_24, %c0_25] : memref<128x392xf32, #tpu.memory_space<vmem>>, vector<128x392xf32>
    %cst_26 = arith.constant dense<0.000000e+00> : vector<1x392xf32>
    %30 = tpu.matmul %28, %29, %cst_26 {dimension_numbers = #tpu.dot_dimension_numbers<[1], [0], [0], [1], [0, 0, 1, 1], [], []>} : vector<1x128xf32>, vector<128x392xf32>, vector<1x392xf32> -> vector<1x392xf32>
    %c0_27 = arith.constant 0 : index
    %c0_28 = arith.constant 0 : index
    %31 = vector.load %arg8[%c0_27, %c0_28] : memref<1x1xf32, #tpu.memory_space<vmem>>, vector<1x1xf32>
    %32 = vector.broadcast %31 : vector<1x1xf32> to vector<1x392xf32>
    %33 = arith.addf %30, %32 : vector<1x392xf32>
    %cst_29 = arith.constant 0.000000e+00 : f32
    %34 = vector.broadcast %cst_29 : f32 to vector<1x392xf32>
    %35 = arith.subf %34, %33 : vector<1x392xf32>
    %36 = math.exp %35 : vector<1x392xf32>
    %cst_30 = arith.constant 1.000000e+00 : f32
    %37 = vector.broadcast %cst_30 : f32 to vector<1x392xf32>
    %38 = arith.addf %37, %36 : vector<1x392xf32>
    %cst_31 = arith.constant 1.000000e+00 : f32
    %39 = vector.broadcast %cst_31 : f32 to vector<1x392xf32>
    %40 = arith.divf %39, %38 : vector<1x392xf32>
    %c0_32 = arith.constant 0 : index
    %c0_33 = arith.constant 0 : index
    %41 = vector.load %arg11[%c0_32, %c0_33] : memref<1x392xf32, #tpu.memory_space<vmem>>, vector<1x392xf32>
    tpu.vector_store %arg11[%c0_32, %c0_33], %40 {strides = array<i32>} : memref<1x392xf32, #tpu.memory_space<vmem>>, vector<1x392xf32>,
    %c0_34 = arith.constant 0 : index
    %c0_35 = arith.constant 0 : index
    %42 = vector.load %arg7[%c0_34, %c0_35] : memref<1x128xf32, #tpu.memory_space<vmem>>, vector<1x128xf32>
    %c0_36 = arith.constant 0 : index
    %c0_37 = arith.constant 0 : index
    %43 = vector.load %arg3[%c0_36, %c0_37] : memref<128x392xf32, #tpu.memory_space<vmem>>, vector<128x392xf32>
    %cst_38 = arith.constant dense<0.000000e+00> : vector<1x392xf32>
    %44 = tpu.matmul %42, %43, %cst_38 {dimension_numbers = #tpu.dot_dimension_numbers<[1], [0], [0], [1], [0, 0, 1, 1], [], []>} : vector<1x128xf32>, vector<128x392xf32>, vector<1x392xf32> -> vector<1x392xf32>
    %c0_39 = arith.constant 0 : index
    %c0_40 = arith.constant 0 : index
    %45 = vector.load %arg8[%c0_39, %c0_40] : memref<1x1xf32, #tpu.memory_space<vmem>>, vector<1x1xf32>
    %46 = vector.broadcast %45 : vector<1x1xf32> to vector<1x392xf32>
    %47 = arith.addf %44, %46 : vector<1x392xf32>
    %cst_41 = arith.constant 0.000000e+00 : f32
    %48 = vector.broadcast %cst_41 : f32 to vector<1x392xf32>
    %49 = arith.subf %48, %47 : vector<1x392xf32>
    %50 = math.exp %49 : vector<1x392xf32>
    %cst_42 = arith.constant 1.000000e+00 : f32
    %51 = vector.broadcast %cst_42 : f32 to vector<1x392xf32>
    %52 = arith.addf %51, %50 : vector<1x392xf32>
    %cst_43 = arith.constant 1.000000e+00 : f32
    %53 = vector.broadcast %cst_43 : f32 to vector<1x392xf32>
    %54 = arith.divf %53, %52 : vector<1x392xf32>
    %c0_44 = arith.constant 0 : index
    %c0_45 = arith.constant 0 : index
    %55 = vector.load %arg12[%c0_44, %c0_45] : memref<1x392xf32, #tpu.memory_space<vmem>>, vector<1x392xf32>
    tpu.vector_store %arg12[%c0_44, %c0_45], %54 {strides = array<i32>} : memref<1x392xf32, #tpu.memory_space<vmem>>, vector<1x392xf32>,
    return
  }
}

</mosaic_0001>

<bundles_post_ra>
// kernel: vae_cnn_forward.5
= control target key start
LH: loop header
LB: loop body
LE: loop exit
PB: predicated region body
PF: predicated region fallthrough
CT: control target
= control target key end

     0   :  { %vm33_vm0 = vcmask 1040384   ;;  %vm239_vm1 = vmmov 1   ;;  %v240_v3 = vmov 0.0   ;;  %v241_v8 = vmov 0   ;;  %s311_s1 = inlined_call_operand.vmem [shape: f32[9,392], index: 1, kind: input, shape index: {}]   ;;  %s312_s2 = inlined_call_operand.vmem [shape: f32[4,1], index: 2, kind: input, shape index: {}]   ;;  %s313_s0 = inlined_call_operand.vmem [shape: f32[4,9], index: 0, kind: input, shape index: {}]   ;;  %s314_s3 = inlined_call_operand.vmem [shape: f32[4,392], index: 3, kind: output, shape index: {}]  }
   0x1   :  { %v16_v0 = vld [vmem:[%s311_s1 + $0x8] sm:$0xff]  ;;  %vm268_vm2 = vmpackc.low %vm33_vm0, %vm239_vm1  ;;  %110 = vmatprep.mubr.f32.mxu0 %v240_v3  ;;  %181 = vmatprep.mubr.f32.mxu1 %v240_v3  ;;  %v18_v5 = vld [vmem:[%s311_s1 + $0x18] sm:$0xff]  ;;  %vm29_vm3 = vcmask 72704   ;;  %vm209_vm4 = vcmask 1043456   ;;  %vm210_vm5 = vcmask 64516  }
   0x2   :  { %v20_v1 = vld [vmem:[%s311_s1 + $0x28] sm:$0x1]  ;;  %v22_v6 = vld [vmem:[%s311_s1 + $0x38] sm:$0x1]  ;;  %v15_v7 = vld [vmem:[%s311_s1] sm:$0xff]  ;;  %238 = vset.pattern.permute.xlu0 %v241_v8 }
   0x3   :  { %v223_v4 = vpack.c.bf16 %v20_v1, %v16_v0  ;;  %v229_v9 = vpack.c.bf16 %v22_v6, %v18_v5  ;;  %v19_v10 = vld [vmem:[%s311_s1 + $0x20] sm:$0x1]  ;;  %v17_v11 = vld [vmem:[%s311_s1 + $0x10] sm:$0xff]  ;;  %vm211_vm10 = vmor %vm210_vm5, %vm209_vm4 }
   0x4   :  { %v21_v12 = vld [vmem:[%s311_s1 + $0x30] sm:$0x1]  ;;  %v226_v13 = vpack.c.bf16 %v19_v10, %v15_v7  ;;  %v23_v15 = vld [vmem:[%s312_s2] sm:$0xf] }
   0x5   :  { %225 = vmatprep.subr.msk.bf16.mxu0 %vm268_vm2, %v223_v4  ;;  %v232_v14 = vpack.c.bf16 %v21_v12, %v17_v11  ;;  %231 = vmatprep.subr.msk.bf16.mxu1 %vm268_vm2, %v229_v9  ;;  %v14_v16 = vld [vmem:[%s313_s0] sm:$0xf] }
   0x6   :  { %26 = vperm.xlu0 %238, %v23_v15   ;;  %228 = vmatpush1.bf16.msk.msra.mxu0 %vm268_vm2, %v226_v13 }
   0x7   :  { %234 = vmatpush1.bf16.msk.msra.mxu1 %vm268_vm2, %v232_v14 }
   0x9   :  { %219 = vmatmul.mubr.msk.f32.vlgmr.msra.gmra.mrb[0].mxu0 %vm29_vm3, %v14_v16 }
   0xa   :  { %222 = vmatmul.mubr.msk.f32.vlgmr.msra.gmra.mrb[0].mxu1 %vm29_vm3, %v14_v16 }
  0x85   :  { %v27_v17 = vpop.permute.xlu0 %26 }
  0xdc   :  { %v112_v18 = vpop.f32.mrb[0].mxu0 }
  0xdd   :  { %v183_v19 = vpop.f32.mrb[0].mxu1  ;;  %v113_v20 = vadd.f32 %v112_v18, %v27_v17  ;;  %v114_v22 = vpop.f32.mrb[1].mxu0 }
  0xde   :  { %v184_v21 = vadd.f32 %v183_v19, %v27_v17  ;;  %v185_v23 = vpop.f32.mrb[1].mxu1  ;;  %v115_v24 = vadd.f32 %v114_v22, %v27_v17 }
  0xdf   :  { %v186_v25 = vadd.f32 %v185_v23, %v27_v17  ;;  %vm188_vm6 = vcmp.gt.f32.partialorder %v113_v20, 0.0  ;;  %v192_v26 = vmul.f32 0.2, %v113_v20 }
  0xe0   :  { %vm190_vm7 = vcmp.gt.f32.partialorder %v184_v21, 0.0  ;;  %v194_v27 = vmul.f32 0.2, %v184_v21  ;;  %vm189_vm8 = vcmp.gt.f32.partialorder %v115_v24, 0.0  ;;  %v193_v28 = vmul.f32 0.2, %v115_v24 }
  0xe1   :  { %vm191_vm9 = vcmp.gt.f32.partialorder %v186_v25, 0.0  ;;  %v195_v29 = vmul.f32 0.2, %v186_v25  ;;  %v196_v30 = vsel %vm188_vm6, %v113_v20, %v192_v26 }
  0xe2   :  { %v198_v31 = vsel %vm190_vm7, %v184_v21, %v194_v27  ;;  %v197_v32 = vsel %vm189_vm8, %v115_v24, %v193_v28 }
  0xe3   :  { %v199_v33 = vsel %vm191_vm9, %v186_v25, %v195_v29  ;;  %v204_v34 = vcombine.low %v196_v30, %v197_v32 }
  0xe4   :  { %v205_v35 = vcombine.low %v198_v31, %v199_v33 }
  0xe5   :  { %208 = vst [vmem:[%s314_s3] sm:$0xff] %v204_v34 }
  0xe6   :  { %212 = vst.msk [vmem:[%s314_s3 + $0x8] sm:$0xff] %vm211_vm10, %v205_v35 }

// kernel: vae_cnn_forward.6
= control target key start
LH: loop header
LB: loop body
LE: loop exit
PB: predicated region body
PF: predicated region fallthrough
CT: control target
= control target key end

     0   :  { %v145_v0 = vmov 0.0|0.0   ;;  %vm146_vm0 = vmmov 0   ;;  %v147_v4 = vmov 0.0   ;;  %v148_v7 = vmov 0   ;;  %s193_s1 = inlined_call_operand.vmem [shape: f32[36,98], index: 1, kind: input, shape index: {}]   ;;  %s194_s2 = inlined_call_operand.vmem [shape: f32[8,1], index: 2, kind: input, shape index: {}]   ;;  %s195_s0 = inlined_call_operand.vmem [shape: f32[8,36], index: 0, kind: input, shape index: {}]   ;;  %s196_s3 = inlined_call_operand.vmem [shape: f32[8,98], index: 3, kind: output, shape index: {}]  }
   0x1   :  { %134 = vmatprep.subr.bf16.mxu0 %v145_v0  ;;  %v15_v1 = vld [vmem:[%s193_s1] sm:$0xff]  ;;  %v16_v2 = vld [vmem:[%s193_s1 + $0x8] sm:$0xff]  ;;  %v17_v3 = vld [vmem:[%s193_s1 + $0x10] sm:$0xff]  ;;  %131 = vmatprep.mubr.msk.f32.mxu0 %vm146_vm0, %v147_v4  ;;  %vm30_vm1 = vcmask 1043456   ;;  %vm26_vm2 = vcmask 293888   ;;  %vm107_vm4 = vcmask 801792  }
   0x2   :  { %v135_v5 = vpack.c.bf16 %v16_v2, %v15_v1  ;;  %v18_v6 = vld [vmem:[%s193_s1 + $0x18] sm:$0xff]  ;;  %144 = vset.pattern.permute.xlu0 %v148_v7  ;;  %v20_v8 = vld [vmem:[%s194_s2] sm:$0xff] }
   0x3   :  { %v138_v9 = vpack.c.bf16 %v18_v6, %v17_v3  ;;  %23 = vperm.xlu0 %144, %v20_v8   ;;  %v19_v10 = vld [vmem:[%s193_s1 + $0x20] sm:$0xf] }
   0x4   :  { %136 = vmatpush3.bf16.msra.mxu0 %v135_v5  ;;  %v14_v11 = vld [vmem:[%s195_s0] sm:$0xff] }
   0x5   :  { %137 = vmatprep.subr.bf16.mxu0 %v145_v0 }
   0x8   :  { %139 = vmatpush3.bf16.msra.mxu0 %v138_v9 }
   0x9   :  { %129 = vmatprep.subr.mxu0 %v147_v4 }
   0xc   :  { %130 = vmatpush3.msk.msra.mxu0 %vm30_vm1, %v19_v10 }
   0xd   :  { %132 = vmatmul.mubr.msk.f32.vlgmr.msra.gmra.mrb[0].mxu0 %vm26_vm2, %v14_v11 }
  0x82   :  { %v24_v12 = vpop.permute.xlu0 %23 }
  0xe0   :  { %v100_v13 = vpop.f32.mrb[0].mxu0 }
  0xe1   :  { %v101_v14 = vadd.f32 %v100_v13, %v24_v12  ;;  %v133_v15 = vpop.f32.mrb[1].mxu0 }
  0xe3   :  { %vm104_vm3 = vcmp.gt.f32.partialorder %v101_v14, 0.0  ;;  %v105_v16 = vmul.f32 0.2, %v101_v14 }
  0xe5   :  { %v106_v17 = vsel %vm104_vm3, %v101_v14, %v105_v16 }
  0xe6   :  { %108 = vst.msk [vmem:[%s196_s3] sm:$0xff] %vm107_vm4, %v106_v17 }

// kernel: vae_cnn_forward.7
= control target key start
LH: loop header
LB: loop body
LE: loop exit
PB: predicated region body
PF: predicated region fallthrough
CT: control target
= control target key end

     0   :  { %20 = vsyncpa [#allocation3], 0  ;;  %v2504_v5 = vmov 0.0|0.0   ;;  %v2505_v22 = vmov 1983009808   ;;  %v108_v24 = vlaneseq  ;;  %s3605_s0 = inlined_call_operand.vmem [shape: f32[2,392], index: 0, kind: input, shape index: {}]   ;;  %s3606_s1 = inlined_call_operand.vmem [shape: f32[2,20], index: 1, kind: input, shape index: {}]   ;;  %s3607_s2 = inlined_call_operand.vmem [shape: f32[392,64], index: 2, kind: input, shape index: {}]   ;;  %s3608_s3 = inlined_call_operand.vmem [shape: f32[1,64], index: 3, kind: input, shape index: {}]   ;;  %s3609_s4 = inlined_call_operand.vmem [shape: f32[64,20], index: 4, kind: input, shape index: {}]   ;;  %s3610_s5 = inlined_call_operand.vmem [shape: f32[1,20], index: 5, kind: input, shape index: {}]   ;;  %s3611_s6 = inlined_call_operand.vmem [shape: f32[64,20], index: 6, kind: input, shape index: {}]   ;;  %s3612_s7 = inlined_call_operand.vmem [shape: f32[1,20], index: 7, kind: input, shape index: {}]   ;;  %s3613_s8 = inlined_call_operand.vmem [shape: f32[20,64], index: 8, kind: input, shape index: {}]   ;;  %s3614_s9 = inlined_call_operand.vmem [shape: f32[1,64], index: 9, kind: input, shape index: {}]   ;;  %s3615_s10 = inlined_call_operand.vmem [shape: f32[64,3200], index: 10, kind: input, shape index: {}]   ;;  %s3616_s11 = inlined_call_operand.vmem [shape: f32[1,3200], index: 11, kind: input, shape index: {}]   ;;  %s3617_s12 = inlined_call_operand.hbm [shape: f32[2,20], index: 12, kind: output, shape index: {0}]   ;;  %s3618_s13 = inlined_call_operand.hbm [shape: f32[2,20], index: 13, kind: output, shape index: {1}]   ;;  %s3619_s14 = inlined_call_operand.vmem [shape: f32[2,3200], index: 14, kind: output, shape index: {2}]  }
   0x1   :  { %v63_v0 = vld [vmem:[%s3607_s2 + $0x80] sm:$0xff]  ;;  %v64_v1 = vld [vmem:[%s3607_s2 + $0x88] sm:$0xff]  ;;  %2192 = vmatprep.subr.bf16.mxu1 %v2504_v5  ;;  %v65_v10 = vld [vmem:[%s3607_s2 + $0x90] sm:$0xff]  ;;  %v106_v23 = vunpack.c.l.s4 %v2505_v22 }
   0x2   :  { %v47_v2 = vld [vmem:[%s3607_s2] sm:$0xff]  ;;  %v2160_v3 = vpack.c.bf16 %v64_v1, %v63_v0  ;;  %v48_v4 = vld [vmem:[%s3607_s2 + $0x8] sm:$0xff]  ;;  %v66_v11 = vld [vmem:[%s3607_s2 + $0x98] sm:$0xff]  ;;  %v2650_v35 = vshrl.u32 %v108_v24, 7 }
   0x3   :  { %v79_v6 = vld [vmem:[%s3607_s2 + $0x100] sm:$0xff]  ;;  %v80_v7 = vld [vmem:[%s3607_s2 + $0x108] sm:$0xff]  ;;  %v2162_v8 = vpack.c.bf16 %v48_v4, %v47_v2  ;;  %v49_v12 = vld [vmem:[%s3607_s2 + $0x10] sm:$0xff]  ;;  %v2164_v13 = vpack.c.bf16 %v66_v11, %v65_v10  ;;  %v107_v34 = vunpack.c.0.s8 %v106_v23 }
   0x4   :  { %v2193_v9 = vpack.c.bf16 %v80_v7, %v79_v6  ;;  %2161 = vmatprep.subr.bf16.mxu0 %v2160_v3  ;;  %v50_v14 = vld [vmem:[%s3607_s2 + $0x18] sm:$0xff]  ;;  %v81_v15 = vld [vmem:[%s3607_s2 + $0x110] sm:$0xff]  ;;  %v67_v19 = vld [vmem:[%s3607_s2 + $0xa0] sm:$0xff] }
   0x5   :  { %v82_v16 = vld [vmem:[%s3607_s2 + $0x118] sm:$0xff]  ;;  %2163 = vmatpush3.bf16.msra.mxu0 %v2162_v8  ;;  %v2166_v17 = vpack.c.bf16 %v50_v14, %v49_v12  ;;  %v68_v20 = vld [vmem:[%s3607_s2 + $0xa8] sm:$0xff]  ;;  %v51_v21 = vld [vmem:[%s3607_s2 + $0x20] sm:$0xff]  ;;  %v2675_v46 = vsub.s32 %v107_v34, %v2650_v35 }
   0x6   :  { %2194 = vmatpush1.bf16.msra.mxu1 %v2193_v9  ;;  %v2196_v18 = vpack.c.bf16 %v82_v16, %v81_v15  ;;  %2165 = vmatprep.subr.bf16.mxu0 %v2164_v13  ;;  %v2168_v25 = vpack.c.bf16 %v68_v20, %v67_v19  ;;  %v52_v26 = vld [vmem:[%s3607_s2 + $0x28] sm:$0xff]  ;;  %v83_v27 = vld [vmem:[%s3607_s2 + $0x120] sm:$0xff]  ;;  %v69_v29 = vld [vmem:[%s3607_s2 + $0xb0] sm:$0xff] }
   0x7   :  { %2195 = vmatprep.subr.bf16.mxu1 %v2504_v5  ;;  %v84_v28 = vld [vmem:[%s3607_s2 + $0x128] sm:$0xff]  ;;  %v70_v30 = vld [vmem:[%s3607_s2 + $0xb8] sm:$0xff]  ;;  %v2170_v31 = vpack.c.bf16 %v52_v26, %v51_v21  ;;  %v53_v33 = vld [vmem:[%s3607_s2 + $0x30] sm:$0xff] }
   0x8   :  { %v2199_v32 = vpack.c.bf16 %v84_v28, %v83_v27  ;;  %v2172_v36 = vpack.c.bf16 %v70_v30, %v69_v29  ;;  %v54_v37 = vld [vmem:[%s3607_s2 + $0x38] sm:$0xff]  ;;  %v85_v38 = vld [vmem:[%s3607_s2 + $0x130] sm:$0xff]  ;;  %v71_v40 = vld [vmem:[%s3607_s2 + $0xc0] sm:$0xff] }
   0x9   :  { %2167 = vmatpush3.bf16.msra.mxu0 %v2166_v17  ;;  %v86_v39 = vld [vmem:[%s3607_s2 + $0x138] sm:$0xff]  ;;  %v72_v41 = vld [vmem:[%s3607_s2 + $0xc8] sm:$0xff]  ;;  %v2174_v42 = vpack.c.bf16 %v54_v37, %v53_v33  ;;  %v55_v44 = vld [vmem:[%s3607_s2 + $0x40] sm:$0xff] }
   0xa   :  { %2197 = vmatpush1.bf16.msra.mxu1 %v2196_v18  ;;  %2169 = vmatprep.subr.bf16.mxu0 %v2168_v25  ;;  %v2202_v43 = vpack.c.bf16 %v86_v39, %v85_v38  ;;  %v56_v45 = vld [vmem:[%s3607_s2 + $0x48] sm:$0xff]  ;;  %v2176_v47 = vpack.c.bf16 %v72_v41, %v71_v40  ;;  %v87_v48 = vld [vmem:[%s3607_s2 + $0x140] sm:$0xff]  ;;  %v73_v50 = vld [vmem:[%s3607_s2 + $0xd0] sm:$0xff] }
   0xb   :  { %2198 = vmatprep.subr.bf16.mxu1 %v2504_v5  ;;  %v88_v49 = vld [vmem:[%s3607_s2 + $0x148] sm:$0xff]  ;;  %v74_v51 = vld [vmem:[%s3607_s2 + $0xd8] sm:$0xff]  ;;  %v2178_v52 = vpack.c.bf16 %v56_v45, %v55_v44  ;;  %v46_v53 = vld [vmem:[%s3605_s0] sm:$0xff] }
   0xc   :  { %v2205_v54 = vpack.c.bf16 %v88_v49, %v87_v48  ;;  %v57_v55 = vld [vmem:[%s3607_s2 + $0x50] sm:$0xff]  ;;  %v104_v56 = vcombine.high %v46_v53, %v46_v53  ;;  %v111_v57 = vrot.slane %v46_v53, %v2675_v46  ;;  %v2180_v58 = vpack.c.bf16 %v74_v51, %v73_v50  ;;  %v58_v59 = vld [vmem:[%s3607_s2 + $0x58] sm:$0xff]  ;;  %v75_v62 = vld [vmem:[%s3607_s2 + $0xe0] sm:$0xff] }
   0xd   :  { %2171 = vmatpush3.bf16.msra.mxu0 %v2170_v31  ;;  %v89_v60 = vld [vmem:[%s3607_s2 + $0x150] sm:$0xff]  ;;  %v90_v61 = vld [vmem:[%s3607_s2 + $0x158] sm:$0xff]  ;;  %v76_v63 = vld [vmem:[%s3607_s2 + $0xe8] sm:$0xff] }
   0xe   :  { %2200 = vmatpush1.bf16.msra.mxu1 %v2199_v32  ;;  %2173 = vmatprep.subr.bf16.mxu0 %v2172_v36  ;;  %v119_v0 = vcombine.high %v111_v57, %v111_v57  ;;  %v118_v1 = vrot.slane %v104_v56, %v2675_v46 }
   0xf   :  { %2201 = vmatprep.subr.bf16.mxu1 %v2504_v5 }
  0x11   :  { %2175 = vmatpush3.bf16.msra.mxu0 %v2174_v42 }
  0x12   :  { %2203 = vmatpush1.bf16.msra.mxu1 %v2202_v43  ;;  %2177 = vmatprep.subr.bf16.mxu0 %v2176_v47 }
  0x13   :  { %2204 = vmatprep.subr.bf16.mxu1 %v2504_v5 }
  0x14   :  { %21 = vsyncpa [#allocation5], 0  ;;  %vm124_vm0 = vcmask 64512   ;;  %v2182_v2 = vpack.c.bf16 %v58_v59, %v57_v55  ;;  %v2208_v3 = vpack.c.bf16 %v90_v61, %v89_v60  ;;  %v59_v4 = vld [vmem:[%s3607_s2 + $0x60] sm:$0xff]  ;;  %v120_v6 = vcombine.high %v118_v1, %v118_v1  ;;  %v60_v8 = vld [vmem:[%s3607_s2 + $0x68] sm:$0xff]  ;;  %191 = vmatprep.mubr.f32.mxu0 %v119_v0  ;;  %s2508_s15 = smov [#allocation2]  }
  0x15   :  { %2179 = vmatpush3.bf16.msra.mxu0 %v2178_v52  ;;  %v2184_v7 = vpack.c.bf16 %v76_v63, %v75_v62  ;;  %v91_v9 = vld [vmem:[%s3607_s2 + $0x160] sm:$0xff]  ;;  %v92_v10 = vld [vmem:[%s3607_s2 + $0x168] sm:$0xff]  ;;  %v77_v11 = vld [vmem:[%s3607_s2 + $0xf0] sm:$0xff]  ;;  %v2186_v13 = vpack.c.bf16 %v60_v8, %v59_v4  ;;  %v2506_v27 = vmov 0.0   ;;  %vm2507_vm1 = vmmov 0   ;;  %s1978_s16 = sshll.u32 %s2508_s15, 4  ;;  %s1979_s16 = int_to_ptr.vmem [resolvable:$true] %s1978_s16 }
  0x16   :  { %2206 = vmatpush1.bf16.msra.mxu1 %v2205_v54  ;;  %2181 = vmatprep.subr.bf16.mxu0 %v2180_v58  ;;  %v78_v12 = vld [vmem:[%s3607_s2 + $0xf8] sm:$0xff]  ;;  %v2211_v14 = vpack.c.bf16 %v92_v10, %v91_v9  ;;  %v61_v15 = vld [vmem:[%s3607_s2 + $0x70] sm:$0xff]  ;;  %v270_v22 = vld [vmem:[%s3609_s4] sm:$0xff]  ;;  %vm285_vm3 = vcmask 523264   ;;  %vm464_vm4 = vcmask 1043456   ;;  %vm1796_vm5 = vcmask 156672   ;;  %p2461_p1 = scmp.lt.s32.totalorder %s1979_s16, %s1979_s16 }
  0x17   :  { %2207 = vmatprep.subr.bf16.mxu1 %v2504_v5  ;;  %2005 = vmatprep.mubr.msk.f32.mxu1 %vm124_vm0, %v120_v6  ;;  %v2188_v16 = vpack.c.bf16 %v78_v12, %v77_v11  ;;  %v62_v17 = vld [vmem:[%s3607_s2 + $0x78] sm:$0xff]  ;;  %v93_v18 = vld [vmem:[%s3607_s2 + $0x170] sm:$0xff]  ;;  %v271_v23 = vld [vmem:[%s3609_s4 + $0x8] sm:$0xff]  ;;  %vm460_vm6 = vcmask 162816   ;;  %s2509_s17 = smov [#allocation4]   ;;  %s2456_s19 = scalar_lea.vmem %s1979_s16, 32 }
  0x18   :  { %v94_v19 = vld [vmem:[%s3607_s2 + $0x178] sm:$0xff]  ;;  %v2190_v20 = vpack.c.bf16 %v62_v17, %v61_v15  ;;  %v359_v24 = vld [vmem:[%s3611_s6] sm:$0xff]  ;;  %v360_v25 = vld [vmem:[%s3611_s6 + $0x8] sm:$0xff]  ;;  %v2217_v26 = vpack.c.bf16 %v271_v23, %v270_v22  ;;  %s1988_s18 = sshll.u32 %s2509_s17, 4  ;;  %p2457_p0 = scmp.ne.s32.totalorder %s1979_s16, %s2456_s19  ;;  %s1989_s18 = int_to_ptr.vmem [resolvable:$true] %s1988_s18 }
  0x19   :  { %2183 = vmatpush3.bf16.msra.mxu0 %v2182_v2  ;;  %v2214_v21 = vpack.c.bf16 %v94_v19, %v93_v18  ;;  %v95_v28 = vld [vmem:[%s3607_s2 + $0x180] sm:$0xff]  ;;  %v2229_v29 = vpack.c.bf16 %v360_v25, %v359_v24  ;;  %v272_v30 = vld [vmem:[%s3609_s4 + $0x10] sm:$0xff]  ;;  %v273_v31 = vld [vmem:[%s3609_s4 + $0x18] sm:$0xff]  ;;  %p2462_p2 = scmp.lt.s32.totalorder %s2456_s19, %s2456_s19 }
  0x1a   :  { %2209 = vmatpush1.bf16.msra.mxu1 %v2208_v3  ;;  %2185 = vmatprep.subr.bf16.mxu0 %v2184_v7  ;;  %v361_v32 = vld [vmem:[%s3611_s6 + $0x10] sm:$0xff]  ;;  %v2220_v33 = vpack.c.bf16 %v273_v31, %v272_v30  ;;  %v362_v34 = vld [vmem:[%s3611_s6 + $0x18] sm:$0xff]  ;;  %v274_v37 = vld [vmem:[%s3609_s4 + $0x20] sm:$0xff] }
  0x1b   :  { %2210 = vmatprep.subr.bf16.mxu1 %v2504_v5  ;;  %v2232_v36 = vpack.c.bf16 %v362_v34, %v361_v32  ;;  %v275_v38 = vld [vmem:[%s3609_s4 + $0x28] sm:$0xff]  ;;  %v363_v39 = vld [vmem:[%s3611_s6 + $0x20] sm:$0xff]  ;;  %v276_v43 = vld [vmem:[%s3609_s4 + $0x30] sm:$0xff]  ;;  %p2463_p3 = por %p2462_p2, %p2461_p1 }
  0x1c   :  { %v2223_v40 = vpack.c.bf16 %v275_v38, %v274_v37  ;;  %v364_v41 = vld [vmem:[%s3611_s6 + $0x28] sm:$0xff]  ;;  %v277_v44 = vld [vmem:[%s3609_s4 + $0x38] sm:$0xff]  ;;  %v365_v45 = vld [vmem:[%s3611_s6 + $0x30] sm:$0xff] }
  0x1d   :  { %2187 = vmatpush3.bf16.msra.mxu0 %v2186_v13  ;;  %v2235_v42 = vpack.c.bf16 %v364_v41, %v363_v39  ;;  %v2226_v47 = vpack.c.bf16 %v277_v44, %v276_v43  ;;  %v366_v48 = vld [vmem:[%s3611_s6 + $0x38] sm:$0xff]  ;;  %v2004_v52 = vld [vmem:[%s3608_s3] ss:$0 sm:$0xff]  ;;  %v451_v61 = vld [vmem:[%s3613_s8 + $0x8] sm:$0xff]  ;;  %p2464_p4 = pnand %p2463_p3, %p2457_p0 }
  0x1e   :  { %2212 = vmatpush1.bf16.msra.mxu1 %v2211_v14  ;;  %2189 = vmatprep.subr.bf16.mxu0 %v2188_v16  ;;  %v2238_v49 = vpack.c.bf16 %v366_v48, %v365_v45  ;;  %v450_v60 = vld [vmem:[%s3613_s8] sm:$0xff]  ;;  %v452_v63 = vld [vmem:[%s3613_s8 + $0x10] sm:$0xf]  ;;  %v539_v0 = vld [vmem:[%s3615_s10 + $0x8] sm:$0xff] }
  0x1f   :  { %2213 = vmatprep.subr.bf16.mxu1 %v2504_v5  ;;  %v2241_v62 = vpack.c.bf16 %v451_v61, %v450_v60  ;;  %v541_v2 = vld [vmem:[%s3615_s10 + $0x18] sm:$0xff]  ;;  %v566_v4 = vld [vmem:[%s3615_s10 + $0xe0] sm:$0xff]  ;;  %v563_v7 = vld [vmem:[%s3615_s10 + $0xc8] sm:$0xff] }
  0x20   :  { %v538_v6 = vld [vmem:[%s3615_s10] sm:$0xff]  ;;  %v2259_v8 = vpack.c.bf16 %v566_v4, %v541_v2  ;;  %v589_v10 = vld [vmem:[%s3615_s10 + $0x198] sm:$0xff]  ;;  %v588_v13 = vld [vmem:[%s3615_s10 + $0x190] sm:$0xff] }
  0x21   :  { %2191 = vmatpush3.bf16.msra.mxu0 %v2190_v20  ;;  %v2245_v9 = vpack.c.bf16 %v563_v7, %v538_v6  ;;  %v614_v11 = vld [vmem:[%s3615_s10 + $0x260] sm:$0xff]  ;;  %v613_v14 = vld [vmem:[%s3615_s10 + $0x258] sm:$0xff]  ;;  %v639_v16 = vld [vmem:[%s3615_s10 + $0x328] sm:$0xff] }
  0x22   :  { %2215 = vmatpush1.bf16.msra.mxu1 %v2214_v21  ;;  %2216 = vmatprep.subr.bf16.mxu0 %v2504_v5  ;;  %v2247_v12 = vpack.c.bf16 %v614_v11, %v589_v10  ;;  %v2249_v15 = vpack.c.bf16 %v613_v14, %v588_v13  ;;  %v664_v17 = vld [vmem:[%s3615_s10 + $0x3f0] sm:$0xff]  ;;  %v638_v19 = vld [vmem:[%s3615_s10 + $0x320] sm:$0xff]  ;;  %v663_v20 = vld [vmem:[%s3615_s10 + $0x3e8] sm:$0xff] }
  0x23   :  { %229 = vmatprep.subr.mxu1 %v2506_v27  ;;  %v2251_v18 = vpack.c.bf16 %v664_v17, %v639_v16  ;;  %v2253_v21 = vpack.c.bf16 %v663_v20, %v638_v19  ;;  %v689_v22 = vld [vmem:[%s3615_s10 + $0x4b8] sm:$0xff]  ;;  %v714_v23 = vld [vmem:[%s3615_s10 + $0x580] sm:$0xff]  ;;  %v688_v25 = vld [vmem:[%s3615_s10 + $0x4b0] sm:$0xff] }
  0x24   :  { %192 = vmatmul.mubr.f32.vlgmr.msra.gmra.mrb[0].mxu0 %v111_v57  ;;  %v2255_v24 = vpack.c.bf16 %v714_v23, %v689_v22  ;;  %v2008_v30 = vld [vmem:[%s3612_s7] ss:$0 sm:$0xff]  ;;  %v540_v41 = vld [vmem:[%s3615_s10 + $0x10] sm:$0xff]  ;;  %v591_v44 = vld [vmem:[%s3615_s10 + $0x1a8] sm:$0xff] }
  0x25   :  { %2218 = vmatpush3.bf16.msra.mxu0 %v2217_v26  ;;  %2110 = vmatprep.mubr.msk.f32.mxu0 %vm2507_vm1, %v2506_v27  ;;  %v713_v26 = vld [vmem:[%s3615_s10 + $0x578] sm:$0xff]  ;;  %v616_v45 = vld [vmem:[%s3615_s10 + $0x270] sm:$0xff]  ;;  %v543_v2 = vld [vmem:[%s3615_s10 + $0x28] sm:$0xff] }
  0x26   :  { %230 = vmatpush1.msra.mxu1 %v95_v28  ;;  %2219 = vmatprep.subr.bf16.mxu0 %v2504_v5  ;;  %v2257_v28 = vpack.c.bf16 %v713_v26, %v688_v25  ;;  %v716_v60 = vld [vmem:[%s3615_s10 + $0x590] sm:$0xff]  ;;  %v545_v4 = vld [vmem:[%s3615_s10 + $0x38] sm:$0xff]  ;;  %v570_v7 = vld [vmem:[%s3615_s10 + $0x100] sm:$0xff] }
  0x27   :  { %262 = vmatmul.mubr.f32.vlgmr.msra.gmra.mrb[0].mxu1 %v118_v1  ;;  %2228 = vmatprep.subr.bf16.mxu1 %v2504_v5  ;;  %v564_v1 = vld [vmem:[%s3615_s10 + $0xd0] sm:$0xff]  ;;  %v542_v10 = vld [vmem:[%s3615_s10 + $0x20] sm:$0xff]  ;;  %v567_v11 = vld [vmem:[%s3615_s10 + $0xe8] sm:$0xff] }
  0x28   :  { %2230 = vmatpush3.bf16.msra.mxu1 %v2229_v29  ;;  %2129 = vmatprep.mubr.msk.f32.mxu1 %vm2507_vm1, %v2506_v27  ;;  %v2243_v3 = vpack.c.bf16 %v564_v1, %v539_v0  ;;  %v2006_v29 = vld [vmem:[%s3610_s5] ss:$0 sm:$0xff]  ;;  %v715_v0 = vld [vmem:[%s3615_s10 + $0x588] sm:$0xff]  ;;  %v569_v13 = vld [vmem:[%s3615_s10 + $0xf8] sm:$0xff]  ;;  %v2277_v19 = vpack.c.bf16 %v567_v11, %v542_v10 }
  0x29   :  { %2231 = vmatprep.subr.bf16.mxu1 %v2504_v5  ;;  %2221 = vmatpush3.bf16.msra.mxu0 %v2220_v33  ;;  %v593_v14 = vld [vmem:[%s3615_s10 + $0x1b8] sm:$0xff]  ;;  %v595_v16 = vld [vmem:[%s3615_s10 + $0x1c8] sm:$0xff]  ;;  %v620_v17 = vld [vmem:[%s3615_s10 + $0x290] sm:$0xff] }
  0x2a   :  { %2222 = vmatprep.subr.bf16.mxu0 %v2504_v5  ;;  %v617_v22 = vld [vmem:[%s3615_s10 + $0x278] sm:$0xff]  ;;  %v2295_v26 = vpack.c.bf16 %v620_v17, %v595_v16  ;;  %v596_v11 = vld [vmem:[%s3615_s10 + $0x1d0] sm:$0xff]  ;;  %v623_v16 = vld [vmem:[%s3615_s10 + $0x2a8] sm:$0xff] }
  0x2b   :  { %v647_v17 = vld [vmem:[%s3615_s10 + $0x368] sm:$0xff] }
  0x2c   :  { %2233 = vmatpush3.bf16.msra.mxu1 %v2232_v36 }
  0x2d   :  { %2234 = vmatprep.subr.bf16.mxu1 %v2504_v5  ;;  %2224 = vmatpush3.bf16.msra.mxu0 %v2223_v40  ;;  %v447_v40 = vld [vmem:[%s3606_s1] sm:$0x3] }
  0x2e   :  { %2225 = vmatprep.subr.bf16.mxu0 %v2504_v5 }
  0x30   :  { %2236 = vmatpush3.bf16.msra.mxu1 %v2235_v42  ;;  %v565_v42 = vld [vmem:[%s3615_s10 + $0xd8] sm:$0xff] }
  0x31   :  { %2237 = vmatprep.subr.bf16.mxu1 %v2504_v5  ;;  %2227 = vmatpush3.bf16.msra.mxu0 %v2226_v47  ;;  %v2261_v48 = vpack.c.bf16 %v565_v42, %v540_v41  ;;  %v644_v41 = vld [vmem:[%s3615_s10 + $0x350] sm:$0xff]  ;;  %v669_v42 = vld [vmem:[%s3615_s10 + $0x418] sm:$0xff] }
  0x32   :  { %2240 = vmatprep.subr.bf16.mxu0 %v2504_v5 }
  0x34   :  { %2239 = vmatpush3.bf16.msra.mxu1 %v2238_v49 }
  0x35   :  { %2244 = vmatprep.subr.bf16.mxu1 %v2243_v3  ;;  %v568_v3 = vld [vmem:[%s3615_s10 + $0xf0] sm:$0xff] }
  0x36   :  { %v2275_v6 = vpack.c.bf16 %v568_v3, %v543_v2  ;;  %v548_v2 = vld [vmem:[%s3615_s10 + $0x50] sm:$0xff]  ;;  %v573_v3 = vld [vmem:[%s3615_s10 + $0x118] sm:$0xff] }
  0x37   :  { %v2325_v10 = vpack.c.bf16 %v573_v3, %v548_v2  ;;  %v602_v3 = vld [vmem:[%s3615_s10 + $0x200] sm:$0xff] }
  0xf7   :  { %v2060_v50 = vpop.f32.mrb[0].mxu0 }
  0xf8   :  { %v2061_v51 = vpop.f32.mrb[1].mxu0 }
  0xf9   :  { %v2062_v53 = vadd.f32 %v2061_v51, %v2060_v50  ;;  %v2263_v50 = vpack.c.bf16 %v616_v45, %v591_v44  ;;  %v590_v51 = vld [vmem:[%s3615_s10 + $0x1a0] sm:$0xff]  ;;  %v695_v45 = vld [vmem:[%s3615_s10 + $0x4e8] sm:$0xff] }
  0xfa   :  { %v263_v54 = vpop.f32.mrb[0].mxu1  ;;  %v718_v44 = vld [vmem:[%s3615_s10 + $0x5a0] sm:$0xff] }
  0xfb   :  { %v265_v55 = vpop.f32.mrb[1].mxu1  ;;  %v194_v56 = vadd.f32 %v2062_v53, %v2004_v52  ;;  %v615_v52 = vld [vmem:[%s3615_s10 + $0x268] sm:$0xff]  ;;  %v641_v53 = vld [vmem:[%s3615_s10 + $0x338] sm:$0xff] }
  0xfc   :  { %v2265_v55 = vpack.c.bf16 %v615_v52, %v590_v51  ;;  %v717_v51 = vld [vmem:[%s3615_s10 + $0x598] sm:$0xff] }
  0xfd   :  { %v264_v57 = vadd.f32 %v263_v54, %v194_v56  ;;  %v666_v54 = vld [vmem:[%s3615_s10 + $0x400] sm:$0xff] }
  0xfe   :  { %v2267_v56 = vpack.c.bf16 %v666_v54, %v641_v53  ;;  %v694_v54 = vld [vmem:[%s3615_s10 + $0x4e0] sm:$0xff] }
  0xff   :  { %vm267_vm2 = vcmp.gt.f32.partialorder %v264_v57, 0.0  ;;  %v268_v58 = vmul.f32 0.2, %v264_v57 }
 0x101   :  { %v269_v59 = vsel %vm267_vm2, %v264_v57, %v268_v58  ;;  %v640_v57 = vld [vmem:[%s3615_s10 + $0x330] sm:$0xff]  ;;  %v665_v58 = vld [vmem:[%s3615_s10 + $0x3f8] sm:$0xff] }
 0x102   :  { %2111 = vmatmul.mubr.msk.f32.vlgmr.msra.gmra.mrb[2].mxu0 %vm285_vm3, %v269_v59  ;;  %2130 = vmatmul.mubr.msk.f32.vlgmr.msra.gmra.mrb[2].mxu1 %vm285_vm3, %v269_v59  ;;  %v691_v59 = vld [vmem:[%s3615_s10 + $0x4c8] sm:$0xff]  ;;  %v2269_v61 = vpack.c.bf16 %v665_v58, %v640_v57  ;;  %v572_v57 = vld [vmem:[%s3615_s10 + $0x110] sm:$0xff]  ;;  %v549_v58 = vld [vmem:[%s3615_s10 + $0x58] sm:$0xff] }
 0x103   :  { %2138 = vmatprep.mubr.msk.f32.mxu0 %vm2507_vm1, %v2506_v27  ;;  %938 = vmatprep.mubr.f32.mxu1 %v2506_v27 }
 0x104   :  { %2242 = vmatpush3.bf16.msra.mxu0 %v2241_v62  ;;  %2246 = vmatpush1.bf16.msra.mxu1 %v2245_v9  ;;  %v2271_v62 = vpack.c.bf16 %v716_v60, %v691_v59  ;;  %v2010_v9 = vld [vmem:[%s3614_s9] ss:$0 sm:$0xff] }
 0x105   :  { %2136 = vmatprep.subr.mxu0 %v2506_v27  ;;  %2248 = vmatprep.subr.bf16.mxu1 %v2247_v12  ;;  %v544_v12 = vld [vmem:[%s3615_s10 + $0x30] sm:$0xff]  ;;  %v574_v59 = vld [vmem:[%s3615_s10 + $0x120] sm:$0xff] }
 0x106   :  { %v2293_v20 = vpack.c.bf16 %v569_v13, %v544_v12  ;;  %v621_v12 = vld [vmem:[%s3615_s10 + $0x298] sm:$0xff] }
 0x108   :  { %2137 = vmatpush3.msk.msra.mxu0 %vm464_vm4, %v452_v63  ;;  %2250 = vmatpush1.bf16.msra.mxu1 %v2249_v15  ;;  %v690_v63 = vld [vmem:[%s3615_s10 + $0x4c0] sm:$0xff] }
 0x109   :  { %2260 = vmatprep.subr.bf16.mxu0 %v2259_v8  ;;  %2252 = vmatprep.subr.bf16.mxu1 %v2251_v18  ;;  %v2273_v1 = vpack.c.bf16 %v715_v0, %v690_v63  ;;  %v2291_v8 = vpack.c.bf16 %v570_v7, %v545_v4  ;;  %v618_v15 = vld [vmem:[%s3615_s10 + $0x280] sm:$0xff]  ;;  %v571_v63 = vld [vmem:[%s3615_s10 + $0x108] sm:$0xff]  ;;  %v597_v4 = vld [vmem:[%s3615_s10 + $0x1d8] sm:$0xff] }
 0x10a   :  { %v2279_v25 = vpack.c.bf16 %v618_v15, %v593_v14  ;;  %v599_v7 = vld [vmem:[%s3615_s10 + $0x1e8] sm:$0xff]  ;;  %v598_v15 = vld [vmem:[%s3615_s10 + $0x1e0] sm:$0xff] }
 0x10c   :  { %2254 = vmatpush1.bf16.msra.mxu1 %v2253_v21  ;;  %v592_v21 = vld [vmem:[%s3615_s10 + $0x1b0] sm:$0xff] }
 0x10d   :  { %2256 = vmatprep.subr.bf16.mxu1 %v2255_v24 }
 0x110   :  { %2258 = vmatpush1.bf16.msra.mxu1 %v2257_v28  ;;  %v594_v28 = vld [vmem:[%s3615_s10 + $0x1c0] sm:$0xff] }
 0x111   :  { %2276 = vmatprep.subr.bf16.mxu1 %v2275_v6  ;;  %v622_v6 = vld [vmem:[%s3615_s10 + $0x2a0] sm:$0xff] }
 0x112   :  { %v2311_v13 = vpack.c.bf16 %v622_v6, %v597_v4  ;;  %v627_v4 = vld [vmem:[%s3615_s10 + $0x2c8] sm:$0xff] }
 0x113   :  { %v651_v6 = vld [vmem:[%s3615_s10 + $0x388] sm:$0xff] }
 0x1d5   :  { %v355_v31 = vpop.f32.mrb[2].mxu0  ;;  %v440_v32 = vpop.f32.mrb[2].mxu1 }
 0x1d6   :  { %v356_v33 = vadd.f32 %v2006_v29, %v355_v31  ;;  %v441_v34 = vadd.f32 %v2008_v30, %v440_v32  ;;  %v2112_v36 = vpop.f32.mrb[3].mxu0  ;;  %v2131_v37 = vpop.f32.mrb[3].mxu1  ;;  %v619_v29 = vld [vmem:[%s3615_s10 + $0x288] sm:$0xff]  ;;  %v668_v31 = vld [vmem:[%s3615_s10 + $0x410] sm:$0xff]  ;;  %v645_v32 = vld [vmem:[%s3615_s10 + $0x358] sm:$0xff] }
 0x1d7   :  { %v643_v30 = vld [vmem:[%s3615_s10 + $0x348] sm:$0xff]  ;;  %v2297_v36 = vpack.c.bf16 %v619_v29, %v594_v28  ;;  %v642_v37 = vld [vmem:[%s3615_s10 + $0x340] sm:$0xff]  ;;  %v648_v29 = vld [vmem:[%s3615_s10 + $0x370] sm:$0xff] }
 0x1d8   :  { %v444_v38 = vmul.f32 0.5, %v441_v34  ;;  %1797 = vst.msk [vmem:[#allocation2] sm:$0x3] %vm1796_vm5, %v356_v33  ;;  %1798 = vst.msk [vmem:[#allocation4] sm:$0x3] %vm1796_vm5, %v441_v34  ;;  %v2281_v34 = vpack.c.bf16 %v617_v22, %v592_v21  ;;  %v2313_v21 = vpack.c.bf16 %v621_v12, %v596_v11  ;;  %v2329_v22 = vpack.c.bf16 %v623_v16, %v598_v15  ;;  %v650_v12 = vld [vmem:[%s3615_s10 + $0x380] sm:$0xff] }
 0x1d9   :  { %v2361_v11 = vpack.c.bf16 %v627_v4, %v602_v3  ;;  %v652_v16 = vld [vmem:[%s3615_s10 + $0x390] sm:$0xff] }
 0x1da   :  { %v445_v39 = vmul.f32 1.442695, %v444_v38  ;;  %v667_v38 = vld [vmem:[%s3615_s10 + $0x408] sm:$0xff]  ;;  %v656_v4 = vld [vmem:[%s3615_s10 + $0x3b0] sm:$0xff] }
 0x1dc   :  { %2454 = vpow2.f32 %v445_v39  ;;  %v2283_v39 = vpack.c.bf16 %v668_v31, %v643_v30  ;;  %v673_v30 = vld [vmem:[%s3615_s10 + $0x438] sm:$0xff] }
 0x1dd   :  { %v697_v31 = vld [vmem:[%s3615_s10 + $0x4f8] sm:$0xff] }
 0x1e6   :  { %v2455_v43 = vpop.eup %2454 }
 0x1e7   :  { %v448_v47 = vmul.f32 %v2455_v43, %v447_v40  ;;  %v693_v43 = vld [vmem:[%s3615_s10 + $0x4d8] sm:$0xff] }
 0x1e8   :  { %v2287_v52 = vpack.c.bf16 %v718_v44, %v693_v43  ;;  %v723_v43 = vld [vmem:[%s3615_s10 + $0x5c8] sm:$0xff] }
 0x1e9   :  { %v449_v49 = vadd.f32 %v448_v47, %v356_v33  ;;  %v670_v33 = vld [vmem:[%s3615_s10 + $0x420] sm:$0xff]  ;;  %v720_v47 = vld [vmem:[%s3615_s10 + $0x5b0] sm:$0xff]  ;;  %v551_v44 = vld [vmem:[%s3615_s10 + $0x68] sm:$0xff] }
 0x1ea   :  { %v2299_v40 = vpack.c.bf16 %v670_v33, %v645_v32  ;;  %v2303_v53 = vpack.c.bf16 %v720_v47, %v695_v45  ;;  %v722_v32 = vld [vmem:[%s3615_s10 + $0x5c0] sm:$0xff]  ;;  %v699_v33 = vld [vmem:[%s3615_s10 + $0x508] sm:$0xff]  ;;  %v576_v45 = vld [vmem:[%s3615_s10 + $0x130] sm:$0xff] }
 0x1eb   :  { %2139 = vmatmul.mubr.msk.f32.vlgmr.msra.gmra.mrb[4].mxu0 %vm460_vm6, %v449_v49  ;;  %v2301_v49 = vpack.c.bf16 %v669_v42, %v644_v41  ;;  %v698_v42 = vld [vmem:[%s3615_s10 + $0x500] sm:$0xff]  ;;  %v553_v47 = vld [vmem:[%s3615_s10 + $0x78] sm:$0xff] }
 0x1ec   :  { %2262 = vmatpush1.bf16.msra.mxu0 %v2261_v48  ;;  %1009 = vmatprep.mubr.f32.mxu0 %v2506_v27  ;;  %v2285_v48 = vpack.c.bf16 %v667_v38, %v642_v37  ;;  %v2333_v37 = vpack.c.bf16 %v673_v30, %v648_v29  ;;  %v696_v38 = vld [vmem:[%s3615_s10 + $0x4f0] sm:$0xff]  ;;  %v702_v30 = vld [vmem:[%s3615_s10 + $0x520] sm:$0xff] }
 0x1ed   :  { %2264 = vmatprep.subr.bf16.mxu0 %v2263_v50  ;;  %v692_v50 = vld [vmem:[%s3615_s10 + $0x4d0] sm:$0xff] }
 0x1ee   :  { %v2289_v60 = vpack.c.bf16 %v717_v51, %v692_v50  ;;  %v2337_v50 = vpack.c.bf16 %v723_v43, %v698_v42  ;;  %v550_v51 = vld [vmem:[%s3615_s10 + $0x60] sm:$0xff]  ;;  %v556_v43 = vld [vmem:[%s3615_s10 + $0x90] sm:$0xff] }
 0x1f0   :  { %2266 = vmatpush1.bf16.msra.mxu0 %v2265_v55  ;;  %v719_v55 = vld [vmem:[%s3615_s10 + $0x5a8] sm:$0xff] }
 0x1f1   :  { %2268 = vmatprep.subr.bf16.mxu0 %v2267_v56  ;;  %v547_v56 = vld [vmem:[%s3615_s10 + $0x48] sm:$0xff] }
 0x1f2   :  { %v2307_v0 = vpack.c.bf16 %v572_v57, %v547_v56  ;;  %v577_v56 = vld [vmem:[%s3615_s10 + $0x138] sm:$0xff] }
 0x1f3   :  { %v601_v57 = vld [vmem:[%s3615_s10 + $0x1f8] sm:$0xff] }
 0x1f4   :  { %2270 = vmatpush1.bf16.msra.mxu0 %v2269_v61  ;;  %v2305_v61 = vpack.c.bf16 %v719_v55, %v694_v54  ;;  %v552_v55 = vld [vmem:[%s3615_s10 + $0x70] sm:$0xff] }
 0x1f5   :  { %2272 = vmatprep.subr.bf16.mxu0 %v2271_v62  ;;  %v546_v62 = vld [vmem:[%s3615_s10 + $0x40] sm:$0xff] }
 0x1f8   :  { %2274 = vmatpush1.bf16.msra.mxu0 %v2273_v1  ;;  %v2323_v1 = vpack.c.bf16 %v574_v59, %v549_v58  ;;  %v626_v58 = vld [vmem:[%s3615_s10 + $0x2c0] sm:$0xff]  ;;  %v603_v59 = vld [vmem:[%s3615_s10 + $0x208] sm:$0xff] }
 0x1f9   :  { %2292 = vmatprep.subr.bf16.mxu0 %v2291_v8  ;;  %v624_v8 = vld [vmem:[%s3615_s10 + $0x2b0] sm:$0xff] }
 0x1fa   :  { %v2327_v14 = vpack.c.bf16 %v624_v8, %v599_v7  ;;  %v676_v7 = vld [vmem:[%s3615_s10 + $0x450] sm:$0xff]  ;;  %v653_v8 = vld [vmem:[%s3615_s10 + $0x398] sm:$0xff] }
 0x2be   :  { %v534_v18 = vpop.f32.mrb[4].mxu0 }
 0x2bf   :  { %v2982_v23 = vadd.f32 %v2010_v9, %v534_v18  ;;  %v2140_v24 = vpop.f32.mrb[5].mxu0  ;;  %v2309_v9 = vpack.c.bf16 %v571_v63, %v546_v62  ;;  %v672_v18 = vld [vmem:[%s3615_s10 + $0x430] sm:$0xff]  ;;  %v2357_v62 = vpack.c.bf16 %v577_v56, %v552_v55  ;;  %v606_v56 = vld [vmem:[%s3615_s10 + $0x220] sm:$0xff] }
 0x2c0   :  { %v646_v24 = vld [vmem:[%s3615_s10 + $0x360] sm:$0xff]  ;;  %v600_v63 = vld [vmem:[%s3615_s10 + $0x1f0] sm:$0xff] }
 0x2c1   :  { %2014 = vmatmul.mubr.msk.f32.vlgmr.msra.gmra.mrb[4].mxu1 %vm285_vm3, %v2982_v23  ;;  %2015 = vmatmul.mubr.msk.f32.vlgmr.msra.gmra.mrb[6].mxu0 %vm285_vm3, %v2982_v23 }
 0x2c2   :  { %2278 = vmatpush1.bf16.msra.mxu1 %v2277_v19  ;;  %2294 = vmatpush1.bf16.msra.mxu0 %v2293_v20  ;;  %v649_v19 = vld [vmem:[%s3615_s10 + $0x378] sm:$0xff]  ;;  %v674_v20 = vld [vmem:[%s3615_s10 + $0x440] sm:$0xff] }
 0x2c3   :  { %2280 = vmatprep.subr.bf16.mxu1 %v2279_v25  ;;  %2296 = vmatprep.subr.bf16.mxu0 %v2295_v26  ;;  %v671_v25 = vld [vmem:[%s3615_s10 + $0x428] sm:$0xff]  ;;  %v2315_v26 = vpack.c.bf16 %v672_v18, %v647_v17  ;;  %v2331_v28 = vpack.c.bf16 %v674_v20, %v649_v19  ;;  %v677_v17 = vld [vmem:[%s3615_s10 + $0x458] sm:$0xff]  ;;  %v726_v19 = vld [vmem:[%s3615_s10 + $0x5e0] sm:$0xff] }
 0x2c4   :  { %1080 = vmatprep.mubr.f32.mxu1 %v2506_v27  ;;  %1151 = vmatprep.mubr.f32.mxu0 %v2506_v27  ;;  %v701_v18 = vld [vmem:[%s3615_s10 + $0x518] sm:$0xff]  ;;  %v703_v20 = vld [vmem:[%s3615_s10 + $0x528] sm:$0xff] }
 0x2c6   :  { %2282 = vmatpush1.bf16.msra.mxu1 %v2281_v34  ;;  %2298 = vmatpush1.bf16.msra.mxu0 %v2297_v36  ;;  %v724_v34 = vld [vmem:[%s3615_s10 + $0x5d0] sm:$0xff]  ;;  %v2317_v36 = vpack.c.bf16 %v671_v25, %v646_v24  ;;  %v2365_v24 = vpack.c.bf16 %v677_v17, %v652_v16  ;;  %v706_v17 = vld [vmem:[%s3615_s10 + $0x540] sm:$0xff] }
 0x2c7   :  { %2284 = vmatprep.subr.bf16.mxu1 %v2283_v39  ;;  %2300 = vmatprep.subr.bf16.mxu0 %v2299_v40  ;;  %v721_v39 = vld [vmem:[%s3615_s10 + $0x5b8] sm:$0xff]  ;;  %v2319_v40 = vpack.c.bf16 %v722_v32, %v697_v31  ;;  %v2335_v41 = vpack.c.bf16 %v724_v34, %v699_v33  ;;  %v700_v25 = vld [vmem:[%s3615_s10 + $0x510] sm:$0xff]  ;;  %v727_v31 = vld [vmem:[%s3615_s10 + $0x5e8] sm:$0xff] }
 0x2c8   :  { %v555_v32 = vld [vmem:[%s3615_s10 + $0x88] sm:$0xff]  ;;  %v580_v33 = vld [vmem:[%s3615_s10 + $0x150] sm:$0xff]  ;;  %v557_v34 = vld [vmem:[%s3615_s10 + $0x98] sm:$0xff] }
 0x2ca   :  { %2286 = vmatpush1.bf16.msra.mxu1 %v2285_v48  ;;  %2302 = vmatpush1.bf16.msra.mxu0 %v2301_v49  ;;  %v578_v48 = vld [vmem:[%s3615_s10 + $0x140] sm:$0xff]  ;;  %v2321_v49 = vpack.c.bf16 %v721_v39, %v696_v38  ;;  %v2369_v38 = vpack.c.bf16 %v727_v31, %v702_v30  ;;  %v560_v31 = vld [vmem:[%s3615_s10 + $0xb0] sm:$0xff] }
 0x2cb   :  { %2288 = vmatprep.subr.bf16.mxu1 %v2287_v52  ;;  %2304 = vmatprep.subr.bf16.mxu0 %v2303_v53  ;;  %v575_v52 = vld [vmem:[%s3615_s10 + $0x128] sm:$0xff]  ;;  %v2339_v53 = vpack.c.bf16 %v576_v45, %v551_v44  ;;  %v2355_v54 = vpack.c.bf16 %v578_v48, %v553_v47  ;;  %v554_v39 = vld [vmem:[%s3615_s10 + $0x80] sm:$0xff]  ;;  %v581_v44 = vld [vmem:[%s3615_s10 + $0x158] sm:$0xff] }
 0x2cc   :  { %v605_v45 = vld [vmem:[%s3615_s10 + $0x218] sm:$0xff]  ;;  %v630_v47 = vld [vmem:[%s3615_s10 + $0x2e0] sm:$0xff]  ;;  %v607_v48 = vld [vmem:[%s3615_s10 + $0x228] sm:$0xff] }
 0x2ce   :  { %2290 = vmatpush1.bf16.msra.mxu1 %v2289_v60  ;;  %2306 = vmatpush1.bf16.msra.mxu0 %v2305_v61  ;;  %v628_v60 = vld [vmem:[%s3615_s10 + $0x2d0] sm:$0xff]  ;;  %v2341_v61 = vpack.c.bf16 %v575_v52, %v550_v51  ;;  %v2389_v51 = vpack.c.bf16 %v581_v44, %v556_v43  ;;  %v610_v44 = vld [vmem:[%s3615_s10 + $0x240] sm:$0xff] }
 0x2cf   :  { %2308 = vmatprep.subr.bf16.mxu1 %v2307_v0  ;;  %2324 = vmatprep.subr.bf16.mxu0 %v2323_v1  ;;  %v625_v0 = vld [vmem:[%s3615_s10 + $0x2b8] sm:$0xff]  ;;  %v2343_v1 = vpack.c.bf16 %v626_v58, %v601_v57  ;;  %v2359_v2 = vpack.c.bf16 %v628_v60, %v603_v59  ;;  %v604_v52 = vld [vmem:[%s3615_s10 + $0x210] sm:$0xff]  ;;  %v631_v57 = vld [vmem:[%s3615_s10 + $0x2e8] sm:$0xff] }
 0x2d0   :  { %v655_v58 = vld [vmem:[%s3615_s10 + $0x3a8] sm:$0xff]  ;;  %v680_v59 = vld [vmem:[%s3615_s10 + $0x470] sm:$0xff]  ;;  %v657_v60 = vld [vmem:[%s3615_s10 + $0x3b8] sm:$0xff] }
 0x2d1   :  { %2016 = vmatmul.mubr.msk.f32.vlgmr.msra.gmra.mrb[6].mxu1 %vm285_vm3, %v2982_v23  ;;  %2017 = vmatmul.mubr.msk.f32.vlgmr.msra.gmra.mrb[8].mxu0 %vm285_vm3, %v2982_v23 }
 0x2d2   :  { %2310 = vmatpush1.bf16.msra.mxu1 %v2309_v9  ;;  %2326 = vmatpush1.bf16.msra.mxu0 %v2325_v10  ;;  %v678_v9 = vld [vmem:[%s3615_s10 + $0x460] sm:$0xff]  ;;  %v2345_v10 = vpack.c.bf16 %v625_v0, %v600_v63  ;;  %v2393_v63 = vpack.c.bf16 %v631_v57, %v606_v56  ;;  %v660_v57 = vld [vmem:[%s3615_s10 + $0x3d0] sm:$0xff] }
 0x2d3   :  { %2312 = vmatprep.subr.bf16.mxu1 %v2311_v13  ;;  %2328 = vmatprep.subr.bf16.mxu0 %v2327_v14  ;;  %v675_v13 = vld [vmem:[%s3615_s10 + $0x448] sm:$0xff]  ;;  %v2347_v14 = vpack.c.bf16 %v676_v7, %v651_v6  ;;  %v2363_v15 = vpack.c.bf16 %v678_v9, %v653_v8  ;;  %v654_v0 = vld [vmem:[%s3615_s10 + $0x3a0] sm:$0xff]  ;;  %v681_v6 = vld [vmem:[%s3615_s10 + $0x478] sm:$0xff] }
 0x2d4   :  { %1222 = vmatprep.mubr.f32.mxu1 %v2506_v27  ;;  %1293 = vmatprep.mubr.f32.mxu0 %v2506_v27  ;;  %v705_v7 = vld [vmem:[%s3615_s10 + $0x538] sm:$0xff]  ;;  %v730_v8 = vld [vmem:[%s3615_s10 + $0x600] sm:$0xff]  ;;  %v707_v9 = vld [vmem:[%s3615_s10 + $0x548] sm:$0xff] }
 0x2d6   :  { %2314 = vmatpush1.bf16.msra.mxu1 %v2313_v21  ;;  %2330 = vmatpush1.bf16.msra.mxu0 %v2329_v22  ;;  %v728_v21 = vld [vmem:[%s3615_s10 + $0x5f0] sm:$0xff]  ;;  %v2349_v22 = vpack.c.bf16 %v675_v13, %v650_v12  ;;  %v2397_v12 = vpack.c.bf16 %v681_v6, %v656_v4  ;;  %v733_v4 = vld [vmem:[%s3615_s10 + $0x618] sm:$0xff]  ;;  %v710_v6 = vld [vmem:[%s3615_s10 + $0x560] sm:$0xff] }
 0x2d7   :  { %2316 = vmatprep.subr.bf16.mxu1 %v2315_v26  ;;  %2332 = vmatprep.subr.bf16.mxu0 %v2331_v28  ;;  %v725_v26 = vld [vmem:[%s3615_s10 + $0x5d8] sm:$0xff]  ;;  %v2351_v28 = vpack.c.bf16 %v726_v19, %v701_v18  ;;  %v2367_v29 = vpack.c.bf16 %v728_v21, %v703_v20  ;;  %v704_v13 = vld [vmem:[%s3615_s10 + $0x530] sm:$0xff]  ;;  %v731_v18 = vld [vmem:[%s3615_s10 + $0x608] sm:$0xff] }
 0x2d8   :  { %v559_v19 = vld [vmem:[%s3615_s10 + $0xa8] sm:$0xff]  ;;  %v584_v20 = vld [vmem:[%s3615_s10 + $0x170] sm:$0xff]  ;;  %v561_v21 = vld [vmem:[%s3615_s10 + $0xb8] sm:$0xff] }
 0x2da   :  { %2318 = vmatpush1.bf16.msra.mxu1 %v2317_v36  ;;  %2334 = vmatpush1.bf16.msra.mxu0 %v2333_v37  ;;  %v582_v36 = vld [vmem:[%s3615_s10 + $0x160] sm:$0xff]  ;;  %v2353_v37 = vpack.c.bf16 %v725_v26, %v700_v25  ;;  %v2401_v25 = vpack.c.bf16 %v731_v18, %v706_v17  ;;  %v687_v17 = vld [vmem:[%s3615_s10 + $0x4a8] sm:$0xff] }
 0x2db   :  { %2320 = vmatprep.subr.bf16.mxu1 %v2319_v40  ;;  %2336 = vmatprep.subr.bf16.mxu0 %v2335_v41  ;;  %v579_v40 = vld [vmem:[%s3615_s10 + $0x148] sm:$0xff]  ;;  %v2371_v41 = vpack.c.bf16 %v580_v33, %v555_v32  ;;  %v2387_v42 = vpack.c.bf16 %v582_v36, %v557_v34  ;;  %v558_v26 = vld [vmem:[%s3615_s10 + $0xa0] sm:$0xff]  ;;  %v585_v32 = vld [vmem:[%s3615_s10 + $0x178] sm:$0xff] }
 0x2dc   :  { %v609_v33 = vld [vmem:[%s3615_s10 + $0x238] sm:$0xff]  ;;  %v634_v34 = vld [vmem:[%s3615_s10 + $0x300] sm:$0xff]  ;;  %v611_v36 = vld [vmem:[%s3615_s10 + $0x248] sm:$0xff] }
 0x2de   :  { %2322 = vmatpush1.bf16.msra.mxu1 %v2321_v49  ;;  %2338 = vmatpush1.bf16.msra.mxu0 %v2337_v50  ;;  %v632_v49 = vld [vmem:[%s3615_s10 + $0x2f0] sm:$0xff]  ;;  %v2373_v50 = vpack.c.bf16 %v579_v40, %v554_v39  ;;  %v2421_v39 = vpack.c.bf16 %v585_v32, %v560_v31 }
 0x2df   :  { %2340 = vmatprep.subr.bf16.mxu1 %v2339_v53  ;;  %2356 = vmatprep.subr.bf16.mxu0 %v2355_v54  ;;  %v629_v53 = vld [vmem:[%s3615_s10 + $0x2d8] sm:$0xff]  ;;  %v2375_v54 = vpack.c.bf16 %v630_v47, %v605_v45  ;;  %v2391_v55 = vpack.c.bf16 %v632_v49, %v607_v48  ;;  %v608_v40 = vld [vmem:[%s3615_s10 + $0x230] sm:$0xff]  ;;  %v635_v45 = vld [vmem:[%s3615_s10 + $0x308] sm:$0xff] }
 0x2e0   :  { %v659_v47 = vld [vmem:[%s3615_s10 + $0x3c8] sm:$0xff]  ;;  %v684_v48 = vld [vmem:[%s3615_s10 + $0x490] sm:$0xff]  ;;  %v661_v49 = vld [vmem:[%s3615_s10 + $0x3d8] sm:$0xff] }
 0x2e1   :  { %2018 = vmatmul.mubr.msk.f32.vlgmr.msra.gmra.mrb[8].mxu1 %vm285_vm3, %v2982_v23  ;;  %2019 = vmatmul.mubr.msk.f32.vlgmr.msra.gmra.mrb[10].mxu0 %vm285_vm3, %v2982_v23 }
 0x2e2   :  { %2342 = vmatpush1.bf16.msra.mxu1 %v2341_v61  ;;  %2358 = vmatpush1.bf16.msra.mxu0 %v2357_v62  ;;  %v682_v61 = vld [vmem:[%s3615_s10 + $0x480] sm:$0xff]  ;;  %v2377_v62 = vpack.c.bf16 %v629_v53, %v604_v52  ;;  %v2425_v52 = vpack.c.bf16 %v635_v45, %v610_v44 }
 0x2e3   :  { %2344 = vmatprep.subr.bf16.mxu1 %v2343_v1  ;;  %2360 = vmatprep.subr.bf16.mxu0 %v2359_v2  ;;  %v679_v1 = vld [vmem:[%s3615_s10 + $0x468] sm:$0xff]  ;;  %v2379_v2 = vpack.c.bf16 %v680_v59, %v655_v58  ;;  %v2395_v3 = vpack.c.bf16 %v682_v61, %v657_v60  ;;  %v658_v53 = vld [vmem:[%s3615_s10 + $0x3c0] sm:$0xff]  ;;  %v685_v58 = vld [vmem:[%s3615_s10 + $0x498] sm:$0xff] }
 0x2e4   :  { %1364 = vmatprep.mubr.f32.mxu1 %v2506_v27  ;;  %1435 = vmatprep.mubr.f32.mxu0 %v2506_v27  ;;  %v709_v59 = vld [vmem:[%s3615_s10 + $0x558] sm:$0xff]  ;;  %v734_v60 = vld [vmem:[%s3615_s10 + $0x620] sm:$0xff]  ;;  %v711_v61 = vld [vmem:[%s3615_s10 + $0x568] sm:$0xff] }
 0x2e6   :  { %2346 = vmatpush1.bf16.msra.mxu1 %v2345_v10  ;;  %2362 = vmatpush1.bf16.msra.mxu0 %v2361_v11  ;;  %v732_v10 = vld [vmem:[%s3615_s10 + $0x610] sm:$0xff]  ;;  %v2381_v11 = vpack.c.bf16 %v679_v1, %v654_v0  ;;  %v2429_v0 = vpack.c.bf16 %v685_v58, %v660_v57 }
 0x2e7   :  { %2348 = vmatprep.subr.bf16.mxu1 %v2347_v14  ;;  %2364 = vmatprep.subr.bf16.mxu0 %v2363_v15  ;;  %v729_v14 = vld [vmem:[%s3615_s10 + $0x5f8] sm:$0xff]  ;;  %v2383_v15 = vpack.c.bf16 %v730_v8, %v705_v7  ;;  %v2399_v16 = vpack.c.bf16 %v732_v10, %v707_v9  ;;  %v708_v1 = vld [vmem:[%s3615_s10 + $0x550] sm:$0xff]  ;;  %v735_v7 = vld [vmem:[%s3615_s10 + $0x628] sm:$0xff] }
 0x2e8   :  { %v2417_v8 = vpack.c.bf16 %v733_v4, %v708_v1  ;;  %v2433_v9 = vpack.c.bf16 %v735_v7, %v710_v6  ;;  %v562_v10 = vld [vmem:[%s3615_s10 + $0xc0] sm:$0xff] }
 0x2ea   :  { %2350 = vmatpush1.bf16.msra.mxu1 %v2349_v22  ;;  %2366 = vmatpush1.bf16.msra.mxu0 %v2365_v24  ;;  %v586_v22 = vld [vmem:[%s3615_s10 + $0x180] sm:$0xff]  ;;  %v2385_v24 = vpack.c.bf16 %v729_v14, %v704_v13  ;;  %v612_v13 = vld [vmem:[%s3615_s10 + $0x250] sm:$0xff]  ;;  %v637_v14 = vld [vmem:[%s3615_s10 + $0x318] sm:$0xff] }
 0x2eb   :  { %2352 = vmatprep.subr.bf16.mxu1 %v2351_v28  ;;  %2368 = vmatprep.subr.bf16.mxu0 %v2367_v29  ;;  %v583_v28 = vld [vmem:[%s3615_s10 + $0x168] sm:$0xff]  ;;  %v2403_v29 = vpack.c.bf16 %v584_v20, %v559_v19  ;;  %v2419_v30 = vpack.c.bf16 %v586_v22, %v561_v21  ;;  %v712_v19 = vld [vmem:[%s3615_s10 + $0x570] sm:$0xff] }
 0x2ee   :  { %2354 = vmatpush1.bf16.msra.mxu1 %v2353_v37  ;;  %2370 = vmatpush1.bf16.msra.mxu0 %v2369_v38  ;;  %v636_v37 = vld [vmem:[%s3615_s10 + $0x310] sm:$0xff]  ;;  %v2405_v38 = vpack.c.bf16 %v583_v28, %v558_v26 }
 0x2ef   :  { %2372 = vmatprep.subr.bf16.mxu1 %v2371_v41  ;;  %2388 = vmatprep.subr.bf16.mxu0 %v2387_v42  ;;  %v633_v41 = vld [vmem:[%s3615_s10 + $0x2f8] sm:$0xff]  ;;  %v2407_v42 = vpack.c.bf16 %v634_v34, %v609_v33  ;;  %v2423_v43 = vpack.c.bf16 %v636_v37, %v611_v36 }
 0x2f1   :  { %2020 = vmatmul.mubr.msk.f32.vlgmr.msra.gmra.mrb[10].mxu1 %vm285_vm3, %v2982_v23  ;;  %2021 = vmatmul.mubr.msk.f32.vlgmr.msra.gmra.mrb[12].mxu0 %vm285_vm3, %v2982_v23 }
 0x2f2   :  { %2374 = vmatpush1.bf16.msra.mxu1 %v2373_v50  ;;  %2390 = vmatpush1.bf16.msra.mxu0 %v2389_v51  ;;  %v686_v50 = vld [vmem:[%s3615_s10 + $0x4a0] sm:$0xff]  ;;  %v2409_v51 = vpack.c.bf16 %v633_v41, %v608_v40 }
 0x2f3   :  { %2376 = vmatprep.subr.bf16.mxu1 %v2375_v54  ;;  %2392 = vmatprep.subr.bf16.mxu0 %v2391_v55  ;;  %v683_v54 = vld [vmem:[%s3615_s10 + $0x488] sm:$0xff]  ;;  %v2411_v55 = vpack.c.bf16 %v684_v48, %v659_v47  ;;  %v2427_v56 = vpack.c.bf16 %v686_v50, %v661_v49 }
 0x2f4   :  { %1506 = vmatprep.mubr.f32.mxu1 %v2506_v27  ;;  %1577 = vmatprep.mubr.f32.mxu0 %v2506_v27 }
 0x2f6   :  { %2378 = vmatpush1.bf16.msra.mxu1 %v2377_v62  ;;  %2394 = vmatpush1.bf16.msra.mxu0 %v2393_v63  ;;  %v736_v62 = vld [vmem:[%s3615_s10 + $0x630] sm:$0xff]  ;;  %v2413_v63 = vpack.c.bf16 %v683_v54, %v658_v53 }
 0x2f7   :  { %2380 = vmatprep.subr.bf16.mxu1 %v2379_v2  ;;  %2396 = vmatprep.subr.bf16.mxu0 %v2395_v3  ;;  %v2415_v2 = vpack.c.bf16 %v734_v60, %v709_v59  ;;  %v2431_v3 = vpack.c.bf16 %v736_v62, %v711_v61 }
 0x2fa   :  { %2382 = vmatpush1.bf16.msra.mxu1 %v2381_v11  ;;  %2398 = vmatpush1.bf16.msra.mxu0 %v2397_v12  ;;  %v587_v11 = vld [vmem:[%s3615_s10 + $0x188] sm:$0xff] }
 0x2fb   :  { %2384 = vmatprep.subr.bf16.mxu1 %v2383_v15  ;;  %2400 = vmatprep.subr.bf16.mxu0 %v2399_v16  ;;  %v2436_v12 = vpack.c.bf16 %v587_v11, %v562_v10  ;;  %v2439_v15 = vpack.c.bf16 %v637_v14, %v612_v13  ;;  %v662_v16 = vld [vmem:[%s3615_s10 + $0x3e0] sm:$0xff] }
 0x2fc   :  { %v2442_v18 = vpack.c.bf16 %v687_v17, %v662_v16 }
 0x2fe   :  { %2386 = vmatpush1.bf16.msra.mxu1 %v2385_v24  ;;  %2402 = vmatpush1.bf16.msra.mxu0 %v2401_v25 }
 0x2ff   :  { %2404 = vmatprep.subr.bf16.mxu1 %v2403_v29  ;;  %2420 = vmatprep.subr.bf16.mxu0 %v2419_v30 }
 0x301   :  { %2022 = vmatmul.mubr.msk.f32.vlgmr.msra.gmra.mrb[12].mxu1 %vm285_vm3, %v2982_v23  ;;  %2023 = vmatmul.mubr.msk.f32.vlgmr.msra.gmra.mrb[14].mxu0 %vm285_vm3, %v2982_v23 }
 0x302   :  { %2406 = vmatpush1.bf16.msra.mxu1 %v2405_v38  ;;  %2422 = vmatpush1.bf16.msra.mxu0 %v2421_v39 }
 0x303   :  { %2408 = vmatprep.subr.bf16.mxu1 %v2407_v42  ;;  %2424 = vmatprep.subr.bf16.mxu0 %v2423_v43 }
 0x304   :  { %1648 = vmatprep.mubr.f32.mxu1 %v2506_v27  ;;  %1719 = vmatprep.mubr.f32.mxu0 %v2506_v27 }
 0x306   :  { %2410 = vmatpush1.bf16.msra.mxu1 %v2409_v51  ;;  %2426 = vmatpush1.bf16.msra.mxu0 %v2425_v52 }
 0x307   :  { %2412 = vmatprep.subr.bf16.mxu1 %v2411_v55  ;;  %2428 = vmatprep.subr.bf16.mxu0 %v2427_v56 }
 0x30a   :  { %2414 = vmatpush1.bf16.msra.mxu1 %v2413_v63  ;;  %2430 = vmatpush1.bf16.msra.mxu0 %v2429_v0 }
 0x30b   :  { %2416 = vmatprep.subr.bf16.mxu1 %v2415_v2  ;;  %2432 = vmatprep.subr.bf16.mxu0 %v2431_v3 }
 0x30e   :  { %2418 = vmatpush1.bf16.msra.mxu1 %v2417_v8  ;;  %2434 = vmatpush1.bf16.msra.mxu0 %v2433_v9 }
 0x30f   :  { %2435 = vmatprep.subr.bf16.mxu1 %v2504_v5 }
 0x311   :  { %2024 = vmatmul.mubr.msk.f32.vlgmr.msra.gmra.mrb[14].mxu1 %vm285_vm3, %v2982_v23  ;;  %2025 = vmatmul.mubr.msk.f32.vlgmr.msra.gmra.mrb[16].mxu0 %vm285_vm3, %v2982_v23 }
 0x312   :  { %2437 = vmatpush3.bf16.msra.mxu1 %v2436_v12  ;;  %2157 = vmatprep.mubr.msk.f32.mxu1 %vm2507_vm1, %v2506_v27  ;;  %v737_v27 = vld [vmem:[%s3615_s10 + $0x638] sm:$0xff] }
 0x313   :  { %2438 = vmatprep.subr.bf16.mxu1 %v2504_v5  ;;  %v2445_v20 = vpack.c.bf16 %v737_v27, %v712_v19 }
 0x316   :  { %2440 = vmatpush3.bf16.msra.mxu1 %v2439_v15 }
 0x317   :  { %2441 = vmatprep.subr.bf16.mxu1 %v2504_v5 }
 0x31a   :  { %2443 = vmatpush3.bf16.msra.mxu1 %v2442_v18 }
 0x31b   :  { %2444 = vmatprep.subr.bf16.mxu1 %v2504_v5 }
 0x31e   :  { %2446 = vmatpush3.bf16.msra.mxu1 %v2445_v20 }
 0x321   :  { %2158 = vmatmul.mubr.msk.f32.vlgmr.msra.gmra.mrb[16].mxu1 %vm285_vm3, %v2982_v23 }
 0x322   :  { %2467 = shalt.err (!%p2464_p4)
}
 0x323   :  { %s2468_s0 = scalar_lea.hbm %s3617_s12, 32 }
 0x324   :  { %p2469_p5 = scmp.ne.s32.totalorder %s3617_s12, %s2468_s0  ;;  %p2472_p6 = scmp.lt.u32.totalorder %s2468_s0, %s3617_s12 }
 0x326   :  { %p2474_p7 = pnand %p2472_p6, %p2469_p5 }
 0x328   :  { %2477 = shalt.err (!%p2474_p7)
}
 0x329   :  { %1981 = dma.vmem_to_hbm [thread:$0]  %s1979_s16, 32, %s3617_s12, [#allocation3]  }
 0x32a   :  { %s2478_s2 = scalar_lea.vmem %s1989_s18, 32  ;;  %p2483_p9 = scmp.lt.s32.totalorder %s1989_s18, %s1989_s18 }
 0x32b   :  { %p2479_p8 = scmp.ne.s32.totalorder %s1989_s18, %s2478_s2  ;;  %p2484_p10 = scmp.lt.s32.totalorder %s2478_s2, %s2478_s2 }
 0x32d   :  { %p2485_p11 = por %p2484_p10, %p2483_p9 }
 0x32f   :  { %p2486_p12 = pnand %p2485_p11, %p2479_p8 }
 0x331   :  { %2489 = shalt.err (!%p2486_p12)
}
 0x332   :  { %s2490_s4 = scalar_lea.hbm %s3618_s13, 32 }
 0x333   :  { %p2491_p13 = scmp.ne.s32.totalorder %s3618_s13, %s2490_s4  ;;  %p2494_p0 = scmp.lt.u32.totalorder %s2490_s4, %s3618_s13 }
 0x335   :  { %p2496_p1 = pnand %p2494_p0, %p2491_p13 }
 0x337   :  { %2499 = shalt.err (!%p2496_p1)
}
 0x338   :  { %1991 = dma.vmem_to_hbm [thread:$0]  %s1989_s18, 32, %s3618_s13, [#allocation5]   ;;  %v3513_v5 = vsub.s32 0, %v2650_v35  ;;  %v3516_v23 = vsub.s32 2, %v2650_v35  ;;  %v738_v21 = vld [vmem:[%s3616_s11] sm:$0xff]  ;;  %v3522_v22 = vsub.s32 1, %v2650_v35 }
 0x339   :  { %v3525_v24 = vsub.s32 3, %v2650_v35  ;;  %v3534_v48 = vsub.s32 4, %v2650_v35  ;;  %v3537_v49 = vsub.s32 6, %v2650_v35  ;;  %v3540_v51 = vsub.s32 5, %v2650_v35  ;;  %v739_v10 = vld [vmem:[%s3616_s11 + $0x8] sm:$0xff] }
 0x33a   :  { %v749_v25 = vrot.slane %v738_v21, %v3513_v5  ;;  %v757_v26 = vrot.slane %v738_v21, %v3516_v23  ;;  %v753_v28 = vrot.slane %v738_v21, %v3522_v22  ;;  %v3543_v52 = vsub.s32 7, %v2650_v35 }
 0x33b   :  { %v761_v29 = vrot.slane %v738_v21, %v3525_v24  ;;  %v765_v53 = vrot.slane %v738_v21, %v3534_v48  ;;  %v773_v54 = vrot.slane %v738_v21, %v3537_v49  ;;  %v769_v55 = vrot.slane %v738_v21, %v3540_v51 }
 0x33c   :  { %v777_v56 = vrot.slane %v738_v21, %v3543_v52  ;;  %v781_v11 = vrot.slane %v739_v10, %v3513_v5  ;;  %v789_v12 = vrot.slane %v739_v10, %v3516_v23  ;;  %v785_v13 = vrot.slane %v739_v10, %v3522_v22 }
 0x33d   :  { %v793_v14 = vrot.slane %v739_v10, %v3525_v24 }
 0x394   :  { %v940_v30 = vpop.f32.mrb[4].mxu1  ;;  %v1011_v31 = vpop.f32.mrb[6].mxu0 }
 0x395   :  { %v941_v32 = vadd.f32 %v940_v30, %v749_v25  ;;  %v1012_v33 = vadd.f32 %v1011_v31, %v757_v26  ;;  %v942_v34 = vpop.f32.mrb[5].mxu1  ;;  %v1013_v36 = vpop.f32.mrb[7].mxu0 }
 0x396   :  { %v943_v37 = vadd.f32 %v942_v34, %v753_v28  ;;  %v1014_v38 = vadd.f32 %v1013_v36, %v761_v29  ;;  %v797_v36 = vrot.slane %v739_v10, %v3534_v48 }
 0x397   :  { %v1799_v39 = vmax.f32 %v941_v32, 0.0  ;;  %v1801_v40 = vmax.f32 %v1012_v33, 0.0 }
 0x398   :  { %v1800_v41 = vmax.f32 %v943_v37, 0.0  ;;  %v1802_v42 = vmax.f32 %v1014_v38, 0.0  ;;  %v805_v37 = vrot.slane %v739_v10, %v3537_v49  ;;  %v801_v38 = vrot.slane %v739_v10, %v3540_v51 }
 0x39a   :  { %v1849_v43 = vcombine.low %v1799_v39, %v1800_v41  ;;  %v1850_v44 = vcombine.low %v1801_v40, %v1802_v42  ;;  %v809_v39 = vrot.slane %v739_v10, %v3543_v52 }
 0x39c   :  { %v1857_v45 = vrot.slane %v1849_v43, %v2675_v46  ;;  %v1864_v47 = vrot.slane %v1850_v44, %v2675_v46 }
 0x39e   :  { %v1865_v50 = vcombine.low %v1857_v45, %v1864_v47 }
 0x3a0   :  { %1965 = vst [vmem:[%s3619_s14] sm:$0xff] %v1865_v50 }
 0x3a4   :  { %v1082_v57 = vpop.f32.mrb[6].mxu1  ;;  %v1153_v58 = vpop.f32.mrb[8].mxu0 }
 0x3a5   :  { %v1083_v59 = vadd.f32 %v1082_v57, %v765_v53  ;;  %v1154_v60 = vadd.f32 %v1153_v58, %v773_v54  ;;  %v1084_v61 = vpop.f32.mrb[7].mxu1  ;;  %v1155_v62 = vpop.f32.mrb[9].mxu0 }
 0x3a6   :  { %v1085_v35 = vadd.f32 %v1084_v61, %v769_v55  ;;  %v1156_v63 = vadd.f32 %v1155_v62, %v777_v56  ;;  %v740_v62 = vld [vmem:[%s3616_s11 + $0x10] sm:$0xff] }
 0x3a7   :  { %v1803_v0 = vmax.f32 %v1083_v59, 0.0  ;;  %v1805_v1 = vmax.f32 %v1154_v60, 0.0 }
 0x3a8   :  { %v1804_v2 = vmax.f32 %v1085_v35, 0.0  ;;  %v1806_v3 = vmax.f32 %v1156_v63, 0.0  ;;  %v813_v35 = vrot.slane %v740_v62, %v3513_v5  ;;  %v821_v63 = vrot.slane %v740_v62, %v3516_v23 }
 0x3aa   :  { %v1866_v4 = vcombine.low %v1803_v0, %v1804_v2  ;;  %v1867_v6 = vcombine.low %v1805_v1, %v1806_v3  ;;  %v817_v0 = vrot.slane %v740_v62, %v3522_v22  ;;  %v825_v1 = vrot.slane %v740_v62, %v3525_v24 }
 0x3ab   :  { %v829_v24 = vrot.slane %v740_v62, %v3534_v48 }
 0x3ac   :  { %v1874_v7 = vrot.slane %v1866_v4, %v2675_v46  ;;  %v1881_v8 = vrot.slane %v1867_v6, %v2675_v46 }
 0x3ae   :  { %v1882_v9 = vcombine.low %v1874_v7, %v1881_v8 }
 0x3b0   :  { %1966 = vst [vmem:[%s3619_s14 + $0x8] sm:$0xff] %v1882_v9 }
 0x3b4   :  { %v1224_v15 = vpop.f32.mrb[8].mxu1  ;;  %v1295_v16 = vpop.f32.mrb[10].mxu0 }
 0x3b5   :  { %v1225_v17 = vadd.f32 %v1224_v15, %v781_v11  ;;  %v1296_v18 = vadd.f32 %v1295_v16, %v789_v12  ;;  %v1226_v19 = vpop.f32.mrb[9].mxu1  ;;  %v1297_v27 = vpop.f32.mrb[11].mxu0 }
 0x3b6   :  { %v1227_v20 = vadd.f32 %v1226_v19, %v785_v13  ;;  %v1298_v21 = vadd.f32 %v1297_v27, %v793_v14  ;;  %v841_v19 = vrot.slane %v740_v62, %v3543_v52  ;;  %v2013_v52 = vld [vmem:[%s3616_s11 + $0x18] ss:$0 sm:$0xff] }
 0x3b7   :  { %v1807_v25 = vmax.f32 %v1225_v17, 0.0  ;;  %v1809_v26 = vmax.f32 %v1296_v18, 0.0  ;;  %v837_v17 = vrot.slane %v740_v62, %v3537_v49  ;;  %v833_v18 = vrot.slane %v740_v62, %v3540_v51 }
 0x3b8   :  { %v1808_v28 = vmax.f32 %v1227_v20, 0.0  ;;  %v1810_v29 = vmax.f32 %v1298_v21, 0.0 }
 0x3ba   :  { %v1883_v30 = vcombine.low %v1807_v25, %v1808_v28  ;;  %v1884_v31 = vcombine.low %v1809_v26, %v1810_v29 }
 0x3bc   :  { %v1891_v32 = vrot.slane %v1883_v30, %v2675_v46  ;;  %v1898_v33 = vrot.slane %v1884_v31, %v2675_v46 }
 0x3be   :  { %v1899_v34 = vcombine.low %v1891_v32, %v1898_v33 }
 0x3c0   :  { %1967 = vst [vmem:[%s3619_s14 + $0x10] sm:$0xff] %v1899_v34 }
 0x3c4   :  { %v1366_v40 = vpop.f32.mrb[10].mxu1  ;;  %v1437_v41 = vpop.f32.mrb[12].mxu0 }
 0x3c5   :  { %v1367_v42 = vadd.f32 %v1366_v40, %v797_v36  ;;  %v1438_v43 = vadd.f32 %v1437_v41, %v805_v37  ;;  %v1368_v44 = vpop.f32.mrb[11].mxu1  ;;  %v1439_v45 = vpop.f32.mrb[13].mxu0 }
 0x3c6   :  { %v1369_v47 = vadd.f32 %v1368_v44, %v801_v38  ;;  %v1440_v50 = vadd.f32 %v1439_v45, %v809_v39 }
 0x3c7   :  { %v1811_v53 = vmax.f32 %v1367_v42, 0.0  ;;  %v1813_v54 = vmax.f32 %v1438_v43, 0.0 }
 0x3c8   :  { %v1812_v55 = vmax.f32 %v1369_v47, 0.0  ;;  %v1814_v56 = vmax.f32 %v1440_v50, 0.0 }
 0x3ca   :  { %v1900_v57 = vcombine.low %v1811_v53, %v1812_v55  ;;  %v1901_v58 = vcombine.low %v1813_v54, %v1814_v56 }
 0x3cc   :  { %v1908_v59 = vrot.slane %v1900_v57, %v2675_v46  ;;  %v1915_v60 = vrot.slane %v1901_v58, %v2675_v46 }
 0x3ce   :  { %v1916_v61 = vcombine.low %v1908_v59, %v1915_v60 }
 0x3d0   :  { %1968 = vst [vmem:[%s3619_s14 + $0x18] sm:$0xff] %v1916_v61 }
 0x3d4   :  { %v1508_v2 = vpop.f32.mrb[12].mxu1  ;;  %v1579_v3 = vpop.f32.mrb[14].mxu0 }
 0x3d5   :  { %v1509_v4 = vadd.f32 %v1508_v2, %v813_v35  ;;  %v1580_v6 = vadd.f32 %v1579_v3, %v821_v63  ;;  %v1510_v7 = vpop.f32.mrb[13].mxu1  ;;  %v1581_v8 = vpop.f32.mrb[15].mxu0 }
 0x3d6   :  { %v1511_v9 = vadd.f32 %v1510_v7, %v817_v0  ;;  %v1582_v10 = vadd.f32 %v1581_v8, %v825_v1 }
 0x3d7   :  { %v1815_v11 = vmax.f32 %v1509_v4, 0.0  ;;  %v1817_v12 = vmax.f32 %v1580_v6, 0.0 }
 0x3d8   :  { %v1816_v13 = vmax.f32 %v1511_v9, 0.0  ;;  %v1818_v14 = vmax.f32 %v1582_v10, 0.0 }
 0x3da   :  { %v1917_v15 = vcombine.low %v1815_v11, %v1816_v13  ;;  %v1918_v5 = vcombine.low %v1817_v12, %v1818_v14 }
 0x3dc   :  { %v1925_v23 = vrot.slane %v1917_v15, %v2675_v46  ;;  %v1932_v22 = vrot.slane %v1918_v5, %v2675_v46 }
 0x3de   :  { %v1933_v16 = vcombine.low %v1925_v23, %v1932_v22 }
 0x3e0   :  { %1969 = vst [vmem:[%s3619_s14 + $0x20] sm:$0xff] %v1933_v16 }
 0x3e4   :  { %v1650_v27 = vpop.f32.mrb[14].mxu1  ;;  %v1721_v20 = vpop.f32.mrb[16].mxu0 }
 0x3e5   :  { %v1651_v21 = vadd.f32 %v1650_v27, %v829_v24  ;;  %v1722_v25 = vadd.f32 %v1721_v20, %v837_v17  ;;  %v1652_v26 = vpop.f32.mrb[15].mxu1  ;;  %v1723_v28 = vpop.f32.mrb[17].mxu0 }
 0x3e6   :  { %v1653_v29 = vadd.f32 %v1652_v26, %v833_v18  ;;  %v1724_v30 = vadd.f32 %v1723_v28, %v841_v19 }
 0x3e7   :  { %v1819_v31 = vmax.f32 %v1651_v21, 0.0  ;;  %v1821_v32 = vmax.f32 %v1722_v25, 0.0 }
 0x3e8   :  { %v1820_v33 = vmax.f32 %v1653_v29, 0.0  ;;  %v1822_v34 = vmax.f32 %v1724_v30, 0.0 }
 0x3ea   :  { %v1934_v36 = vcombine.low %v1819_v31, %v1820_v33  ;;  %v1935_v48 = vcombine.low %v1821_v32, %v1822_v34 }
 0x3ec   :  { %v1942_v49 = vrot.slane %v1934_v36, %v2675_v46  ;;  %v1949_v51 = vrot.slane %v1935_v48, %v2675_v46 }
 0x3ee   :  { %v1950_v37 = vcombine.low %v1942_v49, %v1949_v51 }
 0x3f0   :  { %1970 = vst [vmem:[%s3619_s14 + $0x28] sm:$0xff] %v1950_v37 }
 0x3f4   :  { %v1792_v38 = vpop.f32.mrb[16].mxu1 }
 0x3f5   :  { %v1793_v39 = vadd.f32 %v2013_v52, %v1792_v38  ;;  %v2159_v40 = vpop.f32.mrb[17].mxu1 }
 0x3f7   :  { %v1823_v41 = vmax.f32 %v1793_v39, 0.0 }
 0x3f9   :  { %2027 = vst.sshfl [vmem:[%s3619_s14 + $0x30] sm:$0x3 pattern:$0x76325410] %v1823_v41 }
 0x3fa   :  { %2500 = dma.done.wait [#allocation3], 32  }
 0x3fb   :  { %2501 = vsyncadd [#allocation3], 4294967264 }
 0x3fc   :  { %2502 = dma.done.wait [#allocation5], 32  }
 0x3fd   :  { %2503 = vsyncadd [#allocation5], 4294967264 }
 0x3fe   :  { %2002 = vsyncpa [#allocation3], 1 }
 0x3ff   :  { %2003 = vsyncpa [#allocation5], 1 }

// kernel: vae_cnn_forward.8
= control target key start
LH: loop header
LB: loop body
LE: loop exit
PB: predicated region body
PF: predicated region fallthrough
CT: control target
= control target key end

     0   :  { %v2809_v3 = vmov 0   ;;  %vm669_vm0 = vcmask 801792   ;;  %vm1077_vm1 = vcmask 687104   ;;  %vm1767_vm2 = vcmask 588800   ;;  %s4476_s0 = inlined_call_operand.vmem [shape: f32[1152,98], index: 0, kind: input, shape index: {}]   ;;  %s4477_s4 = inlined_call_operand.vmem [shape: f32[32,1152], index: 4, kind: input, shape index: {}]   ;;  %s4478_s1 = inlined_call_operand.vmem [shape: f32[768,84], index: 1, kind: input, shape index: {}]   ;;  %s4479_s5 = inlined_call_operand.vmem [shape: f32[32,768], index: 5, kind: input, shape index: {}]   ;;  %s4480_s8 = inlined_call_operand.vmem [shape: f32[32,1], index: 8, kind: input, shape index: {}]   ;;  %s4481_s2 = inlined_call_operand.vmem [shape: f32[768,84], index: 2, kind: input, shape index: {}]   ;;  %s4482_s6 = inlined_call_operand.vmem [shape: f32[32,768], index: 6, kind: input, shape index: {}]   ;;  %s4483_s3 = inlined_call_operand.vmem [shape: f32[512,72], index: 3, kind: input, shape index: {}]   ;;  %s4484_s7 = inlined_call_operand.vmem [shape: f32[32,512], index: 7, kind: input, shape index: {}]   ;;  %s4485_s9 = inlined_call_operand.vmem [shape: f32[32,98], index: 9, kind: output, shape index: {0}]   ;;  %s4486_s10 = inlined_call_operand.vmem [shape: f32[32,84], index: 10, kind: output, shape index: {1}]   ;;  %s4487_s11 = inlined_call_operand.vmem [shape: f32[32,84], index: 11, kind: output, shape index: {2}]   ;;  %s4488_s12 = inlined_call_operand.vmem [shape: f32[32,72], index: 12, kind: output, shape index: {3}]  }
   0x1   :  { %v88_v0 = vld [vmem:[%s4476_s0 + $0x80] sm:$0xff]  ;;  %v89_v1 = vld [vmem:[%s4476_s0 + $0x88] sm:$0xff]  ;;  %2807 = vset.pattern.permute.xlu0 %v2809_v3  ;;  %2808 = vset.pattern.permute.xlu1 %v2809_v3  ;;  %v90_v12 = vld [vmem:[%s4476_s0 + $0x90] sm:$0xff] }
   0x2   :  { %v120_v2 = vld [vmem:[%s4476_s0 + $0x180] sm:$0xff]  ;;  %v2374_v4 = vpack.c.bf16 %v89_v1, %v88_v0  ;;  %v121_v5 = vld [vmem:[%s4476_s0 + $0x188] sm:$0xff]  ;;  %v91_v14 = vld [vmem:[%s4476_s0 + $0x98] sm:$0xff] }
   0x3   :  { %v72_v6 = vld [vmem:[%s4476_s0] sm:$0xff]  ;;  %v73_v7 = vld [vmem:[%s4476_s0 + $0x8] sm:$0xff]  ;;  %v2406_v8 = vpack.c.bf16 %v121_v5, %v120_v2  ;;  %v122_v15 = vld [vmem:[%s4476_s0 + $0x190] sm:$0xff]  ;;  %v2378_v17 = vpack.c.bf16 %v91_v14, %v90_v12 }
   0x4   :  { %v2376_v9 = vpack.c.bf16 %v73_v7, %v72_v6  ;;  %v104_v10 = vld [vmem:[%s4476_s0 + $0x100] sm:$0xff]  ;;  %v105_v11 = vld [vmem:[%s4476_s0 + $0x108] sm:$0xff]  ;;  %2375 = vmatprep.subr.bf16.mxu0 %v2374_v4  ;;  %v123_v16 = vld [vmem:[%s4476_s0 + $0x198] sm:$0xff] }
   0x5   :  { %v2408_v13 = vpack.c.bf16 %v105_v11, %v104_v10  ;;  %2407 = vmatprep.subr.bf16.mxu1 %v2406_v8  ;;  %v2410_v18 = vpack.c.bf16 %v123_v16, %v122_v15  ;;  %v74_v19 = vld [vmem:[%s4476_s0 + $0x10] sm:$0xff]  ;;  %v75_v20 = vld [vmem:[%s4476_s0 + $0x18] sm:$0xff]  ;;  %v92_v24 = vld [vmem:[%s4476_s0 + $0xa0] sm:$0xff] }
   0x6   :  { %2377 = vmatpush3.bf16.msra.mxu0 %v2376_v9  ;;  %v106_v21 = vld [vmem:[%s4476_s0 + $0x110] sm:$0xff]  ;;  %v2380_v22 = vpack.c.bf16 %v75_v20, %v74_v19  ;;  %v107_v23 = vld [vmem:[%s4476_s0 + $0x118] sm:$0xff]  ;;  %v93_v25 = vld [vmem:[%s4476_s0 + $0xa8] sm:$0xff] }
   0x7   :  { %2409 = vmatpush3.bf16.msra.mxu1 %v2408_v13  ;;  %2379 = vmatprep.subr.bf16.mxu0 %v2378_v17  ;;  %v2412_v26 = vpack.c.bf16 %v107_v23, %v106_v21  ;;  %v2382_v27 = vpack.c.bf16 %v93_v25, %v92_v24  ;;  %v124_v28 = vld [vmem:[%s4476_s0 + $0x1a0] sm:$0xff]  ;;  %v125_v29 = vld [vmem:[%s4476_s0 + $0x1a8] sm:$0xff]  ;;  %v94_v36 = vld [vmem:[%s4476_s0 + $0xb0] sm:$0xff] }
   0x8   :  { %2411 = vmatprep.subr.bf16.mxu1 %v2410_v18  ;;  %v76_v30 = vld [vmem:[%s4476_s0 + $0x20] sm:$0xff]  ;;  %v2414_v31 = vpack.c.bf16 %v125_v29, %v124_v28  ;;  %v77_v32 = vld [vmem:[%s4476_s0 + $0x28] sm:$0xff]  ;;  %v95_v37 = vld [vmem:[%s4476_s0 + $0xb8] sm:$0xff] }
   0x9   :  { %v108_v33 = vld [vmem:[%s4476_s0 + $0x120] sm:$0xff]  ;;  %v109_v34 = vld [vmem:[%s4476_s0 + $0x128] sm:$0xff]  ;;  %v2384_v35 = vpack.c.bf16 %v77_v32, %v76_v30  ;;  %v126_v38 = vld [vmem:[%s4476_s0 + $0x1b0] sm:$0xff]  ;;  %v2386_v40 = vpack.c.bf16 %v95_v37, %v94_v36 }
   0xa   :  { %2381 = vmatpush3.bf16.msra.mxu0 %v2380_v22  ;;  %v2416_v39 = vpack.c.bf16 %v109_v34, %v108_v33  ;;  %v127_v41 = vld [vmem:[%s4476_s0 + $0x1b8] sm:$0xff]  ;;  %v78_v42 = vld [vmem:[%s4476_s0 + $0x30] sm:$0xff]  ;;  %v96_v47 = vld [vmem:[%s4476_s0 + $0xc0] sm:$0xff] }
   0xb   :  { %2413 = vmatpush3.bf16.msra.mxu1 %v2412_v26  ;;  %2383 = vmatprep.subr.bf16.mxu0 %v2382_v27  ;;  %v79_v43 = vld [vmem:[%s4476_s0 + $0x38] sm:$0xff]  ;;  %v2418_v44 = vpack.c.bf16 %v127_v41, %v126_v38  ;;  %v110_v45 = vld [vmem:[%s4476_s0 + $0x130] sm:$0xff]  ;;  %v97_v48 = vld [vmem:[%s4476_s0 + $0xc8] sm:$0xff] }
   0xc   :  { %2415 = vmatprep.subr.bf16.mxu1 %v2414_v31  ;;  %v111_v46 = vld [vmem:[%s4476_s0 + $0x138] sm:$0xff]  ;;  %v128_v49 = vld [vmem:[%s4476_s0 + $0x1c0] sm:$0xff]  ;;  %v129_v50 = vld [vmem:[%s4476_s0 + $0x1c8] sm:$0xff]  ;;  %v2388_v51 = vpack.c.bf16 %v79_v43, %v78_v42  ;;  %v2390_v53 = vpack.c.bf16 %v97_v48, %v96_v47 }
   0xd   :  { %v2420_v52 = vpack.c.bf16 %v111_v46, %v110_v45  ;;  %v80_v54 = vld [vmem:[%s4476_s0 + $0x40] sm:$0xff]  ;;  %v81_v55 = vld [vmem:[%s4476_s0 + $0x48] sm:$0xff]  ;;  %v2422_v57 = vpack.c.bf16 %v129_v50, %v128_v49  ;;  %v98_v59 = vld [vmem:[%s4476_s0 + $0xd0] sm:$0xff] }
   0xe   :  { %2385 = vmatpush3.bf16.msra.mxu0 %v2384_v35  ;;  %v112_v56 = vld [vmem:[%s4476_s0 + $0x140] sm:$0xff]  ;;  %v113_v58 = vld [vmem:[%s4476_s0 + $0x148] sm:$0xff]  ;;  %v99_v60 = vld [vmem:[%s4476_s0 + $0xd8] sm:$0xff]  ;;  %v2392_v63 = vpack.c.bf16 %v81_v55, %v80_v54 }
   0xf   :  { %2417 = vmatpush3.bf16.msra.mxu1 %v2416_v39  ;;  %2387 = vmatprep.subr.bf16.mxu0 %v2386_v40  ;;  %v130_v61 = vld [vmem:[%s4476_s0 + $0x1d0] sm:$0xff]  ;;  %v131_v62 = vld [vmem:[%s4476_s0 + $0x1d8] sm:$0xff]  ;;  %v2424_v0 = vpack.c.bf16 %v113_v58, %v112_v56  ;;  %v2394_v1 = vpack.c.bf16 %v99_v60, %v98_v59  ;;  %v100_v7 = vld [vmem:[%s4476_s0 + $0xe0] sm:$0xff] }
  0x10   :  { %2419 = vmatprep.subr.bf16.mxu1 %v2418_v44  ;;  %v82_v2 = vld [vmem:[%s4476_s0 + $0x50] sm:$0xff]  ;;  %v83_v3 = vld [vmem:[%s4476_s0 + $0x58] sm:$0xff]  ;;  %v2426_v5 = vpack.c.bf16 %v131_v62, %v130_v61  ;;  %v101_v8 = vld [vmem:[%s4476_s0 + $0xe8] sm:$0xff] }
  0x11   :  { %v114_v4 = vld [vmem:[%s4476_s0 + $0x150] sm:$0xff]  ;;  %v115_v6 = vld [vmem:[%s4476_s0 + $0x158] sm:$0xff]  ;;  %v132_v9 = vld [vmem:[%s4476_s0 + $0x1e0] sm:$0xff]  ;;  %v2396_v11 = vpack.c.bf16 %v83_v3, %v82_v2  ;;  %v2398_v15 = vpack.c.bf16 %v101_v8, %v100_v7 }
  0x12   :  { %2389 = vmatpush3.bf16.msra.mxu0 %v2388_v51  ;;  %v133_v10 = vld [vmem:[%s4476_s0 + $0x1e8] sm:$0xff]  ;;  %v84_v12 = vld [vmem:[%s4476_s0 + $0x60] sm:$0xff]  ;;  %v2428_v14 = vpack.c.bf16 %v115_v6, %v114_v4  ;;  %v39_v18 = vld [vmem:[%s4477_s4 + $0x18] sm:$0xff] }
  0x13   :  { %2421 = vmatpush3.bf16.msra.mxu1 %v2420_v52  ;;  %2391 = vmatprep.subr.bf16.mxu0 %v2390_v53  ;;  %v85_v13 = vld [vmem:[%s4476_s0 + $0x68] sm:$0xff]  ;;  %v116_v16 = vld [vmem:[%s4476_s0 + $0x160] sm:$0xff]  ;;  %v2430_v19 = vpack.c.bf16 %v133_v10, %v132_v9  ;;  %v102_v21 = vld [vmem:[%s4476_s0 + $0xf0] sm:$0xff] }
  0x14   :  { %2423 = vmatprep.subr.bf16.mxu1 %v2422_v57  ;;  %v37_v17 = vld [vmem:[%s4477_s4 + $0x8] sm:$0xff]  ;;  %v103_v22 = vld [vmem:[%s4476_s0 + $0xf8] sm:$0xff]  ;;  %v134_v23 = vld [vmem:[%s4476_s0 + $0x1f0] sm:$0xff]  ;;  %389 = vmatprep.mubr.f32.mxu1 %v39_v18  ;;  %v2400_v25 = vpack.c.bf16 %v85_v13, %v84_v12 }
  0x15   :  { %v117_v20 = vld [vmem:[%s4476_s0 + $0x168] sm:$0xff]  ;;  %304 = vmatprep.mubr.f32.mxu0 %v37_v17  ;;  %v135_v24 = vld [vmem:[%s4476_s0 + $0x1f8] sm:$0xff]  ;;  %v2402_v27 = vpack.c.bf16 %v103_v22, %v102_v21  ;;  %v86_v28 = vld [vmem:[%s4476_s0 + $0x70] sm:$0xff] }
  0x16   :  { %2393 = vmatpush3.bf16.msra.mxu0 %v2392_v63  ;;  %v2432_v26 = vpack.c.bf16 %v117_v20, %v116_v16  ;;  %v87_v29 = vld [vmem:[%s4476_s0 + $0x78] sm:$0xff]  ;;  %v118_v30 = vld [vmem:[%s4476_s0 + $0x170] sm:$0xff]  ;;  %v2434_v31 = vpack.c.bf16 %v135_v24, %v134_v23  ;;  %v152_v33 = vld [vmem:[%s4476_s0 + $0x280] sm:$0xff] }
  0x17   :  { %2425 = vmatpush3.bf16.msra.mxu1 %v2424_v0  ;;  %2395 = vmatprep.subr.bf16.mxu0 %v2394_v1  ;;  %v119_v32 = vld [vmem:[%s4476_s0 + $0x178] sm:$0xff]  ;;  %v153_v34 = vld [vmem:[%s4476_s0 + $0x288] sm:$0xff]  ;;  %v184_v35 = vld [vmem:[%s4476_s0 + $0x380] sm:$0xff]  ;;  %v2404_v37 = vpack.c.bf16 %v87_v29, %v86_v28 }
  0x18   :  { %2427 = vmatprep.subr.bf16.mxu1 %v2426_v5  ;;  %v185_v36 = vld [vmem:[%s4476_s0 + $0x388] sm:$0xff]  ;;  %v2436_v38 = vpack.c.bf16 %v119_v32, %v118_v30  ;;  %v2438_v39 = vpack.c.bf16 %v153_v34, %v152_v33  ;;  %v136_v40 = vld [vmem:[%s4476_s0 + $0x200] sm:$0xff]  ;;  %v154_v45 = vld [vmem:[%s4476_s0 + $0x290] sm:$0xff] }
  0x19   :  { %v137_v41 = vld [vmem:[%s4476_s0 + $0x208] sm:$0xff]  ;;  %v168_v42 = vld [vmem:[%s4476_s0 + $0x300] sm:$0xff]  ;;  %v2470_v43 = vpack.c.bf16 %v185_v36, %v184_v35  ;;  %v155_v46 = vld [vmem:[%s4476_s0 + $0x298] sm:$0xff] }
  0x1a   :  { %2397 = vmatpush3.bf16.msra.mxu0 %v2396_v11  ;;  %v169_v44 = vld [vmem:[%s4476_s0 + $0x308] sm:$0xff]  ;;  %v186_v47 = vld [vmem:[%s4476_s0 + $0x390] sm:$0xff]  ;;  %v187_v48 = vld [vmem:[%s4476_s0 + $0x398] sm:$0xff]  ;;  %v2440_v51 = vpack.c.bf16 %v137_v41, %v136_v40  ;;  %v2442_v53 = vpack.c.bf16 %v155_v46, %v154_v45 }
  0x1b   :  { %2429 = vmatpush3.bf16.msra.mxu1 %v2428_v14  ;;  %2399 = vmatprep.subr.bf16.mxu0 %v2398_v15  ;;  %v36_v49 = vld [vmem:[%s4477_s4] sm:$0xff]  ;;  %v38_v50 = vld [vmem:[%s4477_s4 + $0x10] sm:$0xff]  ;;  %v2472_v52 = vpack.c.bf16 %v169_v44, %v168_v42  ;;  %v139_v55 = vld [vmem:[%s4476_s0 + $0x218] sm:$0xff]  ;;  %v2474_v57 = vpack.c.bf16 %v187_v48, %v186_v47 }
  0x1c   :  { %2431 = vmatprep.subr.bf16.mxu1 %v2430_v19  ;;  %v138_v54 = vld [vmem:[%s4476_s0 + $0x210] sm:$0xff]  ;;  %v171_v58 = vld [vmem:[%s4476_s0 + $0x318] sm:$0xff]  ;;  %v156_v59 = vld [vmem:[%s4476_s0 + $0x2a0] sm:$0xff] }
  0x1d   :  { %v170_v56 = vld [vmem:[%s4476_s0 + $0x310] sm:$0xff]  ;;  %v157_v60 = vld [vmem:[%s4476_s0 + $0x2a8] sm:$0xff]  ;;  %v188_v61 = vld [vmem:[%s4476_s0 + $0x3a0] sm:$0xff]  ;;  %v2444_v0 = vpack.c.bf16 %v139_v55, %v138_v54 }
  0x1e   :  { %2401 = vmatpush3.bf16.msra.mxu0 %v2400_v25  ;;  %v189_v62 = vld [vmem:[%s4476_s0 + $0x3a8] sm:$0xff]  ;;  %v46_v63 = vld [vmem:[%s4477_s4 + $0x50] sm:$0xff]  ;;  %v140_v1 = vld [vmem:[%s4476_s0 + $0x220] sm:$0xff]  ;;  %v2476_v4 = vpack.c.bf16 %v171_v58, %v170_v56  ;;  %v2446_v5 = vpack.c.bf16 %v157_v60, %v156_v59 }
  0x1f   :  { %2433 = vmatpush3.bf16.msra.mxu1 %v2432_v26  ;;  %2403 = vmatprep.subr.bf16.mxu0 %v2402_v27  ;;  %v45_v2 = vld [vmem:[%s4477_s4 + $0x48] sm:$0xff]  ;;  %v48_v3 = vld [vmem:[%s4477_s4 + $0x60] sm:$0xff]  ;;  %v47_v8 = vld [vmem:[%s4477_s4 + $0x58] sm:$0xff]  ;;  %v2478_v9 = vpack.c.bf16 %v189_v62, %v188_v61 }
  0x20   :  { %2435 = vmatprep.subr.bf16.mxu1 %v2434_v31  ;;  %v141_v6 = vld [vmem:[%s4476_s0 + $0x228] sm:$0xff]  ;;  %v172_v7 = vld [vmem:[%s4476_s0 + $0x320] sm:$0xff]  ;;  %v158_v11 = vld [vmem:[%s4476_s0 + $0x2b0] sm:$0xff] }
  0x21   :  { %v173_v10 = vld [vmem:[%s4476_s0 + $0x328] sm:$0xff]  ;;  %v159_v12 = vld [vmem:[%s4476_s0 + $0x2b8] sm:$0xff]  ;;  %v190_v13 = vld [vmem:[%s4476_s0 + $0x3b0] sm:$0xff]  ;;  %v2448_v16 = vpack.c.bf16 %v141_v6, %v140_v1 }
  0x22   :  { %2405 = vmatpush3.bf16.msra.mxu0 %v2404_v37  ;;  %v191_v14 = vld [vmem:[%s4476_s0 + $0x3b8] sm:$0xff]  ;;  %v142_v17 = vld [vmem:[%s4476_s0 + $0x230] sm:$0xff]  ;;  %v57_v19 = vld [vmem:[%s4477_s4 + $0xa8] sm:$0xff]  ;;  %v2480_v20 = vpack.c.bf16 %v173_v10, %v172_v7  ;;  %v2450_v21 = vpack.c.bf16 %v159_v12, %v158_v11 }
  0x23   :  { %2437 = vmatpush3.bf16.msra.mxu1 %v2436_v38  ;;  %2439 = vmatprep.subr.bf16.mxu0 %v2438_v39  ;;  %v55_v15 = vld [vmem:[%s4477_s4 + $0x98] sm:$0xff]  ;;  %v54_v18 = vld [vmem:[%s4477_s4 + $0x90] sm:$0xff]  ;;  %v56_v24 = vld [vmem:[%s4477_s4 + $0xa0] sm:$0xff]  ;;  %v2482_v25 = vpack.c.bf16 %v191_v14, %v190_v13 }
  0x24   :  { %2471 = vmatprep.subr.bf16.mxu1 %v2470_v43  ;;  %v143_v22 = vld [vmem:[%s4476_s0 + $0x238] sm:$0xff]  ;;  %v174_v23 = vld [vmem:[%s4476_s0 + $0x330] sm:$0xff]  ;;  %v160_v27 = vld [vmem:[%s4476_s0 + $0x2c0] sm:$0xff] }
  0x25   :  { %305 = vmatmul.mubr.f32.vlgmr.msra.gmra.mrb[0].mxu0 %v36_v49  ;;  %v175_v26 = vld [vmem:[%s4476_s0 + $0x338] sm:$0xff]  ;;  %v161_v28 = vld [vmem:[%s4476_s0 + $0x2c8] sm:$0xff]  ;;  %v192_v29 = vld [vmem:[%s4476_s0 + $0x3c0] sm:$0xff]  ;;  %v2452_v32 = vpack.c.bf16 %v143_v22, %v142_v17 }
  0x26   :  { %390 = vmatmul.mubr.f32.vlgmr.msra.gmra.mrb[0].mxu1 %v38_v50  ;;  %2441 = vmatpush3.bf16.msra.mxu0 %v2440_v51  ;;  %v193_v30 = vld [vmem:[%s4476_s0 + $0x3c8] sm:$0xff]  ;;  %v64_v31 = vld [vmem:[%s4477_s4 + $0xe0] sm:$0xff]  ;;  %v63_v34 = vld [vmem:[%s4477_s4 + $0xd8] sm:$0xff]  ;;  %v2484_v36 = vpack.c.bf16 %v175_v26, %v174_v23  ;;  %v2454_v37 = vpack.c.bf16 %v161_v28, %v160_v27 }
  0x27   :  { %2473 = vmatpush3.bf16.msra.mxu1 %v2472_v52  ;;  %2443 = vmatprep.subr.bf16.mxu0 %v2442_v53  ;;  %v144_v33 = vld [vmem:[%s4476_s0 + $0x240] sm:$0xff]  ;;  %v66_v35 = vld [vmem:[%s4477_s4 + $0xf0] sm:$0xff]  ;;  %v145_v38 = vld [vmem:[%s4476_s0 + $0x248] sm:$0xff]  ;;  %v2486_v41 = vpack.c.bf16 %v193_v30, %v192_v29 }
  0x28   :  { %2475 = vmatprep.subr.bf16.mxu1 %v2474_v57  ;;  %309 = vmatprep.mubr.f32.mxu0 %v46_v63  ;;  %v176_v39 = vld [vmem:[%s4476_s0 + $0x340] sm:$0xff]  ;;  %v65_v40 = vld [vmem:[%s4477_s4 + $0xe8] sm:$0xff]  ;;  %v162_v43 = vld [vmem:[%s4476_s0 + $0x2d0] sm:$0xff]  ;;  %v2456_v47 = vpack.c.bf16 %v145_v38, %v144_v33 }
  0x29   :  { %310 = vmatmul.mubr.f32.gmra.mrb[2].mxu0 %v45_v2  ;;  %394 = vmatprep.mubr.f32.mxu1 %v48_v3  ;;  %v177_v42 = vld [vmem:[%s4476_s0 + $0x348] sm:$0xff]  ;;  %v163_v44 = vld [vmem:[%s4476_s0 + $0x2d8] sm:$0xff]  ;;  %v194_v45 = vld [vmem:[%s4476_s0 + $0x3d0] sm:$0xff] }
  0x2a   :  { %2445 = vmatpush3.bf16.msra.mxu0 %v2444_v0  ;;  %395 = vmatmul.mubr.f32.gmra.mrb[2].mxu1 %v47_v8  ;;  %v195_v46 = vld [vmem:[%s4476_s0 + $0x3d8] sm:$0xff]  ;;  %v41_v48 = vld [vmem:[%s4477_s4 + $0x28] sm:$0xff]  ;;  %v2488_v50 = vpack.c.bf16 %v177_v42, %v176_v39  ;;  %v2458_v51 = vpack.c.bf16 %v163_v44, %v162_v43  ;;  %v146_v52 = vld [vmem:[%s4476_s0 + $0x250] sm:$0xff] }
  0x2b   :  { %2477 = vmatpush3.bf16.msra.mxu1 %v2476_v4  ;;  %2447 = vmatprep.subr.bf16.mxu0 %v2446_v5  ;;  %v43_v49 = vld [vmem:[%s4477_s4 + $0x38] sm:$0xff]  ;;  %v178_v54 = vld [vmem:[%s4476_s0 + $0x350] sm:$0xff]  ;;  %v2490_v55 = vpack.c.bf16 %v195_v46, %v194_v45  ;;  %v164_v57 = vld [vmem:[%s4476_s0 + $0x2e0] sm:$0xff] }
  0x2c   :  { %2479 = vmatprep.subr.bf16.mxu1 %v2478_v9  ;;  %314 = vmatprep.mubr.f32.mxu0 %v55_v15  ;;  %v147_v53 = vld [vmem:[%s4476_s0 + $0x258] sm:$0xff]  ;;  %v165_v58 = vld [vmem:[%s4476_s0 + $0x2e8] sm:$0xff]  ;;  %v196_v59 = vld [vmem:[%s4476_s0 + $0x3e0] sm:$0xff] }
  0x2d   :  { %315 = vmatmul.mubr.f32.gmra.mrb[4].mxu0 %v54_v18  ;;  %399 = vmatprep.mubr.f32.mxu1 %v57_v19  ;;  %v179_v56 = vld [vmem:[%s4476_s0 + $0x358] sm:$0xff]  ;;  %v197_v60 = vld [vmem:[%s4476_s0 + $0x3e8] sm:$0xff]  ;;  %v2460_v61 = vpack.c.bf16 %v147_v53, %v146_v52  ;;  %v2462_v63 = vpack.c.bf16 %v165_v58, %v164_v57  ;;  %v148_v0 = vld [vmem:[%s4476_s0 + $0x260] sm:$0xff] }
  0x2e   :  { %2449 = vmatpush3.bf16.msra.mxu0 %v2448_v16  ;;  %400 = vmatmul.mubr.f32.gmra.mrb[4].mxu1 %v56_v24  ;;  %v2492_v62 = vpack.c.bf16 %v179_v56, %v178_v54  ;;  %v149_v1 = vld [vmem:[%s4476_s0 + $0x268] sm:$0xff]  ;;  %v180_v2 = vld [vmem:[%s4476_s0 + $0x360] sm:$0xff]  ;;  %v2494_v3 = vpack.c.bf16 %v197_v60, %v196_v59  ;;  %v166_v5 = vld [vmem:[%s4476_s0 + $0x2f0] sm:$0xff] }
  0x2f   :  { %2481 = vmatpush3.bf16.msra.mxu1 %v2480_v20  ;;  %2451 = vmatprep.subr.bf16.mxu0 %v2450_v21  ;;  %v181_v4 = vld [vmem:[%s4476_s0 + $0x368] sm:$0xff]  ;;  %v167_v6 = vld [vmem:[%s4476_s0 + $0x2f8] sm:$0xff]  ;;  %v198_v7 = vld [vmem:[%s4476_s0 + $0x3f0] sm:$0xff]  ;;  %v2464_v9 = vpack.c.bf16 %v149_v1, %v148_v0 }
  0x30   :  { %2483 = vmatprep.subr.bf16.mxu1 %v2482_v25  ;;  %319 = vmatprep.mubr.f32.mxu0 %v64_v31  ;;  %v199_v8 = vld [vmem:[%s4476_s0 + $0x3f8] sm:$0xff]  ;;  %v2496_v10 = vpack.c.bf16 %v181_v4, %v180_v2  ;;  %v2466_v11 = vpack.c.bf16 %v167_v6, %v166_v5  ;;  %v150_v12 = vld [vmem:[%s4476_s0 + $0x270] sm:$0xff]  ;;  %v200_v17 = vld [vmem:[%s4476_s0 + $0x400] sm:$0xff] }
  0x31   :  { %320 = vmatmul.mubr.f32.gmra.mrb[6].mxu0 %v63_v34  ;;  %404 = vmatprep.mubr.f32.mxu1 %v66_v35  ;;  %v151_v13 = vld [vmem:[%s4476_s0 + $0x278] sm:$0xff]  ;;  %v182_v14 = vld [vmem:[%s4476_s0 + $0x370] sm:$0xff]  ;;  %v2498_v15 = vpack.c.bf16 %v199_v8, %v198_v7  ;;  %v201_v18 = vld [vmem:[%s4476_s0 + $0x408] sm:$0xff] }
  0x32   :  { %2453 = vmatpush3.bf16.msra.mxu0 %v2452_v32  ;;  %405 = vmatmul.mubr.f32.gmra.mrb[6].mxu1 %v65_v40  ;;  %v183_v16 = vld [vmem:[%s4476_s0 + $0x378] sm:$0xff]  ;;  %v714_v19 = vld [vmem:[%s4478_s1 + $0x80] sm:$0xff]  ;;  %v715_v20 = vld [vmem:[%s4478_s1 + $0x88] sm:$0xff]  ;;  %v2468_v21 = vpack.c.bf16 %v151_v13, %v150_v12  ;;  %v2502_v23 = vpack.c.bf16 %v201_v18, %v200_v17 }
  0x33   :  { %2485 = vmatpush3.bf16.msra.mxu1 %v2484_v36  ;;  %2455 = vmatprep.subr.bf16.mxu0 %v2454_v37  ;;  %v2500_v22 = vpack.c.bf16 %v183_v16, %v182_v14  ;;  %v2534_v24 = vpack.c.bf16 %v715_v20, %v714_v19  ;;  %v698_v25 = vld [vmem:[%s4478_s1] sm:$0xff]  ;;  %v699_v26 = vld [vmem:[%s4478_s1 + $0x8] sm:$0xff]  ;;  %v202_v27 = vld [vmem:[%s4476_s0 + $0x410] sm:$0xff] }
  0x34   :  { %2487 = vmatprep.subr.bf16.mxu1 %v2486_v41  ;;  %474 = vmatprep.mubr.f32.mxu0 %v41_v48  ;;  %v203_v28 = vld [vmem:[%s4476_s0 + $0x418] sm:$0xff]  ;;  %v716_v29 = vld [vmem:[%s4478_s1 + $0x90] sm:$0xff]  ;;  %v40_v31 = vld [vmem:[%s4477_s4 + $0x20] sm:$0xff]  ;;  %v2536_v33 = vpack.c.bf16 %v699_v26, %v698_v25 }
  0x35   :  { %559 = vmatprep.mubr.f32.mxu1 %v43_v49  ;;  %v717_v30 = vld [vmem:[%s4478_s1 + $0x98] sm:$0xff]  ;;  %v42_v32 = vld [vmem:[%s4477_s4 + $0x30] sm:$0xff]  ;;  %v2506_v35 = vpack.c.bf16 %v203_v28, %v202_v27  ;;  %v204_v39 = vld [vmem:[%s4476_s0 + $0x420] sm:$0xff] }
  0x36   :  { %2457 = vmatpush3.bf16.msra.mxu0 %v2456_v47  ;;  %v50_v34 = vld [vmem:[%s4477_s4 + $0x70] sm:$0xff]  ;;  %v2538_v36 = vpack.c.bf16 %v717_v30, %v716_v29  ;;  %v701_v38 = vld [vmem:[%s4478_s1 + $0x18] sm:$0xff]  ;;  %v205_v40 = vld [vmem:[%s4476_s0 + $0x428] sm:$0xff] }
  0x37   :  { %2489 = vmatpush3.bf16.msra.mxu1 %v2488_v50  ;;  %2459 = vmatprep.subr.bf16.mxu0 %v2458_v51  ;;  %v700_v37 = vld [vmem:[%s4478_s1 + $0x10] sm:$0xff]  ;;  %v718_v41 = vld [vmem:[%s4478_s1 + $0xa0] sm:$0xff]  ;;  %v719_v42 = vld [vmem:[%s4478_s1 + $0xa8] sm:$0xff]  ;;  %v2510_v48 = vpack.c.bf16 %v205_v40, %v204_v39 }
  0x38   :  { %2491 = vmatprep.subr.bf16.mxu1 %v2490_v55  ;;  %v49_v43 = vld [vmem:[%s4477_s4 + $0x68] sm:$0xff]  ;;  %v52_v44 = vld [vmem:[%s4477_s4 + $0x80] sm:$0xff]  ;;  %v2540_v45 = vpack.c.bf16 %v701_v38, %v700_v37  ;;  %v51_v46 = vld [vmem:[%s4477_s4 + $0x78] sm:$0xff]  ;;  %v2542_v49 = vpack.c.bf16 %v719_v42, %v718_v41 }
  0x39   :  { %v59_v47 = vld [vmem:[%s4477_s4 + $0xb8] sm:$0xff]  ;;  %v702_v50 = vld [vmem:[%s4478_s1 + $0x20] sm:$0xff]  ;;  %v703_v51 = vld [vmem:[%s4478_s1 + $0x28] sm:$0xff] }
  0x3a   :  { %2461 = vmatpush3.bf16.msra.mxu0 %v2460_v61  ;;  %v206_v52 = vld [vmem:[%s4476_s0 + $0x430] sm:$0xff]  ;;  %v207_v53 = vld [vmem:[%s4476_s0 + $0x438] sm:$0xff]  ;;  %v61_v57 = vld [vmem:[%s4477_s4 + $0xc8] sm:$0xff]  ;;  %v2544_v58 = vpack.c.bf16 %v703_v51, %v702_v50 }
  0x3b   :  { %2493 = vmatpush3.bf16.msra.mxu1 %v2492_v62  ;;  %2463 = vmatprep.subr.bf16.mxu0 %v2462_v63  ;;  %v720_v54 = vld [vmem:[%s4478_s1 + $0xb0] sm:$0xff]  ;;  %v721_v55 = vld [vmem:[%s4478_s1 + $0xb8] sm:$0xff]  ;;  %v60_v59 = vld [vmem:[%s4477_s4 + $0xc0] sm:$0xff]  ;;  %v2514_v62 = vpack.c.bf16 %v207_v53, %v206_v52 }
  0x3c   :  { %2495 = vmatprep.subr.bf16.mxu1 %v2494_v3  ;;  %v58_v56 = vld [vmem:[%s4477_s4 + $0xb0] sm:$0xff]  ;;  %v68_v60 = vld [vmem:[%s4477_s4 + $0x100] sm:$0xff]  ;;  %v2546_v63 = vpack.c.bf16 %v721_v55, %v720_v54  ;;  %v705_v0 = vld [vmem:[%s4478_s1 + $0x38] sm:$0xff] }
  0x3d   :  { %v704_v61 = vld [vmem:[%s4478_s1 + $0x30] sm:$0xff]  ;;  %v208_v1 = vld [vmem:[%s4476_s0 + $0x440] sm:$0xff]  ;;  %v209_v2 = vld [vmem:[%s4476_s0 + $0x448] sm:$0xff] }
  0x3e   :  { %2465 = vmatpush3.bf16.msra.mxu0 %v2464_v9  ;;  %v722_v3 = vld [vmem:[%s4478_s1 + $0xc0] sm:$0xff]  ;;  %v723_v4 = vld [vmem:[%s4478_s1 + $0xc8] sm:$0xff]  ;;  %v67_v5 = vld [vmem:[%s4477_s4 + $0xf8] sm:$0xff]  ;;  %v2548_v7 = vpack.c.bf16 %v705_v0, %v704_v61  ;;  %v2518_v9 = vpack.c.bf16 %v209_v2, %v208_v1 }
  0x3f   :  { %2497 = vmatpush3.bf16.msra.mxu1 %v2496_v10  ;;  %2467 = vmatprep.subr.bf16.mxu0 %v2466_v11  ;;  %v70_v6 = vld [vmem:[%s4477_s4 + $0x110] sm:$0xff]  ;;  %v69_v8 = vld [vmem:[%s4477_s4 + $0x108] sm:$0xff]  ;;  %v706_v10 = vld [vmem:[%s4478_s1 + $0x40] sm:$0xff]  ;;  %v2550_v11 = vpack.c.bf16 %v723_v4, %v722_v3 }
  0x40   :  { %2499 = vmatprep.subr.bf16.mxu1 %v2498_v15  ;;  %v707_v12 = vld [vmem:[%s4478_s1 + $0x48] sm:$0xff]  ;;  %v210_v13 = vld [vmem:[%s4476_s0 + $0x450] sm:$0xff]  ;;  %v211_v14 = vld [vmem:[%s4476_s0 + $0x458] sm:$0xff] }
  0x41   :  { %v724_v15 = vld [vmem:[%s4478_s1 + $0xd0] sm:$0xff]  ;;  %v725_v16 = vld [vmem:[%s4478_s1 + $0xd8] sm:$0xff]  ;;  %v44_v17 = vld [vmem:[%s4477_s4 + $0x40] sm:$0xff]  ;;  %v2552_v19 = vpack.c.bf16 %v707_v12, %v706_v10  ;;  %v2522_v20 = vpack.c.bf16 %v211_v14, %v210_v13 }
  0x42   :  { %2469 = vmatpush3.bf16.msra.mxu0 %v2468_v21  ;;  %v675_v18 = vld [vmem:[%s4479_s5 + $0x8] sm:$0xff]  ;;  %v708_v21 = vld [vmem:[%s4478_s1 + $0x50] sm:$0xff]  ;;  %v726_v26 = vld [vmem:[%s4478_s1 + $0xe0] sm:$0xff] }
  0x43   :  { %2501 = vmatpush3.bf16.msra.mxu1 %v2500_v22  ;;  %2503 = vmatprep.subr.bf16.mxu0 %v2502_v23  ;;  %v2554_v22 = vpack.c.bf16 %v725_v16, %v724_v15  ;;  %v213_v25 = vld [vmem:[%s4476_s0 + $0x468] sm:$0xff]  ;;  %v710_v30 = vld [vmem:[%s4478_s1 + $0x60] sm:$0xff]  ;;  %v712_v40 = vld [vmem:[%s4478_s1 + $0x70] sm:$0xff] }
  0x44   :  { %2535 = vmatprep.subr.bf16.mxu1 %v2534_v24  ;;  %v212_v24 = vld [vmem:[%s4476_s0 + $0x460] sm:$0xff]  ;;  %v727_v27 = vld [vmem:[%s4478_s1 + $0xe8] sm:$0xff]  ;;  %v713_v42 = vld [vmem:[%s4478_s1 + $0x78] sm:$0xff] }
  0x45   :  { %475 = vmatmul.mubr.f32.vlgmr.msra.gmra.mrb[8].mxu0 %v40_v31  ;;  %v2526_v29 = vpack.c.bf16 %v213_v25, %v212_v24  ;;  %v2558_v31 = vpack.c.bf16 %v727_v27, %v726_v26  ;;  %v3502_v37 = vld [vmem:[%s4480_s8] sm:$0xff]  ;;  %v731_v50 = vld [vmem:[%s4478_s1 + $0x108] sm:$0xff]  ;;  %v748_v54 = vld [vmem:[%s4478_s1 + $0x190] sm:$0xff] }
  0x46   :  { %560 = vmatmul.mubr.f32.vlgmr.msra.gmra.mrb[8].mxu1 %v42_v32  ;;  %2505 = vmatpush3.bf16.msra.mxu0 %v2502_v23  ;;  %v709_v23 = vld [vmem:[%s4478_s1 + $0x58] sm:$0xff]  ;;  %v711_v32 = vld [vmem:[%s4478_s1 + $0x68] sm:$0xff]  ;;  %v762_v52 = vld [vmem:[%s4478_s1 + $0x200] sm:$0xff] }
  0x47   :  { %2537 = vmatpush3.bf16.msra.mxu1 %v2536_v33  ;;  %479 = vmatprep.mubr.f32.mxu0 %v50_v34  ;;  %v2556_v28 = vpack.c.bf16 %v709_v23, %v708_v21  ;;  %v214_v33 = vld [vmem:[%s4476_s0 + $0x470] sm:$0xff]  ;;  %v215_v34 = vld [vmem:[%s4476_s0 + $0x478] sm:$0xff]  ;;  %v2560_v38 = vpack.c.bf16 %v711_v32, %v710_v30  ;;  %v763_v53 = vld [vmem:[%s4478_s1 + $0x208] sm:$0xff] }
  0x48   :  { %2507 = vmatprep.subr.bf16.mxu0 %v2506_v35  ;;  %2539 = vmatprep.subr.bf16.mxu1 %v2538_v36  ;;  %v729_v36 = vld [vmem:[%s4478_s1 + $0xf8] sm:$0xff]  ;;  %v2530_v39 = vpack.c.bf16 %v215_v34, %v214_v33  ;;  %v62_v61 = vld [vmem:[%s4477_s4 + $0xd0] sm:$0xff]  ;;  %v735_v15 = vld [vmem:[%s4478_s1 + $0x128] sm:$0xff] }
  0x49   :  { %480 = vmatmul.mubr.f32.gmra.mrb[10].mxu0 %v49_v43  ;;  %564 = vmatprep.mubr.f32.mxu1 %v52_v44  ;;  %v746_v43 = vld [vmem:[%s4478_s1 + $0x180] sm:$0xff]  ;;  %v747_v44 = vld [vmem:[%s4478_s1 + $0x188] sm:$0xff]  ;;  %v749_v55 = vld [vmem:[%s4478_s1 + $0x198] sm:$0xff] }
  0x4a   :  { %2509 = vmatpush3.bf16.msra.mxu0 %v2506_v35  ;;  %565 = vmatmul.mubr.f32.gmra.mrb[10].mxu1 %v51_v46  ;;  %v728_v35 = vld [vmem:[%s4478_s1 + $0xf0] sm:$0xff]  ;;  %v779_v46 = vld [vmem:[%s4478_s1 + $0x288] sm:$0xff]  ;;  %v733_v0 = vld [vmem:[%s4478_s1 + $0x118] sm:$0xff]  ;;  %v2570_v2 = vpack.c.bf16 %v749_v55, %v748_v54 }
  0x4b   :  { %2541 = vmatpush3.bf16.msra.mxu1 %v2540_v45  ;;  %484 = vmatprep.mubr.f32.mxu0 %v59_v47  ;;  %v2562_v41 = vpack.c.bf16 %v729_v36, %v728_v35  ;;  %v778_v45 = vld [vmem:[%s4478_s1 + $0x280] sm:$0xff]  ;;  %v2564_v47 = vpack.c.bf16 %v713_v42, %v712_v40  ;;  %v764_v1 = vld [vmem:[%s4478_s1 + $0x210] sm:$0xff]  ;;  %v765_v4 = vld [vmem:[%s4478_s1 + $0x218] sm:$0xff] }
  0x4c   :  { %2511 = vmatprep.subr.bf16.mxu0 %v2510_v48  ;;  %2543 = vmatprep.subr.bf16.mxu1 %v2542_v49  ;;  %v730_v49 = vld [vmem:[%s4478_s1 + $0x100] sm:$0xff]  ;;  %v2598_v51 = vpack.c.bf16 %v779_v46, %v778_v45  ;;  %v681_v12 = vld [vmem:[%s4479_s5 + $0x38] sm:$0xff]  ;;  %v2604_v13 = vpack.c.bf16 %v765_v4, %v764_v1  ;;  %v687_v24 = vld [vmem:[%s4479_s5 + $0x68] sm:$0xff] }
  0x4d   :  { %485 = vmatmul.mubr.f32.gmra.mrb[12].mxu0 %v58_v56  ;;  %569 = vmatprep.mubr.f32.mxu1 %v61_v57  ;;  %v780_v56 = vld [vmem:[%s4478_s1 + $0x290] sm:$0xff]  ;;  %v781_v57 = vld [vmem:[%s4478_s1 + $0x298] sm:$0xff]  ;;  %v766_v16 = vld [vmem:[%s4478_s1 + $0x220] sm:$0xff] }
  0x4e   :  { %2513 = vmatpush3.bf16.msra.mxu0 %v2510_v48  ;;  %570 = vmatmul.mubr.f32.gmra.mrb[12].mxu1 %v60_v59  ;;  %v2566_v48 = vpack.c.bf16 %v747_v44, %v746_v43  ;;  %v674_v59 = vld [vmem:[%s4479_s5] sm:$0xff]  ;;  %v2602_v3 = vpack.c.bf16 %v781_v57, %v780_v56  ;;  %v753_v21 = vld [vmem:[%s4478_s1 + $0x1b8] sm:$0xff]  ;;  %v736_v26 = vld [vmem:[%s4478_s1 + $0x130] sm:$0xff] }
  0x4f   :  { %2545 = vmatpush3.bf16.msra.mxu1 %v2544_v58  ;;  %489 = vmatprep.mubr.f32.mxu0 %v68_v60  ;;  %v53_v58 = vld [vmem:[%s4477_s4 + $0x88] sm:$0xff]  ;;  %v2568_v60 = vpack.c.bf16 %v731_v50, %v730_v49  ;;  %v785_v23 = vld [vmem:[%s4478_s1 + $0x2b8] sm:$0xff]  ;;  %v686_v32 = vld [vmem:[%s4479_s5 + $0x60] sm:$0xff] }
  0x50   :  { %2515 = vmatprep.subr.bf16.mxu0 %v2514_v62  ;;  %2547 = vmatprep.subr.bf16.mxu1 %v2546_v63  ;;  %v732_v63 = vld [vmem:[%s4478_s1 + $0x110] sm:$0xff]  ;;  %v737_v27 = vld [vmem:[%s4478_s1 + $0x138] sm:$0xff]  ;;  %v3634_v33 = vld [vmem:[%s4480_s8 + $0x8] sm:$0xff] }
  0x51   :  { %490 = vmatmul.mubr.f32.gmra.mrb[14].mxu0 %v67_v5  ;;  %574 = vmatprep.mubr.f32.mxu1 %v70_v6  ;;  %v750_v5 = vld [vmem:[%s4478_s1 + $0x1a0] sm:$0xff]  ;;  %v751_v6 = vld [vmem:[%s4478_s1 + $0x1a8] sm:$0xff]  ;;  %v2572_v10 = vpack.c.bf16 %v733_v0, %v732_v63  ;;  %v769_v35 = vld [vmem:[%s4478_s1 + $0x238] sm:$0xff]  ;;  %v2580_v42 = vpack.c.bf16 %v737_v27, %v736_v26 }
  0x52   :  { %2517 = vmatpush3.bf16.msra.mxu0 %v2514_v62  ;;  %575 = vmatmul.mubr.f32.gmra.mrb[14].mxu1 %v69_v8  ;;  %v2600_v62 = vpack.c.bf16 %v763_v53, %v762_v52  ;;  %v783_v8 = vld [vmem:[%s4478_s1 + $0x2a8] sm:$0xff]  ;;  %v2574_v14 = vpack.c.bf16 %v751_v6, %v750_v5  ;;  %v754_v36 = vld [vmem:[%s4478_s1 + $0x1c0] sm:$0xff]  ;;  %v3670_v49 = vld [vmem:[%s4480_s8 + $0x10] sm:$0xff] }
  0x53   :  { %2549 = vmatpush3.bf16.msra.mxu1 %v2548_v7  ;;  %2519 = vmatprep.subr.bf16.mxu0 %v2518_v9  ;;  %v782_v7 = vld [vmem:[%s4478_s1 + $0x2a0] sm:$0xff]  ;;  %v787_v40 = vld [vmem:[%s4478_s1 + $0x2c8] sm:$0xff]  ;;  %v756_v52 = vld [vmem:[%s4478_s1 + $0x1d0] sm:$0xff] }
  0x54   :  { %2551 = vmatprep.subr.bf16.mxu1 %v2550_v11  ;;  %2368 = vmatprep.mubr.f32.mxu0 %v44_v17  ;;  %v734_v11 = vld [vmem:[%s4478_s1 + $0x120] sm:$0xff]  ;;  %v680_v17 = vld [vmem:[%s4479_s5 + $0x30] sm:$0xff]  ;;  %v739_v44 = vld [vmem:[%s4478_s1 + $0x148] sm:$0xff] }
  0x55   :  { %882 = vmatprep.mubr.f32.mxu1 %v675_v18  ;;  %222 = vperm.xlu0 %2807, %v3502_v37   ;;  %v2606_v18 = vpack.c.bf16 %v783_v8, %v782_v7  ;;  %v2576_v25 = vpack.c.bf16 %v735_v15, %v734_v11  ;;  %v738_v43 = vld [vmem:[%s4478_s1 + $0x140] sm:$0xff]  ;;  %v757_v53 = vld [vmem:[%s4478_s1 + $0x1d8] sm:$0xff]  ;;  %v788_v54 = vld [vmem:[%s4478_s1 + $0x2d0] sm:$0xff] }
  0x56   :  { %2521 = vmatpush3.bf16.msra.mxu0 %v2518_v9  ;;  %v71_v9 = vld [vmem:[%s4477_s4 + $0x118] sm:$0xff]  ;;  %v679_v56 = vld [vmem:[%s4479_s5 + $0x28] sm:$0xff]  ;;  %232 = vperm.xlu1 %2808, %v3670_v49   ;;  %v2584_v57 = vpack.c.bf16 %v739_v44, %v738_v43  ;;  %v758_v1 = vld [vmem:[%s4478_s1 + $0x1e0] sm:$0xff] }
  0x57   :  { %2553 = vmatpush3.bf16.msra.mxu1 %v2552_v19  ;;  %2523 = vmatprep.subr.bf16.mxu0 %v2522_v20  ;;  %v767_v19 = vld [vmem:[%s4478_s1 + $0x228] sm:$0xff]  ;;  %v789_v55 = vld [vmem:[%s4478_s1 + $0x2d8] sm:$0xff]  ;;  %v742_v8 = vld [vmem:[%s4478_s1 + $0x160] sm:$0xff] }
  0x58   :  { %2555 = vmatprep.subr.bf16.mxu1 %v2554_v22  ;;  %v784_v22 = vld [vmem:[%s4478_s1 + $0x2b0] sm:$0xff]  ;;  %v2618_v63 = vpack.c.bf16 %v789_v55, %v788_v54  ;;  %v773_v0 = vld [vmem:[%s4478_s1 + $0x258] sm:$0xff]  ;;  %v791_v4 = vld [vmem:[%s4478_s1 + $0x2e8] sm:$0xff] }
  0x59   :  { %v2610_v34 = vpack.c.bf16 %v785_v23, %v784_v22  ;;  %227 = vperm.xlu0 %2807, %v3634_v33   ;;  %v792_v15 = vld [vmem:[%s4478_s1 + $0x2f0] sm:$0xff]  ;;  %v1123_v26 = vld [vmem:[%s4481_s2 + $0x88] sm:$0xff]  ;;  %v1154_v27 = vld [vmem:[%s4481_s2 + $0x180] sm:$0xff] }
  0x5a   :  { %2525 = vmatpush3.bf16.msra.mxu0 %v2522_v20  ;;  %v752_v20 = vld [vmem:[%s4478_s1 + $0x1b0] sm:$0xff]  ;;  %v678_v44 = vld [vmem:[%s4479_s5 + $0x20] sm:$0xff]  ;;  %v1141_v54 = vld [vmem:[%s4481_s2 + $0x118] sm:$0xff] }
  0x5b   :  { %2557 = vmatpush3.bf16.msra.mxu1 %v2556_v28  ;;  %2527 = vmatprep.subr.bf16.mxu0 %v2526_v29  ;;  %v677_v28 = vld [vmem:[%s4479_s5 + $0x18] sm:$0xff]  ;;  %v2578_v30 = vpack.c.bf16 %v753_v21, %v752_v20  ;;  %v744_v20 = vld [vmem:[%s4478_s1 + $0x170] sm:$0xff]  ;;  %v1126_v55 = vld [vmem:[%s4481_s2 + $0xa0] sm:$0xff] }
  0x5c   :  { %2559 = vmatprep.subr.bf16.mxu1 %v2558_v31  ;;  %v768_v31 = vld [vmem:[%s4478_s1 + $0x230] sm:$0xff]  ;;  %v745_v21 = vld [vmem:[%s4478_s1 + $0x178] sm:$0xff] }
  0x5d   :  { %v2612_v45 = vpack.c.bf16 %v769_v35, %v768_v31  ;;  %800 = vperm.xlu0 %2807, %v3502_v37   ;;  %v3704_v37 = vld [vmem:[%s4480_s8 + $0x18] sm:$0xff]  ;;  %v776_v22 = vld [vmem:[%s4478_s1 + $0x270] sm:$0xff] }
  0x5e   :  { %2529 = vmatpush3.bf16.msra.mxu0 %v2526_v29  ;;  %v2608_v29 = vpack.c.bf16 %v767_v19, %v766_v16  ;;  %237 = vperm.xlu1 %2808, %v3704_v37   ;;  %v793_v16 = vld [vmem:[%s4478_s1 + $0x2f8] sm:$0xff]  ;;  %v676_v43 = vld [vmem:[%s4479_s5 + $0x10] sm:$0xff] }
  0x5f   :  { %2561 = vmatpush3.bf16.msra.mxu1 %v2560_v38  ;;  %2531 = vmatprep.subr.bf16.mxu0 %v2530_v39  ;;  %v755_v38 = vld [vmem:[%s4478_s1 + $0x1c8] sm:$0xff]  ;;  %v2626_v23 = vpack.c.bf16 %v793_v16, %v792_v15 }
  0x60   :  { %2563 = vmatprep.subr.bf16.mxu1 %v2562_v41  ;;  %v693_v41 = vld [vmem:[%s4479_s5 + $0x98] sm:$0xff]  ;;  %v2582_v46 = vpack.c.bf16 %v755_v38, %v754_v36  ;;  %v1138_v36 = vld [vmem:[%s4481_s2 + $0x100] sm:$0xff]  ;;  %v1139_v38 = vld [vmem:[%s4481_s2 + $0x108] sm:$0xff] }
  0x61   :  { %810 = vperm.xlu0 %2807, %v3670_v49   ;;  %v695_v15 = vld [vmem:[%s4479_s5 + $0xa8] sm:$0xff] }
  0x62   :  { %2533 = vmatpush3.bf16.msra.mxu0 %v2530_v39  ;;  %v786_v39 = vld [vmem:[%s4478_s1 + $0x2c0] sm:$0xff]  ;;  %805 = vperm.xlu1 %2808, %v3634_v33  }
  0x63   :  { %2565 = vmatpush3.bf16.msra.mxu1 %v2564_v47  ;;  %2567 = vmatprep.subr.bf16.mxu0 %v2566_v48  ;;  %v770_v47 = vld [vmem:[%s4478_s1 + $0x240] sm:$0xff]  ;;  %v692_v48 = vld [vmem:[%s4479_s5 + $0x90] sm:$0xff]  ;;  %v2614_v50 = vpack.c.bf16 %v787_v40, %v786_v39  ;;  %v1125_v40 = vld [vmem:[%s4481_s2 + $0x98] sm:$0xff] }
  0x64   :  { %2599 = vmatprep.subr.bf16.mxu1 %v2598_v51  ;;  %v771_v51 = vld [vmem:[%s4478_s1 + $0x248] sm:$0xff]  ;;  %v1124_v39 = vld [vmem:[%s4481_s2 + $0x90] sm:$0xff] }
  0x65   :  { %2369 = vmatmul.mubr.f32.vlgmr.msra.gmra.mrb[16].mxu0 %v53_v58  ;;  %v740_v58 = vld [vmem:[%s4478_s1 + $0x150] sm:$0xff] }
  0x66   :  { %883 = vmatmul.mubr.f32.vlgmr.msra.gmra.mrb[16].mxu1 %v674_v59  ;;  %2569 = vmatpush3.bf16.msra.mxu0 %v2568_v60  ;;  %v2616_v59 = vpack.c.bf16 %v771_v51, %v770_v47  ;;  %v2586_v60 = vpack.c.bf16 %v757_v53, %v756_v52  ;;  %v683_v47 = vld [vmem:[%s4479_s5 + $0x48] sm:$0xff]  ;;  %v2634_v51 = vpack.c.bf16 %v1125_v40, %v1124_v39  ;;  %v1140_v53 = vld [vmem:[%s4481_s2 + $0x110] sm:$0xff] }
  0x67   :  { %2601 = vmatpush3.bf16.msra.mxu1 %v2600_v62  ;;  %2371 = vmatprep.mubr.f32.mxu0 %v62_v61  ;;  %v741_v61 = vld [vmem:[%s4478_s1 + $0x158] sm:$0xff]  ;;  %v772_v62 = vld [vmem:[%s4478_s1 + $0x250] sm:$0xff]  ;;  %v1147_v39 = vld [vmem:[%s4481_s2 + $0x148] sm:$0xff] }
  0x68   :  { %2571 = vmatprep.subr.bf16.mxu0 %v2570_v2  ;;  %2603 = vmatprep.subr.bf16.mxu1 %v2602_v3  ;;  %v759_v2 = vld [vmem:[%s4478_s1 + $0x1e8] sm:$0xff]  ;;  %v790_v3 = vld [vmem:[%s4478_s1 + $0x2e0] sm:$0xff]  ;;  %v2588_v5 = vpack.c.bf16 %v741_v61, %v740_v58  ;;  %v2620_v6 = vpack.c.bf16 %v773_v0, %v772_v62  ;;  %v684_v62 = vld [vmem:[%s4479_s5 + $0x50] sm:$0xff] }
  0x69   :  { %2372 = vmatmul.mubr.f32.gmra.mrb[18].mxu0 %v71_v9  ;;  %887 = vmatprep.mubr.f32.mxu1 %v681_v12  ;;  %v2590_v7 = vpack.c.bf16 %v759_v2, %v758_v1  ;;  %v743_v9 = vld [vmem:[%s4478_s1 + $0x168] sm:$0xff]  ;;  %v2622_v11 = vpack.c.bf16 %v791_v4, %v790_v3  ;;  %v689_v0 = vld [vmem:[%s4479_s5 + $0x78] sm:$0xff]  ;;  %v1110_v1 = vld [vmem:[%s4481_s2 + $0x20] sm:$0xff] }
  0x6a   :  { %2573 = vmatpush3.bf16.msra.mxu0 %v2572_v10  ;;  %888 = vmatmul.mubr.f32.gmra.mrb[18].mxu1 %v680_v17  ;;  %v774_v10 = vld [vmem:[%s4478_s1 + $0x260] sm:$0xff]  ;;  %v775_v12 = vld [vmem:[%s4478_s1 + $0x268] sm:$0xff]  ;;  %v2592_v17 = vpack.c.bf16 %v743_v9, %v742_v8  ;;  %v688_v3 = vld [vmem:[%s4479_s5 + $0x70] sm:$0xff] }
  0x6b   :  { %2605 = vmatpush3.bf16.msra.mxu1 %v2604_v13  ;;  %2575 = vmatprep.subr.bf16.mxu0 %v2574_v14  ;;  %v760_v13 = vld [vmem:[%s4478_s1 + $0x1f0] sm:$0xff]  ;;  %v761_v14 = vld [vmem:[%s4478_s1 + $0x1f8] sm:$0xff]  ;;  %v1159_v58 = vld [vmem:[%s4481_s2 + $0x1a8] sm:$0xff] }
  0x6c   :  { %2607 = vmatprep.subr.bf16.mxu1 %v2606_v18  ;;  %892 = vmatprep.mubr.f32.mxu1 %v687_v24  ;;  %v2624_v18 = vpack.c.bf16 %v775_v12, %v774_v10  ;;  %v2594_v19 = vpack.c.bf16 %v761_v14, %v760_v13  ;;  %v777_v24 = vld [vmem:[%s4478_s1 + $0x278] sm:$0xff]  ;;  %v1111_v2 = vld [vmem:[%s4481_s2 + $0x28] sm:$0xff]  ;;  %v1128_v8 = vld [vmem:[%s4481_s2 + $0xb0] sm:$0xff] }
  0x6d   :  { %967 = vmatprep.mubr.f32.mxu0 %v677_v28  ;;  %v1155_v28 = vld [vmem:[%s4481_s2 + $0x188] sm:$0xff]  ;;  %815 = vperm.xlu1 %2808, %v3704_v37   ;;  %v1129_v9 = vld [vmem:[%s4481_s2 + $0xb8] sm:$0xff]  ;;  %v1160_v10 = vld [vmem:[%s4481_s2 + $0x1b0] sm:$0xff]  ;;  %v2640_v13 = vpack.c.bf16 %v1111_v2, %v1110_v1 }
  0x6e   :  { %2577 = vmatpush3.bf16.msra.mxu0 %v2576_v25  ;;  %893 = vmatmul.mubr.f32.gmra.mrb[20].mxu1 %v686_v32  ;;  %v1122_v25 = vld [vmem:[%s4481_s2 + $0x80] sm:$0xff]  ;;  %v2662_v35 = vpack.c.bf16 %v1155_v28, %v1154_v27  ;;  %v691_v12 = vld [vmem:[%s4479_s5 + $0x88] sm:$0xff]  ;;  %v697_v28 = vld [vmem:[%s4479_s5 + $0xb8] sm:$0xff] }
  0x6f   :  { %2609 = vmatpush3.bf16.msra.mxu1 %v2608_v29  ;;  %2579 = vmatprep.subr.bf16.mxu0 %v2578_v30  ;;  %v2596_v29 = vpack.c.bf16 %v745_v21, %v744_v20  ;;  %v2628_v30 = vpack.c.bf16 %v777_v24, %v776_v22  ;;  %v2630_v31 = vpack.c.bf16 %v1123_v26, %v1122_v25  ;;  %v1106_v32 = vld [vmem:[%s4481_s2] sm:$0xff]  ;;  %v1145_v22 = vld [vmem:[%s4481_s2 + $0x138] sm:$0xff]  ;;  %v1131_v24 = vld [vmem:[%s4481_s2 + $0xc8] sm:$0xff] }
  0x70   :  { %2611 = vmatprep.subr.bf16.mxu1 %v2610_v34  ;;  %897 = vmatprep.mubr.f32.mxu1 %v693_v41  ;;  %v1107_v34 = vld [vmem:[%s4481_s2 + $0x8] sm:$0xff]  ;;  %v1156_v41 = vld [vmem:[%s4481_s2 + $0x190] sm:$0xff]  ;;  %v690_v14 = vld [vmem:[%s4479_s5 + $0x80] sm:$0xff]  ;;  %v2642_v20 = vpack.c.bf16 %v1129_v9, %v1128_v8 }
  0x71   :  { %1213 = vperm.xlu1 %2808, %v3634_v33   ;;  %v1162_v25 = vld [vmem:[%s4481_s2 + $0x1c0] sm:$0xff]  ;;  %v1163_v26 = vld [vmem:[%s4481_s2 + $0x1c8] sm:$0xff]  ;;  %v1132_v40 = vld [vmem:[%s4481_s2 + $0xd0] sm:$0xff] }
  0x72   :  { %2581 = vmatpush3.bf16.msra.mxu0 %v2580_v42  ;;  %898 = vmatmul.mubr.f32.gmra.mrb[22].mxu1 %v692_v48  ;;  %v1157_v42 = vld [vmem:[%s4481_s2 + $0x198] sm:$0xff]  ;;  %v1108_v48 = vld [vmem:[%s4481_s2 + $0x10] sm:$0xff]  ;;  %v694_v27 = vld [vmem:[%s4479_s5 + $0xa0] sm:$0xff] }
  0x73   :  { %2613 = vmatpush3.bf16.msra.mxu1 %v2612_v45  ;;  %2583 = vmatprep.subr.bf16.mxu0 %v2582_v46  ;;  %v2632_v45 = vpack.c.bf16 %v1107_v34, %v1106_v32  ;;  %v2664_v46 = vpack.c.bf16 %v1139_v38, %v1138_v36  ;;  %v2666_v52 = vpack.c.bf16 %v1157_v42, %v1156_v41  ;;  %v1114_v34 = vld [vmem:[%s4481_s2 + $0x40] sm:$0xff]  ;;  %v1133_v41 = vld [vmem:[%s4481_s2 + $0xd8] sm:$0xff]  ;;  %v1164_v42 = vld [vmem:[%s4481_s2 + $0x1d0] sm:$0xff] }
  0x74   :  { %2615 = vmatprep.subr.bf16.mxu1 %v2614_v50  ;;  %1052 = vmatprep.mubr.f32.mxu1 %v679_v56  ;;  %v1109_v50 = vld [vmem:[%s4481_s2 + $0x18] sm:$0xff]  ;;  %v1127_v56 = vld [vmem:[%s4481_s2 + $0xa8] sm:$0xff]  ;;  %v1146_v36 = vld [vmem:[%s4481_s2 + $0x140] sm:$0xff]  ;;  %v2678_v38 = vpack.c.bf16 %v1163_v26, %v1162_v25 }
  0x75   :  { %1223 = vperm.xlu1 %2808, %v3704_v37   ;;  %v2636_v61 = vpack.c.bf16 %v1109_v50, %v1108_v48  ;;  %v2638_v4 = vpack.c.bf16 %v1127_v56, %v1126_v55  ;;  %v2650_v48 = vpack.c.bf16 %v1133_v41, %v1132_v40  ;;  %v1116_v50 = vld [vmem:[%s4481_s2 + $0x50] sm:$0xff]  ;;  %v1134_v55 = vld [vmem:[%s4481_s2 + $0xe0] sm:$0xff]  ;;  %v1135_v56 = vld [vmem:[%s4481_s2 + $0xe8] sm:$0xff] }
  0x76   :  { %2585 = vmatpush3.bf16.msra.mxu0 %v2584_v57  ;;  %v1158_v57 = vld [vmem:[%s4481_s2 + $0x1a0] sm:$0xff]  ;;  %v1151_v1 = vld [vmem:[%s4481_s2 + $0x168] sm:$0xff]  ;;  %v1136_v2 = vld [vmem:[%s4481_s2 + $0xf0] sm:$0xff] }
  0x77   :  { %2617 = vmatpush3.bf16.msra.mxu1 %v2616_v59  ;;  %2587 = vmatprep.subr.bf16.mxu0 %v2586_v60  ;;  %v682_v59 = vld [vmem:[%s4479_s5 + $0x40] sm:$0xff]  ;;  %v685_v60 = vld [vmem:[%s4479_s5 + $0x58] sm:$0xff]  ;;  %v1120_v9 = vld [vmem:[%s4481_s2 + $0x70] sm:$0xff] }
  0x78   :  { %2619 = vmatprep.subr.bf16.mxu1 %v2618_v63  ;;  %v2668_v63 = vpack.c.bf16 %v1141_v54, %v1140_v53  ;;  %v1149_v54 = vld [vmem:[%s4481_s2 + $0x158] sm:$0xff]  ;;  %v1188_v25 = vld [vmem:[%s4481_s2 + $0x290] sm:$0xff]  ;;  %v1190_v41 = vld [vmem:[%s4481_s2 + $0x2a0] sm:$0xff] }
  0x79   :  { %1580 = vperm.xlu1 %2808, %v3634_v33   ;;  %v1189_v26 = vld [vmem:[%s4481_s2 + $0x298] sm:$0xff] }
  0x7a   :  { %2589 = vmatpush3.bf16.msra.mxu0 %v2588_v5  ;;  %v2670_v5 = vpack.c.bf16 %v1159_v58, %v1158_v57  ;;  %v1166_v57 = vld [vmem:[%s4481_s2 + $0x1e0] sm:$0xff]  ;;  %v1167_v58 = vld [vmem:[%s4481_s2 + $0x1e8] sm:$0xff]  ;;  %v1508_v40 = vld [vmem:[%s4483_s3 + $0x18] sm:$0xff] }
  0x7b   :  { %2621 = vmatpush3.bf16.msra.mxu1 %v2620_v6  ;;  %2591 = vmatprep.subr.bf16.mxu0 %v2590_v7  ;;  %v1142_v6 = vld [vmem:[%s4481_s2 + $0x120] sm:$0xff]  ;;  %v1143_v7 = vld [vmem:[%s4481_s2 + $0x128] sm:$0xff]  ;;  %v2686_v33 = vpack.c.bf16 %v1167_v58, %v1166_v57  ;;  %v1192_v58 = vld [vmem:[%s4481_s2 + $0x2b0] sm:$0xff] }
  0x7c   :  { %2623 = vmatprep.subr.bf16.mxu1 %v2622_v11  ;;  %v1161_v11 = vld [vmem:[%s4481_s2 + $0x1b8] sm:$0xff]  ;;  %v2672_v16 = vpack.c.bf16 %v1143_v7, %v1142_v6  ;;  %v1510_v57 = vld [vmem:[%s4483_s3 + $0x28] sm:$0xff] }
  0x7d   :  { %v2674_v21 = vpack.c.bf16 %v1161_v11, %v1160_v10  ;;  %1590 = vperm.xlu1 %2808, %v3704_v37   ;;  %v1121_v10 = vld [vmem:[%s4481_s2 + $0x78] sm:$0xff]  ;;  %v1152_v11 = vld [vmem:[%s4481_s2 + $0x170] sm:$0xff] }
  0x7e   :  { %2593 = vmatpush3.bf16.msra.mxu0 %v2592_v17  ;;  %v1112_v17 = vld [vmem:[%s4481_s2 + $0x30] sm:$0xff] }
  0x7f   :  { %2625 = vmatpush3.bf16.msra.mxu1 %v2624_v18  ;;  %2595 = vmatprep.subr.bf16.mxu0 %v2594_v19  ;;  %v1113_v18 = vld [vmem:[%s4481_s2 + $0x38] sm:$0xff]  ;;  %v1144_v19 = vld [vmem:[%s4481_s2 + $0x130] sm:$0xff] }
  0x80   :  { %2627 = vmatprep.subr.bf16.mxu1 %v2626_v23  ;;  %v1130_v23 = vld [vmem:[%s4481_s2 + $0xc0] sm:$0xff] }
  0x81   :  { %v2646_v32 = vpack.c.bf16 %v1131_v24, %v1130_v23  ;;  %v1506_v24 = vld [vmem:[%s4483_s3 + $0x8] sm:$0xff] }
  0x82   :  { %2597 = vmatpush3.bf16.msra.mxu0 %v2596_v29  ;;  %v2644_v29 = vpack.c.bf16 %v1113_v18, %v1112_v17  ;;  %v2660_v17 = vpack.c.bf16 %v1121_v10, %v1120_v9  ;;  %v1194_v9 = vld [vmem:[%s4481_s2 + $0x2c0] sm:$0xff]  ;;  %v1195_v10 = vld [vmem:[%s4481_s2 + $0x2c8] sm:$0xff] }
  0x83   :  { %2629 = vmatpush3.bf16.msra.mxu1 %v2628_v30  ;;  %2631 = vmatprep.subr.bf16.mxu0 %v2630_v31  ;;  %v696_v30 = vld [vmem:[%s4479_s5 + $0xb0] sm:$0xff]  ;;  %v2676_v31 = vpack.c.bf16 %v1145_v22, %v1144_v19  ;;  %v1505_v22 = vld [vmem:[%s4483_s3] sm:$0xff] }
  0x84   :  { %2663 = vmatprep.subr.bf16.mxu1 %v2662_v35  ;;  %v1115_v35 = vld [vmem:[%s4481_s2 + $0x48] sm:$0xff] }
  0x85   :  { %968 = vmatmul.mubr.f32.vlgmr.msra.gmra.mrb[20].mxu0 %v676_v43  ;;  %v1165_v43 = vld [vmem:[%s4481_s2 + $0x1d8] sm:$0xff] }
  0x86   :  { %1053 = vmatmul.mubr.f32.vlgmr.msra.gmra.mrb[24].mxu1 %v678_v44  ;;  %2633 = vmatpush3.bf16.msra.mxu0 %v2632_v45  ;;  %v1083_v44 = vld [vmem:[%s4482_s6 + $0x8] sm:$0xff]  ;;  %v2648_v45 = vpack.c.bf16 %v1115_v35, %v1114_v34  ;;  %v2682_v53 = vpack.c.bf16 %v1165_v43, %v1164_v42  ;;  %v2698_v34 = vpack.c.bf16 %v1189_v26, %v1188_v25  ;;  %v1172_v35 = vld [vmem:[%s4481_s2 + $0x210] sm:$0xff]  ;;  %v1525_v43 = vld [vmem:[%s4483_s3 + $0xa0] sm:$0xff] }
  0x87   :  { %2665 = vmatpush3.bf16.msra.mxu1 %v2664_v46  ;;  %972 = vmatprep.mubr.f32.mxu0 %v683_v47  ;;  %v1085_v46 = vld [vmem:[%s4482_s6 + $0x18] sm:$0xff]  ;;  %v2680_v47 = vpack.c.bf16 %v1147_v39, %v1146_v36  ;;  %v1191_v42 = vld [vmem:[%s4481_s2 + $0x2a8] sm:$0xff]  ;;  %v1531_v26 = vld [vmem:[%s4483_s3 + $0xd0] sm:$0xff] }
  0x88   :  { %2635 = vmatprep.subr.bf16.mxu0 %v2634_v51  ;;  %2667 = vmatprep.subr.bf16.mxu1 %v2666_v52  ;;  %v1117_v51 = vld [vmem:[%s4481_s2 + $0x58] sm:$0xff]  ;;  %v1148_v52 = vld [vmem:[%s4481_s2 + $0x150] sm:$0xff] }
  0x89   :  { %973 = vmatmul.mubr.f32.gmra.mrb[22].mxu0 %v682_v59  ;;  %1057 = vmatprep.mubr.f32.mxu1 %v685_v60  ;;  %v2652_v59 = vpack.c.bf16 %v1117_v51, %v1116_v50  ;;  %v2684_v60 = vpack.c.bf16 %v1149_v54, %v1148_v52  ;;  %v1173_v36 = vld [vmem:[%s4481_s2 + $0x218] sm:$0xff]  ;;  %v1091_v50 = vld [vmem:[%s4482_s6 + $0x48] sm:$0xff]  ;;  %v2702_v52 = vpack.c.bf16 %v1191_v42, %v1190_v41  ;;  %v1509_v54 = vld [vmem:[%s4483_s3 + $0x20] sm:$0xff] }
  0x8a   :  { %2637 = vmatpush3.bf16.msra.mxu0 %v2636_v61  ;;  %1058 = vmatmul.mubr.f32.gmra.mrb[26].mxu1 %v684_v62  ;;  %v2654_v61 = vpack.c.bf16 %v1135_v56, %v1134_v55  ;;  %v1118_v62 = vld [vmem:[%s4481_s2 + $0x60] sm:$0xff]  ;;  %v1197_v25 = vld [vmem:[%s4481_s2 + $0x2d8] sm:$0xff]  ;;  %v1199_v42 = vld [vmem:[%s4481_s2 + $0x2e8] sm:$0xff] }
  0x8b   :  { %2669 = vmatpush3.bf16.msra.mxu1 %v2668_v63  ;;  %977 = vmatprep.mubr.f32.mxu0 %v689_v0  ;;  %v1119_v63 = vld [vmem:[%s4481_s2 + $0x68] sm:$0xff]  ;;  %v1150_v0 = vld [vmem:[%s4481_s2 + $0x160] sm:$0xff] }
  0x8c   :  { %2639 = vmatprep.subr.bf16.mxu0 %v2638_v4  ;;  %2671 = vmatprep.subr.bf16.mxu1 %v2670_v5  ;;  %v1168_v4 = vld [vmem:[%s4481_s2 + $0x1f0] sm:$0xff]  ;;  %v1169_v5 = vld [vmem:[%s4481_s2 + $0x1f8] sm:$0xff]  ;;  %v2656_v6 = vpack.c.bf16 %v1119_v63, %v1118_v62  ;;  %v2688_v7 = vpack.c.bf16 %v1151_v1, %v1150_v0  ;;  %v1090_v55 = vld [vmem:[%s4482_s6 + $0x40] sm:$0xff] }
  0x8d   :  { %978 = vmatmul.mubr.f32.gmra.mrb[24].mxu0 %v688_v3  ;;  %1062 = vmatprep.mubr.f32.mxu1 %v691_v12  ;;  %v1137_v3 = vld [vmem:[%s4481_s2 + $0xf8] sm:$0xff]  ;;  %v2690_v37 = vpack.c.bf16 %v1169_v5, %v1168_v4  ;;  %v1095_v62 = vld [vmem:[%s4482_s6 + $0x68] sm:$0xff]  ;;  %v1176_v0 = vld [vmem:[%s4481_s2 + $0x230] sm:$0xff] }
  0x8e   :  { %2641 = vmatpush3.bf16.msra.mxu0 %v2640_v13  ;;  %1063 = vmatmul.mubr.f32.gmra.mrb[28].mxu1 %v690_v14  ;;  %v2658_v8 = vpack.c.bf16 %v1137_v3, %v1136_v2  ;;  %v1153_v12 = vld [vmem:[%s4481_s2 + $0x178] sm:$0xff]  ;;  %v1186_v13 = vld [vmem:[%s4481_s2 + $0x280] sm:$0xff]  ;;  %v1187_v14 = vld [vmem:[%s4481_s2 + $0x288] sm:$0xff]  ;;  %v2736_v2 = vpack.c.bf16 %v1510_v57, %v1509_v54 }
  0x8f   :  { %2673 = vmatpush3.bf16.msra.mxu1 %v2672_v16  ;;  %982 = vmatprep.mubr.f32.mxu0 %v695_v15  ;;  %v1521_v15 = vld [vmem:[%s4483_s3 + $0x80] sm:$0xff]  ;;  %v1522_v16 = vld [vmem:[%s4483_s3 + $0x88] sm:$0xff]  ;;  %v2692_v18 = vpack.c.bf16 %v1153_v12, %v1152_v11  ;;  %v2694_v19 = vpack.c.bf16 %v1187_v14, %v1186_v13  ;;  %v1097_v1 = vld [vmem:[%s4482_s6 + $0x78] sm:$0xff] }
  0x90   :  { %2643 = vmatprep.subr.bf16.mxu0 %v2642_v20  ;;  %2675 = vmatprep.subr.bf16.mxu1 %v2674_v21  ;;  %v1170_v20 = vld [vmem:[%s4481_s2 + $0x200] sm:$0xff]  ;;  %v1171_v21 = vld [vmem:[%s4481_s2 + $0x208] sm:$0xff]  ;;  %v2726_v23 = vpack.c.bf16 %v1522_v16, %v1521_v15  ;;  %v1177_v4 = vld [vmem:[%s4481_s2 + $0x238] sm:$0xff] }
  0x91   :  { %983 = vmatmul.mubr.f32.gmra.mrb[26].mxu0 %v694_v27  ;;  %1067 = vmatprep.mubr.f32.mxu1 %v697_v28  ;;  %v1523_v27 = vld [vmem:[%s4483_s3 + $0x90] sm:$0xff]  ;;  %v1524_v28 = vld [vmem:[%s4483_s3 + $0x98] sm:$0xff]  ;;  %v1529_v11 = vld [vmem:[%s4483_s3 + $0xc0] sm:$0xff]  ;;  %v2708_v13 = vpack.c.bf16 %v1177_v4, %v1176_v0 }
  0x92   :  { %2645 = vmatpush3.bf16.msra.mxu0 %v2644_v29  ;;  %1068 = vmatmul.mubr.f32.gmra.mrb[30].mxu1 %v696_v30  ;;  %v1082_v29 = vld [vmem:[%s4482_s6] sm:$0xff]  ;;  %v1084_v30 = vld [vmem:[%s4482_s6 + $0x10] sm:$0xff]  ;;  %v2730_v39 = vpack.c.bf16 %v1524_v28, %v1523_v27  ;;  %v1101_v12 = vld [vmem:[%s4482_s6 + $0x98] sm:$0xff] }
  0x93   :  { %2677 = vmatpush3.bf16.msra.mxu1 %v2676_v31  ;;  %2647 = vmatprep.subr.bf16.mxu0 %v2646_v32  ;;  %v2696_v31 = vpack.c.bf16 %v1171_v21, %v1170_v20  ;;  %v2728_v32 = vpack.c.bf16 %v1506_v24, %v1505_v22  ;;  %v1511_v5 = vld [vmem:[%s4483_s3 + $0x30] sm:$0xff]  ;;  %v1178_v14 = vld [vmem:[%s4481_s2 + $0x240] sm:$0xff]  ;;  %v1103_v16 = vld [vmem:[%s4482_s6 + $0xa8] sm:$0xff] }
  0x94   :  { %2679 = vmatprep.subr.bf16.mxu1 %v2678_v38  ;;  %1290 = vmatprep.mubr.f32.mxu0 %v1083_v44  ;;  %v1507_v38 = vld [vmem:[%s4483_s3 + $0x10] sm:$0xff]  ;;  %v1526_v44 = vld [vmem:[%s4483_s3 + $0xa8] sm:$0xff]  ;;  %v1513_v20 = vld [vmem:[%s4483_s3 + $0x40] sm:$0xff] }
  0x95   :  { %1375 = vmatprep.mubr.f32.mxu1 %v1085_v46  ;;  %v2700_v46 = vpack.c.bf16 %v1173_v36, %v1172_v35  ;;  %v2732_v51 = vpack.c.bf16 %v1508_v40, %v1507_v38  ;;  %v2734_v56 = vpack.c.bf16 %v1526_v44, %v1525_v43  ;;  %v1100_v15 = vld [vmem:[%s4482_s6 + $0x90] sm:$0xff]  ;;  %v1102_v21 = vld [vmem:[%s4482_s6 + $0xa0] sm:$0xff]  ;;  %v1532_v27 = vld [vmem:[%s4483_s3 + $0xd8] sm:$0xff] }
  0x96   :  { %2649 = vmatpush3.bf16.msra.mxu0 %v2648_v45  ;;  %v1089_v45 = vld [vmem:[%s4482_s6 + $0x38] sm:$0xff]  ;;  %v1196_v24 = vld [vmem:[%s4481_s2 + $0x2d0] sm:$0xff]  ;;  %v1087_v28 = vld [vmem:[%s4482_s6 + $0x28] sm:$0xff] }
  0x97   :  { %2681 = vmatpush3.bf16.msra.mxu1 %v2680_v47  ;;  %2651 = vmatprep.subr.bf16.mxu0 %v2650_v48  ;;  %v1174_v47 = vld [vmem:[%s4481_s2 + $0x220] sm:$0xff]  ;;  %v1088_v48 = vld [vmem:[%s4482_s6 + $0x30] sm:$0xff]  ;;  %v1181_v36 = vld [vmem:[%s4481_s2 + $0x258] sm:$0xff] }
  0x98   :  { %2683 = vmatprep.subr.bf16.mxu1 %v2682_v53  ;;  %v1175_v53 = vld [vmem:[%s4481_s2 + $0x228] sm:$0xff]  ;;  %v1180_v35 = vld [vmem:[%s4481_s2 + $0x250] sm:$0xff]  ;;  %v1516_v40 = vld [vmem:[%s4483_s3 + $0x58] sm:$0xff] }
  0x99   :  { %v2704_v63 = vpack.c.bf16 %v1175_v53, %v1174_v47  ;;  %v1515_v38 = vld [vmem:[%s4483_s3 + $0x50] sm:$0xff]  ;;  %v1198_v41 = vld [vmem:[%s4481_s2 + $0x2e0] sm:$0xff]  ;;  %v1534_v44 = vld [vmem:[%s4483_s3 + $0xe8] sm:$0xff] }
  0x9a   :  { %2653 = vmatpush3.bf16.msra.mxu0 %v2652_v59  ;;  %v1193_v59 = vld [vmem:[%s4481_s2 + $0x2b8] sm:$0xff]  ;;  %v1533_v43 = vld [vmem:[%s4483_s3 + $0xe0] sm:$0xff]  ;;  %v2718_v47 = vpack.c.bf16 %v1199_v42, %v1198_v41  ;;  %v1518_v53 = vld [vmem:[%s4483_s3 + $0x68] sm:$0xff] }
  0x9b   :  { %2685 = vmatpush3.bf16.msra.mxu1 %v2684_v60  ;;  %2655 = vmatprep.subr.bf16.mxu0 %v2654_v61  ;;  %v1527_v60 = vld [vmem:[%s4483_s3 + $0xb0] sm:$0xff]  ;;  %v1528_v61 = vld [vmem:[%s4483_s3 + $0xb8] sm:$0xff]  ;;  %v2706_v3 = vpack.c.bf16 %v1193_v59, %v1192_v58  ;;  %v1501_v42 = vld [vmem:[%s4484_s7 + $0x60] sm:$0xff] }
  0x9c   :  { %2687 = vmatprep.subr.bf16.mxu1 %v2686_v33  ;;  %v1094_v33 = vld [vmem:[%s4482_s6 + $0x60] sm:$0xff]  ;;  %v1200_v54 = vld [vmem:[%s4481_s2 + $0x2f0] sm:$0xff]  ;;  %v1536_v57 = vld [vmem:[%s4483_s3 + $0xf8] sm:$0xff] }
  0x9e   :  { %2657 = vmatpush3.bf16.msra.mxu0 %v2656_v6  ;;  %v1096_v6 = vld [vmem:[%s4482_s6 + $0x70] sm:$0xff] }
  0x9f   :  { %2689 = vmatpush3.bf16.msra.mxu1 %v2688_v7  ;;  %2659 = vmatprep.subr.bf16.mxu0 %v2658_v8  ;;  %v2738_v7 = vpack.c.bf16 %v1528_v61, %v1527_v60  ;;  %v1512_v8 = vld [vmem:[%s4483_s3 + $0x38] sm:$0xff]  ;;  %v1184_v61 = vld [vmem:[%s4481_s2 + $0x270] sm:$0xff] }
  0xa0   :  { %2691 = vmatprep.subr.bf16.mxu1 %v2690_v37  ;;  %v1530_v37 = vld [vmem:[%s4483_s3 + $0xc8] sm:$0xff] }
  0xa1   :  { %v2742_v22 = vpack.c.bf16 %v1530_v37, %v1529_v11  ;;  %v1489_v37 = vld [vmem:[%s4484_s7] sm:$0xff] }
  0xa2   :  { %2661 = vmatpush3.bf16.msra.mxu0 %v2660_v17  ;;  %v2740_v17 = vpack.c.bf16 %v1512_v8, %v1511_v5  ;;  %v1555_v8 = vld [vmem:[%s4483_s3 + $0x190] sm:$0xff] }
  0xa3   :  { %2693 = vmatpush3.bf16.msra.mxu1 %v2692_v18  ;;  %2695 = vmatprep.subr.bf16.mxu0 %v2694_v19  ;;  %v2710_v18 = vpack.c.bf16 %v1195_v10, %v1194_v9  ;;  %v1179_v19 = vld [vmem:[%s4481_s2 + $0x248] sm:$0xff]  ;;  %v1556_v9 = vld [vmem:[%s4483_s3 + $0x198] sm:$0xff]  ;;  %v1086_v10 = vld [vmem:[%s4482_s6 + $0x20] sm:$0xff] }
  0xa4   :  { %2727 = vmatprep.subr.bf16.mxu1 %v2726_v23  ;;  %v1514_v23 = vld [vmem:[%s4483_s3 + $0x48] sm:$0xff] }
  0xa5   :  { %1291 = vmatmul.mubr.f32.vlgmr.msra.gmra.mrb[28].mxu0 %v1082_v29  ;;  %v2712_v29 = vpack.c.bf16 %v1179_v19, %v1178_v14  ;;  %v2762_v14 = vpack.c.bf16 %v1556_v9, %v1555_v8  ;;  %v1503_v8 = vld [vmem:[%s4484_s7 + $0x70] sm:$0xff] }
  0xa6   :  { %1376 = vmatmul.mubr.f32.vlgmr.msra.gmra.mrb[32].mxu1 %v1084_v30  ;;  %2697 = vmatpush3.bf16.msra.mxu0 %v2696_v31  ;;  %v1490_v30 = vld [vmem:[%s4484_s7 + $0x8] sm:$0xff]  ;;  %v1202_v31 = vld [vmem:[%s4480_s8] sm:$0xff] }
  0xa7   :  { %2729 = vmatpush3.bf16.msra.mxu1 %v2728_v32  ;;  %2699 = vmatprep.subr.bf16.mxu0 %v2698_v34  ;;  %v2744_v32 = vpack.c.bf16 %v1514_v23, %v1513_v20  ;;  %v2714_v34 = vpack.c.bf16 %v1197_v25, %v1196_v24  ;;  %v1493_v20 = vld [vmem:[%s4484_s7 + $0x20] sm:$0xff]  ;;  %v1099_v23 = vld [vmem:[%s4482_s6 + $0x88] sm:$0xff] }
  0xa8   :  { %2731 = vmatprep.subr.bf16.mxu1 %v2730_v39  ;;  %1295 = vmatprep.mubr.f32.mxu0 %v1089_v45  ;;  %v2746_v39 = vpack.c.bf16 %v1532_v27, %v1531_v26  ;;  %v2716_v45 = vpack.c.bf16 %v1181_v36, %v1180_v35  ;;  %v1498_v25 = vld [vmem:[%s4484_s7 + $0x48] sm:$0xff]  ;;  %v1559_v26 = vld [vmem:[%s4483_s3 + $0x1b0] sm:$0xff]  ;;  %v1560_v27 = vld [vmem:[%s4483_s3 + $0x1b8] sm:$0xff] }
  0xa9   :  { %1296 = vmatmul.mubr.f32.gmra.mrb[30].mxu0 %v1088_v48  ;;  %1380 = vmatprep.mubr.f32.mxu1 %v1091_v50  ;;  %v1182_v48 = vld [vmem:[%s4481_s2 + $0x260] sm:$0xff]  ;;  %v1183_v50 = vld [vmem:[%s4481_s2 + $0x268] sm:$0xff]  ;;  %v2770_v35 = vpack.c.bf16 %v1560_v27, %v1559_v26 }
  0xaa   :  { %2701 = vmatpush3.bf16.msra.mxu0 %v2700_v46  ;;  %1381 = vmatmul.mubr.f32.gmra.mrb[34].mxu1 %v1090_v55  ;;  %v2748_v46 = vpack.c.bf16 %v1516_v40, %v1515_v38  ;;  %v1201_v55 = vld [vmem:[%s4481_s2 + $0x2f8] sm:$0xff]  ;;  %v2720_v58 = vpack.c.bf16 %v1183_v50, %v1182_v48  ;;  %v1561_v36 = vld [vmem:[%s4483_s3 + $0x1c0] sm:$0xff]  ;;  %v1562_v38 = vld [vmem:[%s4483_s3 + $0x1c8] sm:$0xff] }
  0xab   :  { %2733 = vmatpush3.bf16.msra.mxu1 %v2732_v51  ;;  %2703 = vmatprep.subr.bf16.mxu0 %v2702_v52  ;;  %v1517_v51 = vld [vmem:[%s4483_s3 + $0x60] sm:$0xff]  ;;  %v2750_v52 = vpack.c.bf16 %v1534_v44, %v1533_v43  ;;  %v2722_v60 = vpack.c.bf16 %v1201_v55, %v1200_v54  ;;  %v1104_v40 = vld [vmem:[%s4482_s6 + $0xb0] sm:$0xff]  ;;  %v2774_v43 = vpack.c.bf16 %v1562_v38, %v1561_v36  ;;  %v1492_v48 = vld [vmem:[%s4484_s7 + $0x18] sm:$0xff] }
  0xac   :  { %2735 = vmatprep.subr.bf16.mxu1 %v2734_v56  ;;  %1300 = vmatprep.mubr.f32.mxu0 %v1095_v62  ;;  %v1535_v56 = vld [vmem:[%s4483_s3 + $0xf0] sm:$0xff]  ;;  %v2752_v59 = vpack.c.bf16 %v1518_v53, %v1517_v51  ;;  %v1185_v62 = vld [vmem:[%s4481_s2 + $0x278] sm:$0xff]  ;;  %v1545_v44 = vld [vmem:[%s4483_s3 + $0x140] sm:$0xff] }
  0xad   :  { %1301 = vmatmul.mubr.f32.gmra.mrb[32].mxu0 %v1094_v33  ;;  %1385 = vmatprep.mubr.f32.mxu1 %v1097_v1  ;;  %v2754_v0 = vpack.c.bf16 %v1536_v57, %v1535_v56  ;;  %v1520_v33 = vld [vmem:[%s4483_s3 + $0x78] sm:$0xff]  ;;  %v1553_v1 = vld [vmem:[%s4483_s3 + $0x180] sm:$0xff]  ;;  %v1547_v53 = vld [vmem:[%s4483_s3 + $0x150] sm:$0xff] }
  0xae   :  { %2705 = vmatpush3.bf16.msra.mxu0 %v2704_v63  ;;  %1386 = vmatmul.mubr.f32.gmra.mrb[36].mxu1 %v1096_v6  ;;  %v1519_v63 = vld [vmem:[%s4483_s3 + $0x70] sm:$0xff]  ;;  %v1537_v6 = vld [vmem:[%s4483_s3 + $0x100] sm:$0xff]  ;;  %v1500_v51 = vld [vmem:[%s4484_s7 + $0x58] sm:$0xff] }
  0xaf   :  { %2737 = vmatpush3.bf16.msra.mxu1 %v2736_v2  ;;  %2707 = vmatprep.subr.bf16.mxu0 %v2706_v3  ;;  %v1554_v2 = vld [vmem:[%s4483_s3 + $0x188] sm:$0xff]  ;;  %v2724_v3 = vpack.c.bf16 %v1185_v62, %v1184_v61  ;;  %v2756_v4 = vpack.c.bf16 %v1520_v33, %v1519_v63  ;;  %v1548_v54 = vld [vmem:[%s4483_s3 + $0x158] sm:$0xff]  ;;  %v1565_v55 = vld [vmem:[%s4483_s3 + $0x1e0] sm:$0xff] }
  0xb0   :  { %2739 = vmatprep.subr.bf16.mxu1 %v2738_v7  ;;  %1305 = vmatprep.mubr.f32.mxu0 %v1101_v12  ;;  %v2758_v5 = vpack.c.bf16 %v1554_v2, %v1553_v1  ;;  %v1538_v7 = vld [vmem:[%s4483_s3 + $0x108] sm:$0xff]  ;;  %v1539_v12 = vld [vmem:[%s4483_s3 + $0x110] sm:$0xff]  ;;  %v2780_v57 = vpack.c.bf16 %v1548_v54, %v1547_v53  ;;  %v1568_v62 = vld [vmem:[%s4483_s3 + $0x1f8] sm:$0xff] }
  0xb1   :  { %1306 = vmatmul.mubr.f32.gmra.mrb[34].mxu0 %v1100_v15  ;;  %1390 = vmatprep.mubr.f32.mxu1 %v1103_v16  ;;  %v2760_v11 = vpack.c.bf16 %v1538_v7, %v1537_v6  ;;  %v1494_v15 = vld [vmem:[%s4484_s7 + $0x28] sm:$0xff]  ;;  %v1557_v16 = vld [vmem:[%s4483_s3 + $0x1a0] sm:$0xff]  ;;  %v1567_v61 = vld [vmem:[%s4483_s3 + $0x1f0] sm:$0xff] }
  0xb2   :  { %2709 = vmatpush3.bf16.msra.mxu0 %v2708_v13  ;;  %1391 = vmatmul.mubr.f32.gmra.mrb[38].mxu1 %v1102_v21  ;;  %v1093_v13 = vld [vmem:[%s4482_s6 + $0x58] sm:$0xff]  ;;  %v1541_v21 = vld [vmem:[%s4483_s3 + $0x120] sm:$0xff]  ;;  %v1566_v56 = vld [vmem:[%s4483_s3 + $0x1e8] sm:$0xff] }
  0xb3   :  { %2741 = vmatpush3.bf16.msra.mxu1 %v2740_v17  ;;  %2711 = vmatprep.subr.bf16.mxu0 %v2710_v18  ;;  %v1558_v17 = vld [vmem:[%s4483_s3 + $0x1a8] sm:$0xff]  ;;  %v1092_v18 = vld [vmem:[%s4482_s6 + $0x50] sm:$0xff]  ;;  %v1552_v1 = vld [vmem:[%s4483_s3 + $0x178] sm:$0xff] }
  0xb4   :  { %2743 = vmatprep.subr.bf16.mxu1 %v2742_v22  ;;  %1460 = vmatprep.mubr.f32.mxu0 %v1087_v28  ;;  %v1542_v22 = vld [vmem:[%s4483_s3 + $0x128] sm:$0xff]  ;;  %v2766_v24 = vpack.c.bf16 %v1558_v17, %v1557_v16  ;;  %v1098_v28 = vld [vmem:[%s4482_s6 + $0x80] sm:$0xff]  ;;  %v1551_v33 = vld [vmem:[%s4483_s3 + $0x170] sm:$0xff] }
  0xb5   :  { %1657 = vmatprep.mubr.f32.mxu1 %v1490_v30  ;;  %1208 = vperm.xlu0 %2807, %v1202_v31   ;;  %v1497_v30 = vld [vmem:[%s4484_s7 + $0x40] sm:$0xff]  ;;  %v2788_v2 = vpack.c.bf16 %v1552_v1, %v1551_v33  ;;  %v1504_v6 = vld [vmem:[%s4484_s7 + $0x78] sm:$0xff]  ;;  %v1495_v7 = vld [vmem:[%s4484_s7 + $0x30] sm:$0xff] }
  0xb6   :  { %2713 = vmatpush3.bf16.msra.mxu0 %v2712_v29  ;;  %v2768_v29 = vpack.c.bf16 %v1542_v22, %v1541_v21 }
  0xb7   :  { %2745 = vmatpush3.bf16.msra.mxu1 %v2744_v32  ;;  %2715 = vmatprep.subr.bf16.mxu0 %v2714_v34  ;;  %v1544_v32 = vld [vmem:[%s4483_s3 + $0x138] sm:$0xff] }
  0xb8   :  { %2747 = vmatprep.subr.bf16.mxu1 %v2746_v39  ;;  %v1105_v34 = vld [vmem:[%s4482_s6 + $0xb8] sm:$0xff]  ;;  %v1502_v39 = vld [vmem:[%s4484_s7 + $0x68] sm:$0xff] }
  0xb9   :  { %1218 = vperm.xlu0 %2807, %v3670_v49  }
  0xba   :  { %2717 = vmatpush3.bf16.msra.mxu0 %v2716_v45  ;;  %v1546_v45 = vld [vmem:[%s4483_s3 + $0x148] sm:$0xff] }
  0xbb   :  { %2749 = vmatpush3.bf16.msra.mxu1 %v2748_v46  ;;  %2719 = vmatprep.subr.bf16.mxu0 %v2718_v47  ;;  %v1563_v46 = vld [vmem:[%s4483_s3 + $0x1d0] sm:$0xff]  ;;  %v1564_v47 = vld [vmem:[%s4483_s3 + $0x1d8] sm:$0xff]  ;;  %v2776_v50 = vpack.c.bf16 %v1546_v45, %v1545_v44 }
  0xbc   :  { %2751 = vmatprep.subr.bf16.mxu1 %v2750_v52  ;;  %v2778_v52 = vpack.c.bf16 %v1564_v47, %v1563_v46 }
  0xbd   :  { %1575 = vperm.xlu0 %2807, %v1202_v31   ;;  %v1543_v31 = vld [vmem:[%s4483_s3 + $0x130] sm:$0xff] }
  0xbe   :  { %2721 = vmatpush3.bf16.msra.mxu0 %v2720_v58  ;;  %v2772_v41 = vpack.c.bf16 %v1544_v32, %v1543_v31  ;;  %v2782_v58 = vpack.c.bf16 %v1566_v56, %v1565_v55 }
  0xbf   :  { %2753 = vmatpush3.bf16.msra.mxu1 %v2752_v59  ;;  %2723 = vmatprep.subr.bf16.mxu0 %v2722_v60  ;;  %v1549_v59 = vld [vmem:[%s4483_s3 + $0x160] sm:$0xff]  ;;  %v1550_v60 = vld [vmem:[%s4483_s3 + $0x168] sm:$0xff] }
  0xc0   :  { %2755 = vmatprep.subr.bf16.mxu1 %v2754_v0  ;;  %v2784_v63 = vpack.c.bf16 %v1550_v60, %v1549_v59  ;;  %v2786_v0 = vpack.c.bf16 %v1568_v62, %v1567_v61 }
  0xc1   :  { %1585 = vperm.xlu0 %2807, %v3670_v49   ;;  %v1540_v49 = vld [vmem:[%s4483_s3 + $0x118] sm:$0xff] }
  0xc2   :  { %2725 = vmatpush3.bf16.msra.mxu0 %v2724_v3  ;;  %v2764_v19 = vpack.c.bf16 %v1540_v49, %v1539_v12  ;;  %v1491_v3 = vld [vmem:[%s4484_s7 + $0x10] sm:$0xff] }
  0xc3   :  { %2757 = vmatpush3.bf16.msra.mxu1 %v2756_v4  ;;  %2759 = vmatprep.subr.bf16.mxu0 %v2758_v5  ;;  %v1499_v4 = vld [vmem:[%s4484_s7 + $0x50] sm:$0xff] }
  0xc4   :  { %2790 = vmatprep.subr.bf16.mxu1 %v2758_v5  ;;  %v1496_v5 = vld [vmem:[%s4484_s7 + $0x38] sm:$0xff] }
  0xc5   :  { %1461 = vmatmul.mubr.f32.vlgmr.msra.gmra.mrb[36].mxu0 %v1086_v10 }
  0xc6   :  { %1658 = vmatmul.mubr.f32.vlgmr.msra.gmra.mrb[40].mxu1 %v1489_v37  ;;  %2761 = vmatpush3.bf16.msra.mxu0 %v2760_v11 }
  0xc7   :  { %2798 = vmatpush3.bf16.msra.mxu1 %v2760_v11  ;;  %1465 = vmatprep.mubr.f32.mxu0 %v1093_v13 }
  0xc8   :  { %1662 = vmatprep.mubr.f32.mxu1 %v1494_v15  ;;  %2763 = vmatprep.subr.bf16.mxu0 %v2762_v14 }
  0xc9   :  { %1466 = vmatmul.mubr.f32.gmra.mrb[38].mxu0 %v1092_v18  ;;  %2791 = vmatprep.subr.bf16.mxu1 %v2762_v14 }
  0xca   :  { %1663 = vmatmul.mubr.f32.gmra.mrb[42].mxu1 %v1493_v20  ;;  %2765 = vmatpush3.bf16.msra.mxu0 %v2764_v19 }
  0xcb   :  { %2799 = vmatpush3.bf16.msra.mxu1 %v2764_v19  ;;  %1470 = vmatprep.mubr.f32.mxu0 %v1099_v23 }
  0xcc   :  { %1667 = vmatprep.mubr.f32.mxu1 %v1498_v25  ;;  %2767 = vmatprep.subr.bf16.mxu0 %v2766_v24 }
  0xcd   :  { %1471 = vmatmul.mubr.f32.gmra.mrb[40].mxu0 %v1098_v28  ;;  %2792 = vmatprep.subr.bf16.mxu1 %v2766_v24 }
  0xce   :  { %1668 = vmatmul.mubr.f32.gmra.mrb[44].mxu1 %v1497_v30  ;;  %2769 = vmatpush3.bf16.msra.mxu0 %v2768_v29 }
  0xcf   :  { %2800 = vmatpush3.bf16.msra.mxu1 %v2768_v29  ;;  %1475 = vmatprep.mubr.f32.mxu0 %v1105_v34 }
  0xd0   :  { %1672 = vmatprep.mubr.f32.mxu1 %v1502_v39  ;;  %2771 = vmatprep.subr.bf16.mxu0 %v2770_v35 }
  0xd1   :  { %1476 = vmatmul.mubr.f32.gmra.mrb[42].mxu0 %v1104_v40  ;;  %2793 = vmatprep.subr.bf16.mxu1 %v2770_v35 }
  0xd2   :  { %1673 = vmatmul.mubr.f32.gmra.mrb[46].mxu1 %v1501_v42  ;;  %2773 = vmatpush3.bf16.msra.mxu0 %v2772_v41 }
  0xd3   :  { %2801 = vmatpush3.bf16.msra.mxu1 %v2772_v41  ;;  %2775 = vmatprep.subr.bf16.mxu0 %v2774_v43 }
  0xd4   :  { %2794 = vmatprep.subr.bf16.mxu1 %v2774_v43  ;;  %1742 = vmatprep.mubr.f32.mxu0 %v1492_v48  ;;  %v223_v10 = vpop.permute.xlu0 %222 }
  0xd5   :  { %1752 = vmatprep.mubr.f32.mxu1 %v1500_v51  ;;  %v233_v22 = vpop.permute.xlu1 %232 }
  0xd6   :  { %2777 = vmatpush3.bf16.msra.mxu0 %v2776_v50 }
  0xd7   :  { %2802 = vmatpush3.bf16.msra.mxu1 %v2776_v50  ;;  %2779 = vmatprep.subr.bf16.mxu0 %v2778_v52 }
  0xd8   :  { %2795 = vmatprep.subr.bf16.mxu1 %v2778_v52  ;;  %v228_v16 = vpop.permute.xlu0 %227 }
  0xda   :  { %2781 = vmatpush3.bf16.msra.mxu0 %v2780_v57 }
  0xdb   :  { %2803 = vmatpush3.bf16.msra.mxu1 %v2780_v57  ;;  %2783 = vmatprep.subr.bf16.mxu0 %v2782_v58 }
  0xdc   :  { %2796 = vmatprep.subr.bf16.mxu1 %v2782_v58 }
  0xdd   :  { %v238_v35 = vpop.permute.xlu1 %237 }
  0xde   :  { %2785 = vmatpush3.bf16.msra.mxu0 %v2784_v63 }
  0xdf   :  { %2804 = vmatpush3.bf16.msra.mxu1 %v2784_v63  ;;  %2787 = vmatprep.subr.bf16.mxu0 %v2786_v0 }
  0xe0   :  { %2797 = vmatprep.subr.bf16.mxu1 %v2786_v0 }
  0xe2   :  { %2789 = vmatpush3.bf16.msra.mxu0 %v2788_v2 }
  0xe3   :  { %2805 = vmatpush3.bf16.msra.mxu1 %v2788_v2 }
  0xe5   :  { %1743 = vmatmul.mubr.f32.vlgmr.msra.gmra.mrb[44].mxu0 %v1491_v3 }
  0xe6   :  { %1753 = vmatmul.mubr.f32.vlgmr.msra.gmra.mrb[48].mxu1 %v1499_v4  ;;  %1747 = vmatprep.mubr.f32.mxu0 %v1496_v5 }
  0xe7   :  { %1757 = vmatprep.mubr.f32.mxu1 %v1504_v6 }
  0xe9   :  { %1748 = vmatmul.mubr.f32.gmra.mrb[46].mxu0 %v1495_v7 }
  0xea   :  { %1758 = vmatmul.mubr.f32.gmra.mrb[50].mxu1 %v1503_v8 }
  0xf8   :  { %v1820_v9 = vpop.f32.mrb[0].mxu0 }
  0xf9   :  { %v1864_v11 = vpop.f32.mrb[0].mxu1  ;;  %v1821_v37 = vpop.f32.mrb[1].mxu0 }
  0xfa   :  { %v1822_v12 = vadd.f32 %v1821_v37, %v1820_v9  ;;  %v1865_v49 = vpop.f32.mrb[1].mxu1 }
  0xfb   :  { %v1866_v13 = vadd.f32 %v1865_v49, %v1864_v11 }
  0xfc   :  { %v307_v14 = vadd.f32 %v1822_v12, %v223_v10  ;;  %v1823_v15 = vpop.f32.mrb[2].mxu0 }
  0xfd   :  { %v1824_v17 = vpop.f32.mrb[3].mxu0  ;;  %v1867_v18 = vpop.f32.mrb[2].mxu1 }
  0xfe   :  { %v392_v19 = vadd.f32 %v1866_v13, %v307_v14  ;;  %v1825_v20 = vadd.f32 %v1824_v17, %v1823_v15  ;;  %v1868_v21 = vpop.f32.mrb[3].mxu1 }
  0xff   :  { %v1869_v23 = vadd.f32 %v1868_v21, %v1867_v18 }
 0x100   :  { %v312_v24 = vadd.f32 %v1825_v20, %v228_v16  ;;  %v1826_v25 = vpop.f32.mrb[4].mxu0 }
 0x101   :  { %v1827_v26 = vpop.f32.mrb[5].mxu0  ;;  %v1870_v27 = vpop.f32.mrb[4].mxu1 }
 0x102   :  { %v397_v28 = vadd.f32 %v1869_v23, %v312_v24  ;;  %v1828_v29 = vadd.f32 %v1827_v26, %v1826_v25  ;;  %v1871_v30 = vpop.f32.mrb[5].mxu1 }
 0x103   :  { %v1872_v31 = vadd.f32 %v1871_v30, %v1870_v27 }
 0x104   :  { %v317_v32 = vadd.f32 %v1828_v29, %v233_v22  ;;  %v1829_v34 = vpop.f32.mrb[6].mxu0 }
 0x105   :  { %v1830_v36 = vpop.f32.mrb[7].mxu0  ;;  %v1873_v38 = vpop.f32.mrb[6].mxu1 }
 0x106   :  { %v402_v39 = vadd.f32 %v1872_v31, %v317_v32  ;;  %v1831_v40 = vadd.f32 %v1830_v36, %v1829_v34  ;;  %v1874_v41 = vpop.f32.mrb[7].mxu1  ;;  %v801_v36 = vpop.permute.xlu0 %800 }
 0x107   :  { %v1875_v42 = vadd.f32 %v1874_v41, %v1873_v38 }
 0x108   :  { %v322_v43 = vadd.f32 %v1831_v40, %v238_v35 }
 0x10a   :  { %v407_v44 = vadd.f32 %v1875_v42, %v322_v43 }
 0x118   :  { %v1908_v45 = vpop.f32.mrb[8].mxu0 }
 0x119   :  { %v1952_v46 = vpop.f32.mrb[8].mxu1  ;;  %v1909_v47 = vpop.f32.mrb[9].mxu0 }
 0x11a   :  { %v1910_v48 = vadd.f32 %v1909_v47, %v1908_v45  ;;  %v1953_v50 = vpop.f32.mrb[9].mxu1 }
 0x11b   :  { %v1954_v51 = vadd.f32 %v1953_v50, %v1952_v46 }
 0x11c   :  { %v477_v52 = vadd.f32 %v1910_v48, %v392_v19  ;;  %v1911_v53 = vpop.f32.mrb[10].mxu0 }
 0x11d   :  { %v1912_v54 = vpop.f32.mrb[11].mxu0  ;;  %v1955_v55 = vpop.f32.mrb[10].mxu1 }
 0x11e   :  { %v1913_v56 = vadd.f32 %v1912_v54, %v1911_v53  ;;  %v1956_v57 = vpop.f32.mrb[11].mxu1  ;;  %v562_v58 = vadd.f32 %v1954_v51, %v477_v52 }
 0x11f   :  { %v1957_v59 = vadd.f32 %v1956_v57, %v1955_v55  ;;  %v811_v55 = vpop.permute.xlu0 %810 }
 0x120   :  { %v482_v60 = vadd.f32 %v1913_v56, %v397_v28  ;;  %v1914_v61 = vpop.f32.mrb[12].mxu0 }
 0x121   :  { %v1915_v62 = vpop.f32.mrb[13].mxu0  ;;  %v1958_v63 = vpop.f32.mrb[12].mxu1 }
 0x122   :  { %v1916_v0 = vadd.f32 %v1915_v62, %v1914_v61  ;;  %v1959_v33 = vpop.f32.mrb[13].mxu1  ;;  %v567_v1 = vadd.f32 %v1957_v59, %v482_v60 }
 0x123   :  { %v1960_v2 = vadd.f32 %v1959_v33, %v1958_v63 }
 0x124   :  { %v487_v3 = vadd.f32 %v1916_v0, %v402_v39  ;;  %v1917_v4 = vpop.f32.mrb[14].mxu0 }
 0x125   :  { %v1918_v5 = vpop.f32.mrb[15].mxu0  ;;  %v1961_v6 = vpop.f32.mrb[14].mxu1 }
 0x126   :  { %v1919_v7 = vadd.f32 %v1918_v5, %v1917_v4  ;;  %v1962_v8 = vpop.f32.mrb[15].mxu1  ;;  %v572_v9 = vadd.f32 %v1960_v2, %v487_v3 }
 0x127   :  { %v1963_v10 = vadd.f32 %v1962_v8, %v1961_v6 }
 0x128   :  { %v492_v11 = vadd.f32 %v1919_v7, %v407_v44  ;;  %v806_v44 = vpop.permute.xlu1 %805 }
 0x12a   :  { %v577_v37 = vadd.f32 %v1963_v10, %v492_v11 }
 0x138   :  { %v2370_v12 = vpop.f32.mrb[16].mxu0 }
 0x139   :  { %v652_v49 = vadd.f32 %v2370_v12, %v567_v1  ;;  %v2016_v13 = vpop.f32.mrb[16].mxu1  ;;  %v646_v14 = vpop.f32.mrb[17].mxu0 }
 0x13a   :  { %v647_v15 = vadd.f32 %v646_v14, %v562_v58  ;;  %v2017_v16 = vpop.f32.mrb[17].mxu1  ;;  %v816_v1 = vpop.permute.xlu1 %815 }
 0x13b   :  { %v666_v17 = vmax.f32 %v652_v49, 0.0  ;;  %v2018_v18 = vadd.f32 %v2017_v16, %v2016_v13  ;;  %v1209_v16 = vpop.permute.xlu0 %1208 }
 0x13c   :  { %v665_v19 = vmax.f32 %v647_v15, 0.0  ;;  %v2373_v20 = vpop.f32.mrb[18].mxu0 }
 0x13d   :  { %671 = vst.msk [vmem:[%s4485_s9 + $0x8] sm:$0xff] %vm669_vm0, %v666_v17  ;;  %v662_v21 = vadd.f32 %v2373_v20, %v577_v37  ;;  %v656_v22 = vpop.f32.mrb[19].mxu0  ;;  %v2019_v23 = vpop.f32.mrb[18].mxu1  ;;  %v885_v41 = vadd.f32 %v2018_v18, %v801_v36 }
 0x13e   :  { %670 = vst.msk [vmem:[%s4485_s9] sm:$0xff] %vm669_vm0, %v665_v19  ;;  %v657_v24 = vadd.f32 %v656_v22, %v572_v9  ;;  %v2020_v25 = vpop.f32.mrb[19].mxu1 }
 0x13f   :  { %v668_v26 = vmax.f32 %v662_v21, 0.0  ;;  %v2021_v27 = vadd.f32 %v2020_v25, %v2019_v23 }
 0x140   :  { %v667_v28 = vmax.f32 %v657_v24, 0.0  ;;  %v1214_v24 = vpop.permute.xlu1 %1213 }
 0x141   :  { %673 = vst.msk [vmem:[%s4485_s9 + $0x18] sm:$0xff] %vm669_vm0, %v668_v26  ;;  %v2022_v29 = vpop.f32.mrb[20].mxu1  ;;  %v890_v51 = vadd.f32 %v2021_v27, %v806_v44 }
 0x142   :  { %672 = vst.msk [vmem:[%s4485_s9 + $0x10] sm:$0xff] %vm669_vm0, %v667_v28  ;;  %v2023_v30 = vpop.f32.mrb[21].mxu1 }
 0x143   :  { %v2024_v31 = vadd.f32 %v2023_v30, %v2022_v29 }
 0x144   :  { %v1224_v44 = vpop.permute.xlu1 %1223 }
 0x145   :  { %v2025_v32 = vpop.f32.mrb[22].mxu1  ;;  %v895_v62 = vadd.f32 %v2024_v31, %v811_v55 }
 0x146   :  { %v2026_v34 = vpop.f32.mrb[23].mxu1 }
 0x147   :  { %v2027_v35 = vadd.f32 %v2026_v34, %v2025_v32  ;;  %v1219_v34 = vpop.permute.xlu0 %1218 }
 0x149   :  { %v900_v8 = vadd.f32 %v2027_v35, %v816_v1 }
 0x158   :  { %v2060_v38 = vpop.f32.mrb[20].mxu0 }
 0x159   :  { %v2104_v39 = vpop.f32.mrb[24].mxu1  ;;  %v2061_v40 = vpop.f32.mrb[21].mxu0 }
 0x15a   :  { %v2062_v42 = vadd.f32 %v2061_v40, %v2060_v38  ;;  %v2105_v43 = vpop.f32.mrb[25].mxu1 }
 0x15b   :  { %v2106_v45 = vadd.f32 %v2105_v43, %v2104_v39 }
 0x15c   :  { %v970_v46 = vadd.f32 %v2062_v42, %v885_v41  ;;  %v2063_v47 = vpop.f32.mrb[22].mxu0 }
 0x15d   :  { %v2064_v48 = vpop.f32.mrb[23].mxu0  ;;  %v2107_v50 = vpop.f32.mrb[26].mxu1 }
 0x15e   :  { %v1055_v52 = vadd.f32 %v2106_v45, %v970_v46  ;;  %v2065_v53 = vadd.f32 %v2064_v48, %v2063_v47  ;;  %v2108_v54 = vpop.f32.mrb[27].mxu1 }
 0x15f   :  { %v2109_v56 = vadd.f32 %v2108_v54, %v2107_v50 }
 0x160   :  { %v1073_v57 = vmax.f32 %v1055_v52, 0.0  ;;  %v975_v58 = vadd.f32 %v2065_v53, %v890_v51  ;;  %v2066_v59 = vpop.f32.mrb[24].mxu0 }
 0x161   :  { %v2067_v60 = vpop.f32.mrb[25].mxu0  ;;  %v2110_v61 = vpop.f32.mrb[28].mxu1 }
 0x162   :  { %1078 = vst.msk [vmem:[%s4486_s10] sm:$0xff] %vm1077_vm1, %v1073_v57  ;;  %v1060_v63 = vadd.f32 %v2109_v56, %v975_v58  ;;  %v2068_v0 = vadd.f32 %v2067_v60, %v2066_v59  ;;  %v2111_v33 = vpop.f32.mrb[29].mxu1 }
 0x163   :  { %v2112_v2 = vadd.f32 %v2111_v33, %v2110_v61 }
 0x164   :  { %v1074_v3 = vmax.f32 %v1060_v63, 0.0  ;;  %v980_v4 = vadd.f32 %v2068_v0, %v895_v62  ;;  %v2069_v5 = vpop.f32.mrb[26].mxu0 }
 0x165   :  { %v2070_v6 = vpop.f32.mrb[27].mxu0  ;;  %v2113_v7 = vpop.f32.mrb[30].mxu1 }
 0x166   :  { %1079 = vst.msk [vmem:[%s4486_s10 + $0x8] sm:$0xff] %vm1077_vm1, %v1074_v3  ;;  %v1065_v9 = vadd.f32 %v2112_v2, %v980_v4  ;;  %v2071_v10 = vadd.f32 %v2070_v6, %v2069_v5  ;;  %v2114_v11 = vpop.f32.mrb[31].mxu1 }
 0x167   :  { %v2115_v37 = vadd.f32 %v2114_v11, %v2113_v7 }
 0x168   :  { %v1075_v12 = vmax.f32 %v1065_v9, 0.0  ;;  %v985_v49 = vadd.f32 %v2071_v10, %v900_v8 }
 0x16a   :  { %1080 = vst.msk [vmem:[%s4486_s10 + $0x10] sm:$0xff] %vm1077_vm1, %v1075_v12  ;;  %v1070_v13 = vadd.f32 %v2115_v37, %v985_v49 }
 0x16c   :  { %v1076_v14 = vmax.f32 %v1070_v13, 0.0 }
 0x16e   :  { %1081 = vst.msk [vmem:[%s4486_s10 + $0x18] sm:$0xff] %vm1077_vm1, %v1076_v14 }
 0x178   :  { %v2148_v15 = vpop.f32.mrb[28].mxu0 }
 0x179   :  { %v2192_v17 = vpop.f32.mrb[32].mxu1  ;;  %v2149_v18 = vpop.f32.mrb[29].mxu0 }
 0x17a   :  { %v2150_v19 = vadd.f32 %v2149_v18, %v2148_v15  ;;  %v2193_v20 = vpop.f32.mrb[33].mxu1 }
 0x17b   :  { %v2194_v21 = vadd.f32 %v2193_v20, %v2192_v17  ;;  %v1581_v20 = vpop.permute.xlu1 %1580 }
 0x17c   :  { %v1293_v22 = vadd.f32 %v2150_v19, %v1209_v16  ;;  %v2151_v23 = vpop.f32.mrb[30].mxu0  ;;  %v1576_v19 = vpop.permute.xlu0 %1575 }
 0x17d   :  { %v2152_v25 = vpop.f32.mrb[31].mxu0  ;;  %v2195_v26 = vpop.f32.mrb[34].mxu1 }
 0x17e   :  { %v1378_v27 = vadd.f32 %v2194_v21, %v1293_v22  ;;  %v2153_v28 = vadd.f32 %v2152_v25, %v2151_v23  ;;  %v2196_v29 = vpop.f32.mrb[35].mxu1 }
 0x17f   :  { %v2197_v30 = vadd.f32 %v2196_v29, %v2195_v26 }
 0x180   :  { %v1298_v31 = vadd.f32 %v2153_v28, %v1214_v24  ;;  %v2154_v32 = vpop.f32.mrb[32].mxu0  ;;  %v1586_v25 = vpop.permute.xlu0 %1585 }
 0x181   :  { %v2155_v35 = vpop.f32.mrb[33].mxu0  ;;  %v2198_v36 = vpop.f32.mrb[36].mxu1 }
 0x182   :  { %v1383_v38 = vadd.f32 %v2197_v30, %v1298_v31  ;;  %v2156_v39 = vadd.f32 %v2155_v35, %v2154_v32  ;;  %v2199_v40 = vpop.f32.mrb[37].mxu1 }
 0x183   :  { %v2200_v41 = vadd.f32 %v2199_v40, %v2198_v36 }
 0x184   :  { %v1303_v42 = vadd.f32 %v2156_v39, %v1219_v34  ;;  %v2157_v43 = vpop.f32.mrb[34].mxu0 }
 0x185   :  { %v2158_v45 = vpop.f32.mrb[35].mxu0  ;;  %v2201_v46 = vpop.f32.mrb[38].mxu1 }
 0x186   :  { %v1388_v47 = vadd.f32 %v2200_v41, %v1303_v42  ;;  %v2159_v48 = vadd.f32 %v2158_v45, %v2157_v43  ;;  %v2202_v50 = vpop.f32.mrb[39].mxu1 }
 0x187   :  { %v2203_v51 = vadd.f32 %v2202_v50, %v2201_v46 }
 0x188   :  { %v1308_v52 = vadd.f32 %v2159_v48, %v1224_v44 }
 0x18a   :  { %v1393_v53 = vadd.f32 %v2203_v51, %v1308_v52 }
 0x198   :  { %v2236_v54 = vpop.f32.mrb[36].mxu0 }
 0x199   :  { %v2280_v55 = vpop.f32.mrb[40].mxu1  ;;  %v2237_v56 = vpop.f32.mrb[37].mxu0 }
 0x19a   :  { %v2238_v57 = vadd.f32 %v2237_v56, %v2236_v54  ;;  %v2281_v58 = vpop.f32.mrb[41].mxu1 }
 0x19b   :  { %v2282_v59 = vadd.f32 %v2281_v58, %v2280_v55 }
 0x19c   :  { %v1463_v60 = vadd.f32 %v2238_v57, %v1378_v27  ;;  %v2239_v61 = vpop.f32.mrb[38].mxu0 }
 0x19d   :  { %v2240_v62 = vpop.f32.mrb[39].mxu0  ;;  %v2283_v63 = vpop.f32.mrb[42].mxu1  ;;  %v1660_v24 = vadd.f32 %v2282_v59, %v1576_v19 }
 0x19e   :  { %v1481_v0 = vmax.f32 %v1463_v60, 0.0  ;;  %v2241_v33 = vadd.f32 %v2240_v62, %v2239_v61  ;;  %v2284_v1 = vpop.f32.mrb[43].mxu1 }
 0x19f   :  { %v2285_v2 = vadd.f32 %v2284_v1, %v2283_v63 }
 0x1a0   :  { %1485 = vst.msk [vmem:[%s4487_s11] sm:$0xff] %vm1077_vm1, %v1481_v0  ;;  %v1468_v3 = vadd.f32 %v2241_v33, %v1383_v38  ;;  %v2242_v4 = vpop.f32.mrb[40].mxu0  ;;  %v1591_v38 = vpop.permute.xlu1 %1590 }
 0x1a1   :  { %v2286_v5 = vpop.f32.mrb[44].mxu1  ;;  %v2243_v6 = vpop.f32.mrb[41].mxu0  ;;  %v1665_v36 = vadd.f32 %v2285_v2, %v1581_v20 }
 0x1a2   :  { %v1482_v7 = vmax.f32 %v1468_v3, 0.0  ;;  %v2244_v8 = vadd.f32 %v2243_v6, %v2242_v4  ;;  %v2287_v9 = vpop.f32.mrb[45].mxu1 }
 0x1a3   :  { %v2288_v10 = vadd.f32 %v2287_v9, %v2286_v5 }
 0x1a4   :  { %1486 = vst.msk [vmem:[%s4487_s11 + $0x8] sm:$0xff] %vm1077_vm1, %v1482_v7  ;;  %v1473_v11 = vadd.f32 %v2244_v8, %v1388_v47  ;;  %v2245_v37 = vpop.f32.mrb[42].mxu0 }
 0x1a5   :  { %v2289_v12 = vpop.f32.mrb[46].mxu1  ;;  %v2246_v49 = vpop.f32.mrb[43].mxu0  ;;  %v1670_v28 = vadd.f32 %v2288_v10, %v1586_v25 }
 0x1a6   :  { %v1483_v13 = vmax.f32 %v1473_v11, 0.0  ;;  %v2247_v14 = vadd.f32 %v2246_v49, %v2245_v37  ;;  %v2290_v15 = vpop.f32.mrb[47].mxu1 }
 0x1a7   :  { %v2291_v16 = vadd.f32 %v2290_v15, %v2289_v12 }
 0x1a8   :  { %1487 = vst.msk [vmem:[%s4487_s11 + $0x10] sm:$0xff] %vm1077_vm1, %v1483_v13  ;;  %v1478_v17 = vadd.f32 %v2247_v14, %v1393_v53 }
 0x1a9   :  { %v1675_v42 = vadd.f32 %v2291_v16, %v1591_v38 }
 0x1aa   :  { %v1484_v18 = vmax.f32 %v1478_v17, 0.0 }
 0x1ac   :  { %1488 = vst.msk [vmem:[%s4487_s11 + $0x18] sm:$0xff] %vm1077_vm1, %v1484_v18 }
 0x1b8   :  { %v2324_v21 = vpop.f32.mrb[44].mxu0 }
 0x1b9   :  { %v2330_v22 = vpop.f32.mrb[48].mxu1  ;;  %v2325_v23 = vpop.f32.mrb[45].mxu0 }
 0x1ba   :  { %v2326_v26 = vadd.f32 %v2325_v23, %v2324_v21  ;;  %v2331_v27 = vpop.f32.mrb[49].mxu1 }
 0x1bb   :  { %v2332_v29 = vadd.f32 %v2331_v27, %v2330_v22 }
 0x1bc   :  { %v1745_v30 = vadd.f32 %v2326_v26, %v1660_v24  ;;  %v2327_v31 = vpop.f32.mrb[46].mxu0 }
 0x1bd   :  { %v1755_v32 = vadd.f32 %v2332_v29, %v1670_v28  ;;  %v2333_v34 = vpop.f32.mrb[50].mxu1  ;;  %v2328_v35 = vpop.f32.mrb[47].mxu0 }
 0x1be   :  { %v1763_v39 = vmax.f32 %v1745_v30, 0.0  ;;  %v2329_v40 = vadd.f32 %v2328_v35, %v2327_v31  ;;  %v2334_v41 = vpop.f32.mrb[51].mxu1 }
 0x1bf   :  { %v1765_v43 = vmax.f32 %v1755_v32, 0.0  ;;  %v2335_v44 = vadd.f32 %v2334_v41, %v2333_v34 }
 0x1c0   :  { %1768 = vst.msk [vmem:[%s4488_s12] sm:$0xff] %vm1767_vm2, %v1763_v39  ;;  %v1750_v45 = vadd.f32 %v2329_v40, %v1665_v36 }
 0x1c1   :  { %1770 = vst.msk [vmem:[%s4488_s12 + $0x10] sm:$0xff] %vm1767_vm2, %v1765_v43  ;;  %v1760_v46 = vadd.f32 %v2335_v44, %v1675_v42 }
 0x1c2   :  { %v1764_v47 = vmax.f32 %v1750_v45, 0.0 }
 0x1c3   :  { %v1766_v48 = vmax.f32 %v1760_v46, 0.0 }
 0x1c4   :  { %1769 = vst.msk [vmem:[%s4488_s12 + $0x8] sm:$0xff] %vm1767_vm2, %v1764_v47 }
 0x1c5   :  { %1771 = vst.msk [vmem:[%s4488_s12 + $0x18] sm:$0xff] %vm1767_vm2, %v1766_v48 }

// kernel: vae_cnn_forward.9
= control target key start
LH: loop header
LB: loop body
LE: loop exit
PB: predicated region body
PF: predicated region fallthrough
CT: control target
= control target key end

     0   :  { %v1467_v3 = vmov 0.0   ;;  %v1468_v9 = vmov 0   ;;  %s2372_s0 = inlined_call_operand.vmem [shape: f32[128,392], index: 0, kind: input, shape index: {}, may-alias: {0,1,2,3}]   ;;  %s2373_s8 = inlined_call_operand.<no memory space> [shape: f32[1,1], index: 8, kind: input, shape index: {}]   ;;  %s2374_s1 = inlined_call_operand.vmem [shape: f32[128,392], index: 1, kind: input, shape index: {}, may-alias: {0,1,2,3}]   ;;  %s2375_s4 = inlined_call_operand.vmem [shape: f32[1,128], index: 4, kind: input, shape index: {}]   ;;  %s2376_s2 = inlined_call_operand.vmem [shape: f32[128,392], index: 2, kind: input, shape index: {}, may-alias: {0,1,2,3}]   ;;  %s2377_s5 = inlined_call_operand.vmem [shape: f32[1,128], index: 5, kind: input, shape index: {}]   ;;  %s2378_s3 = inlined_call_operand.vmem [shape: f32[128,392], index: 3, kind: input, shape index: {}, may-alias: {0,1,2,3}]   ;;  %s2379_s6 = inlined_call_operand.vmem [shape: f32[1,128], index: 6, kind: input, shape index: {}]   ;;  %s2380_s7 = inlined_call_operand.vmem [shape: f32[1,128], index: 7, kind: input, shape index: {}]   ;;  %s2381_s9 = inlined_call_operand.vmem [shape: f32[1,392], index: 9, kind: output, shape index: {0}]   ;;  %s2382_s10 = inlined_call_operand.vmem [shape: f32[1,392], index: 10, kind: output, shape index: {1}]   ;;  %s2383_s11 = inlined_call_operand.vmem [shape: f32[1,392], index: 11, kind: output, shape index: {2}]   ;;  %s2384_s12 = inlined_call_operand.vmem [shape: f32[1,392], index: 12, kind: output, shape index: {3}]  }
   0x1   :  { %v40_v0 = vld [vmem:[%s2372_s0 + $0x8] sm:$0xff]  ;;  %v42_v2 = vld [vmem:[%s2372_s0 + $0x18] sm:$0xff]  ;;  %177 = vmatprep.mubr.f32.mxu0 %v1467_v3  ;;  %248 = vmatprep.mubr.f32.mxu1 %v1467_v3  ;;  %v18_v4 = vstv %s2373_s8  ;;  %v39_v7 = vld [vmem:[%s2372_s0] sm:$0xff] }
   0x2   :  { %v44_v1 = vld [vmem:[%s2372_s0 + $0x28] sm:$0xff]  ;;  %v46_v6 = vld [vmem:[%s2372_s0 + $0x38] sm:$0xff]  ;;  %v43_v8 = vld [vmem:[%s2372_s0 + $0x20] sm:$0xff]  ;;  %1401 = vset.pattern.permute.xlu0 %v1468_v9  ;;  %19 = vst [vmem:[#allocation2] sm:$0x1] %v18_v4  ;;  %1402 = vset.pattern.permute.xlu1 %v1468_v9 }
   0x3   :  { %v1142_v5 = vpack.c.bf16 %v44_v1, %v40_v0  ;;  %v1174_v10 = vpack.c.bf16 %v46_v6, %v42_v2  ;;  %v1144_v11 = vpack.c.bf16 %v43_v8, %v39_v7  ;;  %v41_v12 = vld [vmem:[%s2372_s0 + $0x10] sm:$0xff]  ;;  %v48_v14 = vld [vmem:[%s2372_s0 + $0x48] sm:$0xff]  ;;  %v50_v17 = vld [vmem:[%s2372_s0 + $0x58] sm:$0xff] }
   0x4   :  { %v45_v13 = vld [vmem:[%s2372_s0 + $0x30] sm:$0xff]  ;;  %v52_v16 = vld [vmem:[%s2372_s0 + $0x68] sm:$0xff]  ;;  %v54_v18 = vld [vmem:[%s2372_s0 + $0x78] sm:$0xff] }
   0x5   :  { %1143 = vmatprep.subr.bf16.mxu0 %v1142_v5  ;;  %v1176_v15 = vpack.c.bf16 %v45_v13, %v41_v12  ;;  %1175 = vmatprep.subr.bf16.mxu1 %v1174_v10  ;;  %v1146_v19 = vpack.c.bf16 %v52_v16, %v48_v14  ;;  %v1178_v20 = vpack.c.bf16 %v54_v18, %v50_v17  ;;  %v47_v21 = vld [vmem:[%s2372_s0 + $0x40] sm:$0xff]  ;;  %v49_v23 = vld [vmem:[%s2372_s0 + $0x50] sm:$0xff]  ;;  %v56_v26 = vld [vmem:[%s2372_s0 + $0x88] sm:$0xff] }
   0x6   :  { %1145 = vmatpush1.bf16.msra.mxu0 %v1144_v11  ;;  %v51_v22 = vld [vmem:[%s2372_s0 + $0x60] sm:$0xff]  ;;  %v53_v25 = vld [vmem:[%s2372_s0 + $0x70] sm:$0xff]  ;;  %v60_v27 = vld [vmem:[%s2372_s0 + $0xa8] sm:$0xff] }
   0x7   :  { %1177 = vmatpush1.bf16.msra.mxu1 %v1176_v15  ;;  %v1148_v24 = vpack.c.bf16 %v51_v22, %v47_v21  ;;  %1147 = vmatprep.subr.bf16.mxu0 %v1146_v19  ;;  %v1180_v28 = vpack.c.bf16 %v53_v25, %v49_v23  ;;  %v1150_v29 = vpack.c.bf16 %v60_v27, %v56_v26  ;;  %v58_v30 = vld [vmem:[%s2372_s0 + $0x98] sm:$0xff]  ;;  %v55_v32 = vld [vmem:[%s2372_s0 + $0x80] sm:$0xff]  ;;  %v57_v35 = vld [vmem:[%s2372_s0 + $0x90] sm:$0xff] }
   0x8   :  { %1179 = vmatprep.subr.bf16.mxu1 %v1178_v20  ;;  %v62_v31 = vld [vmem:[%s2372_s0 + $0xb8] sm:$0xff]  ;;  %v59_v34 = vld [vmem:[%s2372_s0 + $0xa0] sm:$0xff]  ;;  %v61_v36 = vld [vmem:[%s2372_s0 + $0xb0] sm:$0xff] }
   0x9   :  { %v1182_v33 = vpack.c.bf16 %v62_v31, %v58_v30  ;;  %v1152_v37 = vpack.c.bf16 %v59_v34, %v55_v32  ;;  %v64_v38 = vld [vmem:[%s2372_s0 + $0xc8] sm:$0xff]  ;;  %v66_v40 = vld [vmem:[%s2372_s0 + $0xd8] sm:$0xff]  ;;  %v1184_v41 = vpack.c.bf16 %v61_v36, %v57_v35  ;;  %v63_v44 = vld [vmem:[%s2372_s0 + $0xc0] sm:$0xff] }
   0xa   :  { %1149 = vmatpush1.bf16.msra.mxu0 %v1148_v24  ;;  %v68_v39 = vld [vmem:[%s2372_s0 + $0xe8] sm:$0xff]  ;;  %v70_v43 = vld [vmem:[%s2372_s0 + $0xf8] sm:$0xff]  ;;  %v67_v45 = vld [vmem:[%s2372_s0 + $0xe0] sm:$0xff] }
   0xb   :  { %1181 = vmatpush1.bf16.msra.mxu1 %v1180_v28  ;;  %1151 = vmatprep.subr.bf16.mxu0 %v1150_v29  ;;  %v1154_v42 = vpack.c.bf16 %v68_v39, %v64_v38  ;;  %v1186_v46 = vpack.c.bf16 %v70_v43, %v66_v40  ;;  %v65_v47 = vld [vmem:[%s2372_s0 + $0xd0] sm:$0xff]  ;;  %v72_v49 = vld [vmem:[%s2372_s0 + $0x108] sm:$0xff]  ;;  %v74_v51 = vld [vmem:[%s2372_s0 + $0x118] sm:$0xff]  ;;  %v1156_v53 = vpack.c.bf16 %v67_v45, %v63_v44 }
   0xc   :  { %1183 = vmatprep.subr.bf16.mxu1 %v1182_v33  ;;  %v69_v48 = vld [vmem:[%s2372_s0 + $0xf0] sm:$0xff]  ;;  %v76_v50 = vld [vmem:[%s2372_s0 + $0x128] sm:$0xff]  ;;  %v78_v52 = vld [vmem:[%s2372_s0 + $0x138] sm:$0xff] }
   0xd   :  { %v1188_v54 = vpack.c.bf16 %v69_v48, %v65_v47  ;;  %v1158_v55 = vpack.c.bf16 %v76_v50, %v72_v49  ;;  %v71_v56 = vld [vmem:[%s2372_s0 + $0x100] sm:$0xff]  ;;  %v73_v58 = vld [vmem:[%s2372_s0 + $0x110] sm:$0xff]  ;;  %v1190_v59 = vpack.c.bf16 %v78_v52, %v74_v51  ;;  %v80_v61 = vld [vmem:[%s2372_s0 + $0x148] sm:$0xff] }
   0xe   :  { %1153 = vmatpush1.bf16.msra.mxu0 %v1152_v37  ;;  %v75_v57 = vld [vmem:[%s2372_s0 + $0x120] sm:$0xff]  ;;  %v77_v60 = vld [vmem:[%s2372_s0 + $0x130] sm:$0xff]  ;;  %v84_v62 = vld [vmem:[%s2372_s0 + $0x168] sm:$0xff] }
   0xf   :  { %1185 = vmatpush1.bf16.msra.mxu1 %v1184_v41  ;;  %1155 = vmatprep.subr.bf16.mxu0 %v1154_v42  ;;  %v82_v63 = vld [vmem:[%s2372_s0 + $0x158] sm:$0xff]  ;;  %v1160_v1 = vpack.c.bf16 %v75_v57, %v71_v56  ;;  %v1192_v2 = vpack.c.bf16 %v77_v60, %v73_v58  ;;  %v1162_v4 = vpack.c.bf16 %v84_v62, %v80_v61  ;;  %v79_v5 = vld [vmem:[%s2372_s0 + $0x140] sm:$0xff]  ;;  %v81_v7 = vld [vmem:[%s2372_s0 + $0x150] sm:$0xff] }
  0x10   :  { %1187 = vmatprep.subr.bf16.mxu1 %v1186_v46  ;;  %v86_v0 = vld [vmem:[%s2372_s0 + $0x178] sm:$0xff]  ;;  %v83_v6 = vld [vmem:[%s2372_s0 + $0x160] sm:$0xff]  ;;  %v85_v9 = vld [vmem:[%s2372_s0 + $0x170] sm:$0xff] }
  0x11   :  { %v1194_v8 = vpack.c.bf16 %v86_v0, %v82_v63  ;;  %v88_v10 = vld [vmem:[%s2372_s0 + $0x188] sm:$0xff]  ;;  %v90_v12 = vld [vmem:[%s2372_s0 + $0x198] sm:$0xff]  ;;  %v1164_v14 = vpack.c.bf16 %v83_v6, %v79_v5  ;;  %v1196_v15 = vpack.c.bf16 %v85_v9, %v81_v7  ;;  %v87_v17 = vld [vmem:[%s2372_s0 + $0x180] sm:$0xff] }
  0x12   :  { %1157 = vmatpush1.bf16.msra.mxu0 %v1156_v53  ;;  %v92_v11 = vld [vmem:[%s2372_s0 + $0x1a8] sm:$0xff]  ;;  %v94_v13 = vld [vmem:[%s2372_s0 + $0x1b8] sm:$0xff]  ;;  %v91_v18 = vld [vmem:[%s2372_s0 + $0x1a0] sm:$0xff] }
  0x13   :  { %1189 = vmatpush1.bf16.msra.mxu1 %v1188_v54  ;;  %1159 = vmatprep.subr.bf16.mxu0 %v1158_v55  ;;  %v1166_v16 = vpack.c.bf16 %v92_v11, %v88_v10  ;;  %v89_v19 = vld [vmem:[%s2372_s0 + $0x190] sm:$0xff]  ;;  %v1198_v20 = vpack.c.bf16 %v94_v13, %v90_v12  ;;  %v96_v22 = vld [vmem:[%s2372_s0 + $0x1c8] sm:$0xff]  ;;  %v98_v24 = vld [vmem:[%s2372_s0 + $0x1d8] sm:$0xff]  ;;  %v1168_v26 = vpack.c.bf16 %v91_v18, %v87_v17 }
  0x14   :  { %1191 = vmatprep.subr.bf16.mxu1 %v1190_v59  ;;  %v93_v21 = vld [vmem:[%s2372_s0 + $0x1b0] sm:$0xff]  ;;  %v100_v23 = vld [vmem:[%s2372_s0 + $0x1e8] sm:$0xff]  ;;  %v102_v25 = vld [vmem:[%s2372_s0 + $0x1f8] sm:$0xff] }
  0x15   :  { %v1200_v27 = vpack.c.bf16 %v93_v21, %v89_v19  ;;  %v1170_v28 = vpack.c.bf16 %v100_v23, %v96_v22  ;;  %v95_v29 = vld [vmem:[%s2372_s0 + $0x1c0] sm:$0xff]  ;;  %v97_v31 = vld [vmem:[%s2372_s0 + $0x1d0] sm:$0xff]  ;;  %v1202_v32 = vpack.c.bf16 %v102_v25, %v98_v24  ;;  %v315_v34 = vld [vmem:[%s2374_s1 + $0x8] sm:$0xff] }
  0x16   :  { %1161 = vmatpush1.bf16.msra.mxu0 %v1160_v1  ;;  %v99_v30 = vld [vmem:[%s2372_s0 + $0x1e0] sm:$0xff]  ;;  %v101_v33 = vld [vmem:[%s2372_s0 + $0x1f0] sm:$0xff]  ;;  %v319_v35 = vld [vmem:[%s2374_s1 + $0x28] sm:$0xff] }
  0x17   :  { %1193 = vmatpush1.bf16.msra.mxu1 %v1192_v2  ;;  %1163 = vmatprep.subr.bf16.mxu0 %v1162_v4  ;;  %v317_v36 = vld [vmem:[%s2374_s1 + $0x18] sm:$0xff]  ;;  %v1172_v38 = vpack.c.bf16 %v99_v30, %v95_v29  ;;  %v1204_v39 = vpack.c.bf16 %v101_v33, %v97_v31  ;;  %v1206_v40 = vpack.c.bf16 %v319_v35, %v315_v34  ;;  %v314_v41 = vld [vmem:[%s2374_s1] sm:$0xff]  ;;  %v316_v43 = vld [vmem:[%s2374_s1 + $0x10] sm:$0xff] }
  0x18   :  { %1195 = vmatprep.subr.bf16.mxu1 %v1194_v8  ;;  %v321_v37 = vld [vmem:[%s2374_s1 + $0x38] sm:$0xff]  ;;  %v318_v42 = vld [vmem:[%s2374_s1 + $0x20] sm:$0xff]  ;;  %v320_v45 = vld [vmem:[%s2374_s1 + $0x30] sm:$0xff] }
  0x19   :  { %v1238_v44 = vpack.c.bf16 %v321_v37, %v317_v36  ;;  %v323_v46 = vld [vmem:[%s2374_s1 + $0x48] sm:$0xff]  ;;  %v325_v48 = vld [vmem:[%s2374_s1 + $0x58] sm:$0xff]  ;;  %v38_v50 = vld [vmem:[%s2375_s4] sm:$0x1]  ;;  %v1208_v51 = vpack.c.bf16 %v318_v42, %v314_v41  ;;  %v1240_v52 = vpack.c.bf16 %v320_v45, %v316_v43 }
  0x1a   :  { %1165 = vmatpush1.bf16.msra.mxu0 %v1164_v14  ;;  %v327_v47 = vld [vmem:[%s2374_s1 + $0x68] sm:$0xff]  ;;  %v329_v49 = vld [vmem:[%s2374_s1 + $0x78] sm:$0xff]  ;;  %v322_v54 = vld [vmem:[%s2374_s1 + $0x40] sm:$0xff] }
  0x1b   :  { %1197 = vmatpush1.bf16.msra.mxu1 %v1196_v15  ;;  %1167 = vmatprep.subr.bf16.mxu0 %v1166_v16  ;;  %v1210_v53 = vpack.c.bf16 %v327_v47, %v323_v46  ;;  %v326_v55 = vld [vmem:[%s2374_s1 + $0x60] sm:$0xff]  ;;  %v324_v56 = vld [vmem:[%s2374_s1 + $0x50] sm:$0xff]  ;;  %v1242_v57 = vpack.c.bf16 %v329_v49, %v325_v48  ;;  %v331_v59 = vld [vmem:[%s2374_s1 + $0x88] sm:$0xff] }
  0x1c   :  { %1199 = vmatprep.subr.bf16.mxu1 %v1198_v20  ;;  %v328_v58 = vld [vmem:[%s2374_s1 + $0x70] sm:$0xff]  ;;  %v335_v60 = vld [vmem:[%s2374_s1 + $0xa8] sm:$0xff]  ;;  %v333_v61 = vld [vmem:[%s2374_s1 + $0x98] sm:$0xff]  ;;  %v1212_v63 = vpack.c.bf16 %v326_v55, %v322_v54 }
  0x1d   :  { %v337_v62 = vld [vmem:[%s2374_s1 + $0xb8] sm:$0xff]  ;;  %v1244_v0 = vpack.c.bf16 %v328_v58, %v324_v56  ;;  %v1214_v1 = vpack.c.bf16 %v335_v60, %v331_v59  ;;  %v330_v2 = vld [vmem:[%s2374_s1 + $0x80] sm:$0xff]  ;;  %v332_v5 = vld [vmem:[%s2374_s1 + $0x90] sm:$0xff] }
  0x1e   :  { %1169 = vmatpush1.bf16.msra.mxu0 %v1168_v26  ;;  %v334_v4 = vld [vmem:[%s2374_s1 + $0xa0] sm:$0xff]  ;;  %v1246_v6 = vpack.c.bf16 %v337_v62, %v333_v61  ;;  %v336_v7 = vld [vmem:[%s2374_s1 + $0xb0] sm:$0xff]  ;;  %v339_v8 = vld [vmem:[%s2374_s1 + $0xc8] sm:$0xff] }
  0x1f   :  { %1201 = vmatpush1.bf16.msra.mxu1 %v1200_v27  ;;  %1171 = vmatprep.subr.bf16.mxu0 %v1170_v28  ;;  %v343_v9 = vld [vmem:[%s2374_s1 + $0xe8] sm:$0xff]  ;;  %v341_v10 = vld [vmem:[%s2374_s1 + $0xd8] sm:$0xff]  ;;  %v1216_v12 = vpack.c.bf16 %v334_v4, %v330_v2  ;;  %v1248_v13 = vpack.c.bf16 %v336_v7, %v332_v5  ;;  %v338_v15 = vld [vmem:[%s2374_s1 + $0xc0] sm:$0xff] }
  0x20   :  { %1203 = vmatprep.subr.bf16.mxu1 %v1202_v32  ;;  %v345_v11 = vld [vmem:[%s2374_s1 + $0xf8] sm:$0xff]  ;;  %v1218_v14 = vpack.c.bf16 %v343_v9, %v339_v8  ;;  %v342_v16 = vld [vmem:[%s2374_s1 + $0xe0] sm:$0xff]  ;;  %v340_v17 = vld [vmem:[%s2374_s1 + $0xd0] sm:$0xff] }
  0x21   :  { %v1250_v18 = vpack.c.bf16 %v345_v11, %v341_v10  ;;  %v344_v19 = vld [vmem:[%s2374_s1 + $0xf0] sm:$0xff]  ;;  %v347_v20 = vld [vmem:[%s2374_s1 + $0x108] sm:$0xff]  ;;  %v349_v22 = vld [vmem:[%s2374_s1 + $0x118] sm:$0xff]  ;;  %v1220_v24 = vpack.c.bf16 %v342_v16, %v338_v15 }
  0x22   :  { %1173 = vmatpush1.bf16.msra.mxu0 %v1172_v38  ;;  %v351_v21 = vld [vmem:[%s2374_s1 + $0x128] sm:$0xff]  ;;  %v353_v23 = vld [vmem:[%s2374_s1 + $0x138] sm:$0xff]  ;;  %v1252_v25 = vpack.c.bf16 %v344_v19, %v340_v17  ;;  %v346_v27 = vld [vmem:[%s2374_s1 + $0x100] sm:$0xff] }
  0x23   :  { %1205 = vmatpush1.bf16.msra.mxu1 %v1204_v39  ;;  %1207 = vmatprep.subr.bf16.mxu0 %v1206_v40  ;;  %v1222_v26 = vpack.c.bf16 %v351_v21, %v347_v20  ;;  %v350_v28 = vld [vmem:[%s2374_s1 + $0x120] sm:$0xff]  ;;  %v348_v29 = vld [vmem:[%s2374_s1 + $0x110] sm:$0xff]  ;;  %v1254_v30 = vpack.c.bf16 %v353_v23, %v349_v22  ;;  %v355_v32 = vld [vmem:[%s2374_s1 + $0x148] sm:$0xff] }
  0x24   :  { %1239 = vmatprep.subr.bf16.mxu1 %v1238_v44  ;;  %v352_v31 = vld [vmem:[%s2374_s1 + $0x130] sm:$0xff]  ;;  %v359_v33 = vld [vmem:[%s2374_s1 + $0x168] sm:$0xff]  ;;  %v357_v34 = vld [vmem:[%s2374_s1 + $0x158] sm:$0xff]  ;;  %v1224_v36 = vpack.c.bf16 %v350_v28, %v346_v27 }
  0x25   :  { %178 = vmatmul.mubr.f32.vlgmr.msra.gmra.mrb[0].mxu0 %v38_v50  ;;  %v361_v35 = vld [vmem:[%s2374_s1 + $0x178] sm:$0xff]  ;;  %v1256_v37 = vpack.c.bf16 %v352_v31, %v348_v29  ;;  %v1226_v38 = vpack.c.bf16 %v359_v33, %v355_v32  ;;  %v354_v39 = vld [vmem:[%s2374_s1 + $0x140] sm:$0xff]  ;;  %v356_v41 = vld [vmem:[%s2374_s1 + $0x150] sm:$0xff] }
  0x26   :  { %249 = vmatmul.mubr.f32.vlgmr.msra.gmra.mrb[0].mxu1 %v38_v50  ;;  %1209 = vmatpush1.bf16.msra.mxu0 %v1208_v51  ;;  %v358_v40 = vld [vmem:[%s2374_s1 + $0x160] sm:$0xff]  ;;  %v1258_v42 = vpack.c.bf16 %v361_v35, %v357_v34  ;;  %v360_v43 = vld [vmem:[%s2374_s1 + $0x170] sm:$0xff]  ;;  %v363_v44 = vld [vmem:[%s2374_s1 + $0x188] sm:$0xff] }
  0x27   :  { %1241 = vmatpush1.bf16.msra.mxu1 %v1240_v52  ;;  %1211 = vmatprep.subr.bf16.mxu0 %v1210_v53  ;;  %v367_v45 = vld [vmem:[%s2374_s1 + $0x1a8] sm:$0xff]  ;;  %v365_v46 = vld [vmem:[%s2374_s1 + $0x198] sm:$0xff]  ;;  %v1228_v48 = vpack.c.bf16 %v358_v40, %v354_v39  ;;  %v1260_v49 = vpack.c.bf16 %v360_v43, %v356_v41  ;;  %v362_v51 = vld [vmem:[%s2374_s1 + $0x180] sm:$0xff] }
  0x28   :  { %1243 = vmatprep.subr.bf16.mxu1 %v1242_v57  ;;  %452 = vmatprep.mubr.f32.mxu0 %v1467_v3  ;;  %v369_v47 = vld [vmem:[%s2374_s1 + $0x1b8] sm:$0xff]  ;;  %v1230_v50 = vpack.c.bf16 %v367_v45, %v363_v44  ;;  %v366_v52 = vld [vmem:[%s2374_s1 + $0x1a0] sm:$0xff]  ;;  %v364_v53 = vld [vmem:[%s2374_s1 + $0x190] sm:$0xff] }
  0x29   :  { %523 = vmatprep.mubr.f32.mxu1 %v1467_v3  ;;  %v1262_v54 = vpack.c.bf16 %v369_v47, %v365_v46  ;;  %v368_v55 = vld [vmem:[%s2374_s1 + $0x1b0] sm:$0xff]  ;;  %v371_v56 = vld [vmem:[%s2374_s1 + $0x1c8] sm:$0xff]  ;;  %v373_v58 = vld [vmem:[%s2374_s1 + $0x1d8] sm:$0xff]  ;;  %v1232_v60 = vpack.c.bf16 %v366_v52, %v362_v51 }
  0x2a   :  { %1213 = vmatpush1.bf16.msra.mxu0 %v1212_v63  ;;  %v375_v57 = vld [vmem:[%s2374_s1 + $0x1e8] sm:$0xff]  ;;  %v377_v59 = vld [vmem:[%s2374_s1 + $0x1f8] sm:$0xff]  ;;  %v1264_v61 = vpack.c.bf16 %v368_v55, %v364_v53  ;;  %v370_v63 = vld [vmem:[%s2374_s1 + $0x1c0] sm:$0xff] }
  0x2b   :  { %1245 = vmatpush1.bf16.msra.mxu1 %v1244_v0  ;;  %1215 = vmatprep.subr.bf16.mxu0 %v1214_v1  ;;  %v1234_v62 = vpack.c.bf16 %v375_v57, %v371_v56  ;;  %v374_v0 = vld [vmem:[%s2374_s1 + $0x1e0] sm:$0xff]  ;;  %v372_v1 = vld [vmem:[%s2374_s1 + $0x1d0] sm:$0xff]  ;;  %v1266_v2 = vpack.c.bf16 %v377_v59, %v373_v58  ;;  %v586_v5 = vld [vmem:[%s2376_s2 + $0x8] sm:$0xff] }
  0x2c   :  { %1247 = vmatprep.subr.bf16.mxu1 %v1246_v6  ;;  %v376_v4 = vld [vmem:[%s2374_s1 + $0x1f0] sm:$0xff]  ;;  %v590_v6 = vld [vmem:[%s2376_s2 + $0x28] sm:$0xff]  ;;  %v588_v7 = vld [vmem:[%s2376_s2 + $0x18] sm:$0xff]  ;;  %v1236_v9 = vpack.c.bf16 %v374_v0, %v370_v63 }
  0x2d   :  { %v592_v8 = vld [vmem:[%s2376_s2 + $0x38] sm:$0xff]  ;;  %v1268_v10 = vpack.c.bf16 %v376_v4, %v372_v1  ;;  %v1270_v11 = vpack.c.bf16 %v590_v6, %v586_v5  ;;  %v591_v16 = vld [vmem:[%s2376_s2 + $0x30] sm:$0xff]  ;;  %v594_v17 = vld [vmem:[%s2376_s2 + $0x48] sm:$0xff] }
  0x2e   :  { %1217 = vmatpush1.bf16.msra.mxu0 %v1216_v12  ;;  %v585_v12 = vld [vmem:[%s2376_s2] sm:$0xff]  ;;  %v1302_v15 = vpack.c.bf16 %v592_v8, %v588_v7  ;;  %v596_v19 = vld [vmem:[%s2376_s2 + $0x58] sm:$0xff]  ;;  %v595_v27 = vld [vmem:[%s2376_s2 + $0x50] sm:$0xff] }
  0x2f   :  { %1249 = vmatpush1.bf16.msra.mxu1 %v1248_v13  ;;  %1219 = vmatprep.subr.bf16.mxu0 %v1218_v14  ;;  %v589_v13 = vld [vmem:[%s2376_s2 + $0x20] sm:$0xff]  ;;  %v587_v14 = vld [vmem:[%s2376_s2 + $0x10] sm:$0xff]  ;;  %v600_v20 = vld [vmem:[%s2376_s2 + $0x78] sm:$0xff] }
  0x30   :  { %1251 = vmatprep.subr.bf16.mxu1 %v1250_v18  ;;  %v598_v18 = vld [vmem:[%s2376_s2 + $0x68] sm:$0xff]  ;;  %v313_v21 = vld [vmem:[%s2377_s5] sm:$0x1]  ;;  %v1272_v22 = vpack.c.bf16 %v589_v13, %v585_v12  ;;  %v1304_v23 = vpack.c.bf16 %v591_v16, %v587_v14  ;;  %v1306_v28 = vpack.c.bf16 %v600_v20, %v596_v19  ;;  %v599_v29 = vld [vmem:[%s2376_s2 + $0x70] sm:$0xff] }
  0x31   :  { %v606_v31 = vld [vmem:[%s2376_s2 + $0xa8] sm:$0xff]  ;;  %v604_v32 = vld [vmem:[%s2376_s2 + $0x98] sm:$0xff]  ;;  %v1308_v35 = vpack.c.bf16 %v599_v29, %v595_v27  ;;  %v603_v39 = vld [vmem:[%s2376_s2 + $0x90] sm:$0xff] }
  0x32   :  { %1221 = vmatpush1.bf16.msra.mxu0 %v1220_v24  ;;  %v1274_v24 = vpack.c.bf16 %v598_v18, %v594_v17  ;;  %v608_v33 = vld [vmem:[%s2376_s2 + $0xb8] sm:$0xff]  ;;  %v607_v41 = vld [vmem:[%s2376_s2 + $0xb0] sm:$0xff]  ;;  %v614_v43 = vld [vmem:[%s2376_s2 + $0xe8] sm:$0xff] }
  0x33   :  { %1253 = vmatpush1.bf16.msra.mxu1 %v1252_v25  ;;  %1223 = vmatprep.subr.bf16.mxu0 %v1222_v26  ;;  %v593_v25 = vld [vmem:[%s2376_s2 + $0x40] sm:$0xff]  ;;  %v1310_v40 = vpack.c.bf16 %v608_v33, %v604_v32  ;;  %v612_v44 = vld [vmem:[%s2376_s2 + $0xd8] sm:$0xff]  ;;  %v1312_v47 = vpack.c.bf16 %v607_v41, %v603_v39  ;;  %v611_v51 = vld [vmem:[%s2376_s2 + $0xd0] sm:$0xff] }
  0x34   :  { %1255 = vmatprep.subr.bf16.mxu1 %v1254_v30  ;;  %v597_v26 = vld [vmem:[%s2376_s2 + $0x60] sm:$0xff]  ;;  %v602_v30 = vld [vmem:[%s2376_s2 + $0x88] sm:$0xff]  ;;  %v616_v45 = vld [vmem:[%s2376_s2 + $0xf8] sm:$0xff] }
  0x35   :  { %v1276_v34 = vpack.c.bf16 %v597_v26, %v593_v25  ;;  %v1314_v52 = vpack.c.bf16 %v616_v45, %v612_v44  ;;  %v615_v53 = vld [vmem:[%s2376_s2 + $0xf0] sm:$0xff]  ;;  %v622_v55 = vld [vmem:[%s2376_s2 + $0x128] sm:$0xff]  ;;  %v620_v56 = vld [vmem:[%s2376_s2 + $0x118] sm:$0xff] }
  0x36   :  { %1225 = vmatpush1.bf16.msra.mxu0 %v1224_v36  ;;  %v1278_v36 = vpack.c.bf16 %v606_v31, %v602_v30  ;;  %v624_v57 = vld [vmem:[%s2376_s2 + $0x138] sm:$0xff]  ;;  %v617_v59 = vld [vmem:[%s2376_s2 + $0x100] sm:$0xff]  ;;  %v619_v63 = vld [vmem:[%s2376_s2 + $0x110] sm:$0xff] }
  0x37   :  { %1257 = vmatpush1.bf16.msra.mxu1 %v1256_v37  ;;  %1227 = vmatprep.subr.bf16.mxu0 %v1226_v38  ;;  %v601_v37 = vld [vmem:[%s2376_s2 + $0x80] sm:$0xff]  ;;  %v623_v0 = vld [vmem:[%s2376_s2 + $0x130] sm:$0xff]  ;;  %v1318_v1 = vpack.c.bf16 %v624_v57, %v620_v56  ;;  %v630_v4 = vld [vmem:[%s2376_s2 + $0x168] sm:$0xff] }
  0x38   :  { %1259 = vmatprep.subr.bf16.mxu1 %v1258_v42  ;;  %v605_v38 = vld [vmem:[%s2376_s2 + $0xa0] sm:$0xff]  ;;  %v610_v42 = vld [vmem:[%s2376_s2 + $0xc8] sm:$0xff]  ;;  %v628_v6 = vld [vmem:[%s2376_s2 + $0x158] sm:$0xff] }
  0x39   :  { %v1280_v46 = vpack.c.bf16 %v605_v38, %v601_v37  ;;  %v103_v5 = vld [vmem:[#allocation2] sm:$0x1]  ;;  %v632_v7 = vld [vmem:[%s2376_s2 + $0x178] sm:$0xff]  ;;  %v627_v13 = vld [vmem:[%s2376_s2 + $0x150] sm:$0xff] }
  0x3a   :  { %1229 = vmatpush1.bf16.msra.mxu0 %v1228_v48  ;;  %v1282_v48 = vpack.c.bf16 %v614_v43, %v610_v42  ;;  %106 = vperm.xlu0 %1401, %v103_v5   ;;  %v629_v12 = vld [vmem:[%s2376_s2 + $0x160] sm:$0xff]  ;;  %v1322_v14 = vpack.c.bf16 %v632_v7, %v628_v6  ;;  %v634_v16 = vld [vmem:[%s2376_s2 + $0x188] sm:$0xff]  ;;  %v636_v18 = vld [vmem:[%s2376_s2 + $0x198] sm:$0xff] }
  0x3b   :  { %1261 = vmatpush1.bf16.msra.mxu1 %v1260_v49  ;;  %1231 = vmatprep.subr.bf16.mxu0 %v1230_v50  ;;  %v609_v49 = vld [vmem:[%s2376_s2 + $0xc0] sm:$0xff]  ;;  %v638_v17 = vld [vmem:[%s2376_s2 + $0x1a8] sm:$0xff]  ;;  %v640_v19 = vld [vmem:[%s2376_s2 + $0x1b8] sm:$0xff] }
  0x3c   :  { %1263 = vmatprep.subr.bf16.mxu1 %v1262_v54  ;;  %v613_v50 = vld [vmem:[%s2376_s2 + $0xe0] sm:$0xff]  ;;  %v618_v54 = vld [vmem:[%s2376_s2 + $0x108] sm:$0xff]  ;;  %v635_v25 = vld [vmem:[%s2376_s2 + $0x190] sm:$0xff]  ;;  %v1326_v27 = vpack.c.bf16 %v640_v19, %v636_v18 }
  0x3d   :  { %v1284_v58 = vpack.c.bf16 %v613_v50, %v609_v49  ;;  %v639_v26 = vld [vmem:[%s2376_s2 + $0x1b0] sm:$0xff]  ;;  %v646_v29 = vld [vmem:[%s2376_s2 + $0x1e8] sm:$0xff]  ;;  %v644_v30 = vld [vmem:[%s2376_s2 + $0x1d8] sm:$0xff] }
  0x3e   :  { %1233 = vmatpush1.bf16.msra.mxu0 %v1232_v60  ;;  %v1316_v60 = vpack.c.bf16 %v615_v53, %v611_v51  ;;  %v648_v31 = vld [vmem:[%s2376_s2 + $0x1f8] sm:$0xff]  ;;  %v378_v32 = vld [vmem:[#allocation2] sm:$0x1]  ;;  %v643_v39 = vld [vmem:[%s2376_s2 + $0x1d0] sm:$0xff] }
  0x3f   :  { %1265 = vmatpush1.bf16.msra.mxu1 %v1264_v61  ;;  %1235 = vmatprep.subr.bf16.mxu0 %v1234_v62  ;;  %v1286_v61 = vpack.c.bf16 %v622_v55, %v618_v54  ;;  %v621_v62 = vld [vmem:[%s2376_s2 + $0x120] sm:$0xff]  ;;  %v647_v41 = vld [vmem:[%s2376_s2 + $0x1f0] sm:$0xff]  ;;  %v857_v42 = vld [vmem:[%s2378_s3 + $0x8] sm:$0xff] }
  0x40   :  { %1267 = vmatprep.subr.bf16.mxu1 %v1266_v2  ;;  %v626_v2 = vld [vmem:[%s2376_s2 + $0x148] sm:$0xff]  ;;  %v1288_v8 = vpack.c.bf16 %v621_v62, %v617_v59  ;;  %v649_v33 = vld [vmem:[#allocation2] sm:$0x1]  ;;  %381 = vperm.xlu0 %1401, %v378_v32   ;;  %v859_v44 = vld [vmem:[%s2378_s3 + $0x18] sm:$0xff] }
  0x41   :  { %v641_v37 = vld [vmem:[%s2376_s2 + $0x1c0] sm:$0xff]  ;;  %v861_v43 = vld [vmem:[%s2378_s3 + $0x28] sm:$0xff]  ;;  %652 = vperm.xlu1 %1402, %v649_v33   ;;  %v863_v45 = vld [vmem:[%s2378_s3 + $0x38] sm:$0xff] }
  0x42   :  { %1237 = vmatpush1.bf16.msra.mxu0 %v1236_v9  ;;  %v1320_v9 = vpack.c.bf16 %v623_v0, %v619_v63  ;;  %v645_v38 = vld [vmem:[%s2376_s2 + $0x1e0] sm:$0xff]  ;;  %v1334_v49 = vpack.c.bf16 %v861_v43, %v857_v42  ;;  %v1366_v53 = vpack.c.bf16 %v863_v45, %v859_v44  ;;  %v862_v54 = vld [vmem:[%s2378_s3 + $0x30] sm:$0xff]  ;;  %v865_v55 = vld [vmem:[%s2378_s3 + $0x48] sm:$0xff] }
  0x43   :  { %1269 = vmatpush1.bf16.msra.mxu1 %v1268_v10  ;;  %1271 = vmatprep.subr.bf16.mxu0 %v1270_v11  ;;  %v1290_v10 = vpack.c.bf16 %v630_v4, %v626_v2  ;;  %v625_v11 = vld [vmem:[%s2376_s2 + $0x140] sm:$0xff]  ;;  %v869_v56 = vld [vmem:[%s2378_s3 + $0x68] sm:$0xff]  ;;  %v867_v57 = vld [vmem:[%s2378_s3 + $0x58] sm:$0xff] }
  0x44   :  { %1303 = vmatprep.subr.bf16.mxu1 %v1302_v15  ;;  %v631_v15 = vld [vmem:[%s2376_s2 + $0x170] sm:$0xff]  ;;  %v1292_v20 = vpack.c.bf16 %v629_v12, %v625_v11  ;;  %v856_v50 = vld [vmem:[%s2378_s3] sm:$0xff]  ;;  %v1338_v62 = vpack.c.bf16 %v869_v56, %v865_v55  ;;  %v873_v5 = vld [vmem:[%s2378_s3 + $0x88] sm:$0xff] }
  0x45   :  { %453 = vmatmul.mubr.f32.vlgmr.msra.gmra.mrb[2].mxu0 %v313_v21  ;;  %v860_v51 = vld [vmem:[%s2378_s3 + $0x20] sm:$0xff]  ;;  %v870_v4 = vld [vmem:[%s2378_s3 + $0x70] sm:$0xff]  ;;  %v877_v6 = vld [vmem:[%s2378_s3 + $0xa8] sm:$0xff] }
  0x46   :  { %524 = vmatmul.mubr.f32.vlgmr.msra.gmra.mrb[2].mxu1 %v313_v21  ;;  %1273 = vmatpush1.bf16.msra.mxu0 %v1272_v22  ;;  %v633_v21 = vld [vmem:[%s2376_s2 + $0x180] sm:$0xff]  ;;  %v1324_v22 = vpack.c.bf16 %v631_v15, %v627_v13  ;;  %v875_v7 = vld [vmem:[%s2378_s3 + $0x98] sm:$0xff]  ;;  %v1342_v11 = vpack.c.bf16 %v877_v6, %v873_v5  ;;  %v885_v18 = vld [vmem:[%s2378_s3 + $0xe8] sm:$0xff] }
  0x47   :  { %1305 = vmatpush1.bf16.msra.mxu1 %v1304_v23  ;;  %1275 = vmatprep.subr.bf16.mxu0 %v1274_v24  ;;  %v1294_v23 = vpack.c.bf16 %v638_v17, %v634_v16  ;;  %v637_v24 = vld [vmem:[%s2376_s2 + $0x1a0] sm:$0xff]  ;;  %v878_v16 = vld [vmem:[%s2378_s3 + $0xb0] sm:$0xff]  ;;  %v881_v17 = vld [vmem:[%s2378_s3 + $0xc8] sm:$0xff] }
  0x48   :  { %1307 = vmatprep.subr.bf16.mxu1 %v1306_v28  ;;  %723 = vmatprep.mubr.f32.mxu0 %v1467_v3  ;;  %v642_v28 = vld [vmem:[%s2376_s2 + $0x1c8] sm:$0xff]  ;;  %v584_v59 = vld [vmem:[%s2379_s6] sm:$0x1]  ;;  %v883_v19 = vld [vmem:[%s2378_s3 + $0xd8] sm:$0xff] }
  0x49   :  { %794 = vmatprep.mubr.f32.mxu1 %v1467_v3  ;;  %v864_v63 = vld [vmem:[%s2378_s3 + $0x40] sm:$0xff]  ;;  %v899_v42 = vld [vmem:[%s2378_s3 + $0x158] sm:$0xff] }
  0x4a   :  { %1277 = vmatpush1.bf16.msra.mxu0 %v1276_v34  ;;  %v1296_v34 = vpack.c.bf16 %v637_v24, %v633_v21  ;;  %v868_v0 = vld [vmem:[%s2378_s3 + $0x60] sm:$0xff]  ;;  %v903_v43 = vld [vmem:[%s2378_s3 + $0x178] sm:$0xff] }
  0x4b   :  { %1309 = vmatpush1.bf16.msra.mxu1 %v1308_v35  ;;  %1279 = vmatprep.subr.bf16.mxu0 %v1278_v36  ;;  %v1328_v35 = vpack.c.bf16 %v639_v26, %v635_v25  ;;  %v1298_v36 = vpack.c.bf16 %v646_v29, %v642_v28  ;;  %v872_v12 = vld [vmem:[%s2378_s3 + $0x80] sm:$0xff]  ;;  %v882_v26 = vld [vmem:[%s2378_s3 + $0xd0] sm:$0xff]  ;;  %v889_v28 = vld [vmem:[%s2378_s3 + $0x108] sm:$0xff] }
  0x4c   :  { %1311 = vmatprep.subr.bf16.mxu1 %v1310_v40  ;;  %v1330_v40 = vpack.c.bf16 %v648_v31, %v644_v30  ;;  %v876_v13 = vld [vmem:[%s2378_s3 + $0xa0] sm:$0xff]  ;;  %v893_v29 = vld [vmem:[%s2378_s3 + $0x128] sm:$0xff]  ;;  %v891_v30 = vld [vmem:[%s2378_s3 + $0x118] sm:$0xff] }
  0x4d   :  { %v1344_v21 = vpack.c.bf16 %v876_v13, %v872_v12  ;;  %v880_v24 = vld [vmem:[%s2378_s3 + $0xc0] sm:$0xff]  ;;  %v895_v31 = vld [vmem:[%s2378_s3 + $0x138] sm:$0xff]  ;;  %v918_v12 = vld [vmem:[%s2378_s3 + $0x1f0] sm:$0xff] }
  0x4e   :  { %1281 = vmatpush1.bf16.msra.mxu0 %v1280_v46  ;;  %v920_v46 = vld [vmem:[#allocation2] sm:$0x1]  ;;  %v911_v55 = vld [vmem:[%s2378_s3 + $0x1b8] sm:$0xff] }
  0x4f   :  { %1313 = vmatpush1.bf16.msra.mxu1 %v1312_v47  ;;  %1283 = vmatprep.subr.bf16.mxu0 %v1282_v48  ;;  %v1300_v47 = vpack.c.bf16 %v645_v38, %v641_v37  ;;  %v1332_v48 = vpack.c.bf16 %v647_v41, %v643_v39  ;;  %v884_v25 = vld [vmem:[%s2378_s3 + $0xe0] sm:$0xff]  ;;  %v890_v37 = vld [vmem:[%s2378_s3 + $0x110] sm:$0xff]  ;;  %v1382_v38 = vpack.c.bf16 %v895_v31, %v891_v30  ;;  %v901_v41 = vld [vmem:[%s2378_s3 + $0x168] sm:$0xff] }
  0x50   :  { %1315 = vmatprep.subr.bf16.mxu1 %v1314_v52  ;;  %v858_v52 = vld [vmem:[%s2378_s3 + $0x10] sm:$0xff]  ;;  %923 = vperm.xlu1 %1402, %v920_v46   ;;  %v1348_v32 = vpack.c.bf16 %v884_v25, %v880_v24 }
  0x51   :  { %v894_v39 = vld [vmem:[%s2378_s3 + $0x130] sm:$0xff] }
  0x52   :  { %1285 = vmatpush1.bf16.msra.mxu0 %v1284_v58  ;;  %v871_v58 = vld [vmem:[%s2378_s3 + $0x78] sm:$0xff]  ;;  %v1384_v45 = vpack.c.bf16 %v894_v39, %v890_v37 }
  0x53   :  { %1317 = vmatpush1.bf16.msra.mxu1 %v1316_v60  ;;  %1287 = vmatprep.subr.bf16.mxu0 %v1286_v61  ;;  %v1336_v60 = vpack.c.bf16 %v860_v51, %v856_v50  ;;  %v1368_v61 = vpack.c.bf16 %v862_v54, %v858_v52  ;;  %v1370_v2 = vpack.c.bf16 %v871_v58, %v867_v57  ;;  %v902_v51 = vld [vmem:[%s2378_s3 + $0x170] sm:$0xff]  ;;  %v905_v52 = vld [vmem:[%s2378_s3 + $0x188] sm:$0xff]  ;;  %v907_v54 = vld [vmem:[%s2378_s3 + $0x198] sm:$0xff] }
  0x54   :  { %1319 = vmatprep.subr.bf16.mxu1 %v1318_v1  ;;  %v866_v1 = vld [vmem:[%s2378_s3 + $0x50] sm:$0xff]  ;;  %v1386_v50 = vpack.c.bf16 %v903_v43, %v899_v42 }
  0x56   :  { %1289 = vmatpush1.bf16.msra.mxu0 %v1288_v8  ;;  %v879_v8 = vld [vmem:[%s2378_s3 + $0xb8] sm:$0xff] }
  0x57   :  { %1321 = vmatpush1.bf16.msra.mxu1 %v1320_v9  ;;  %1291 = vmatprep.subr.bf16.mxu0 %v1290_v10  ;;  %v1340_v9 = vpack.c.bf16 %v868_v0, %v864_v63  ;;  %v1372_v10 = vpack.c.bf16 %v870_v4, %v866_v1  ;;  %v1374_v15 = vpack.c.bf16 %v879_v8, %v875_v7  ;;  %v910_v63 = vld [vmem:[%s2378_s3 + $0x1b0] sm:$0xff]  ;;  %v913_v0 = vld [vmem:[%s2378_s3 + $0x1c8] sm:$0xff]  ;;  %v919_v4 = vld [vmem:[%s2378_s3 + $0x1f8] sm:$0xff] }
  0x58   :  { %1323 = vmatprep.subr.bf16.mxu1 %v1322_v14  ;;  %v874_v14 = vld [vmem:[%s2378_s3 + $0x90] sm:$0xff]  ;;  %v917_v1 = vld [vmem:[%s2378_s3 + $0x1e8] sm:$0xff]  ;;  %v912_v8 = vld [vmem:[%s2378_s3 + $0x1c0] sm:$0xff] }
  0x59   :  { %v1362_v7 = vpack.c.bf16 %v917_v1, %v913_v0 }
  0x5a   :  { %1293 = vmatpush1.bf16.msra.mxu0 %v1292_v20  ;;  %v887_v20 = vld [vmem:[%s2378_s3 + $0xf8] sm:$0xff] }
  0x5b   :  { %1325 = vmatpush1.bf16.msra.mxu1 %v1324_v22  ;;  %1295 = vmatprep.subr.bf16.mxu0 %v1294_v23  ;;  %v1376_v22 = vpack.c.bf16 %v878_v16, %v874_v14  ;;  %v1346_v23 = vpack.c.bf16 %v885_v18, %v881_v17  ;;  %v109_v16 = vlaneseq }
  0x5c   :  { %1327 = vmatprep.subr.bf16.mxu1 %v1326_v27  ;;  %v886_v27 = vld [vmem:[%s2378_s3 + $0xf0] sm:$0xff] }
  0x5d   :  { %v1380_v33 = vpack.c.bf16 %v886_v27, %v882_v26  ;;  %v110_v17 = vshrl.u32 %v109_v16, 7  ;;  %vm2336_vm0 = vcmp.lt.s32.totalorder %v109_v16, 392 }
  0x5e   :  { %1297 = vmatpush1.bf16.msra.mxu0 %v1296_v34  ;;  %v1350_v34 = vpack.c.bf16 %v893_v29, %v889_v28 }
  0x5f   :  { %1329 = vmatpush1.bf16.msra.mxu1 %v1328_v35  ;;  %1299 = vmatprep.subr.bf16.mxu0 %v1298_v36  ;;  %v888_v35 = vld [vmem:[%s2378_s3 + $0x100] sm:$0xff]  ;;  %v2327_v18 = vsub.s32 0, %v110_v17 }
  0x60   :  { %1331 = vmatprep.subr.bf16.mxu1 %v1330_v40  ;;  %v892_v36 = vld [vmem:[%s2378_s3 + $0x120] sm:$0xff]  ;;  %v897_v40 = vld [vmem:[%s2378_s3 + $0x148] sm:$0xff] }
  0x61   :  { %v1352_v44 = vpack.c.bf16 %v892_v36, %v888_v35  ;;  %v1354_v46 = vpack.c.bf16 %v901_v41, %v897_v40 }
  0x62   :  { %1301 = vmatpush1.bf16.msra.mxu0 %v1300_v47  ;;  %v896_v47 = vld [vmem:[%s2378_s3 + $0x140] sm:$0xff] }
  0x63   :  { %1333 = vmatpush1.bf16.msra.mxu1 %v1332_v48  ;;  %1335 = vmatprep.subr.bf16.mxu0 %v1334_v49  ;;  %v900_v48 = vld [vmem:[%s2378_s3 + $0x160] sm:$0xff]  ;;  %v898_v49 = vld [vmem:[%s2378_s3 + $0x150] sm:$0xff] }
  0x64   :  { %1367 = vmatprep.subr.bf16.mxu1 %v1366_v53  ;;  %v909_v53 = vld [vmem:[%s2378_s3 + $0x1a8] sm:$0xff]  ;;  %v1356_v56 = vpack.c.bf16 %v900_v48, %v896_v47  ;;  %v1388_v57 = vpack.c.bf16 %v902_v51, %v898_v49 }
  0x65   :  { %724 = vmatmul.mubr.f32.vlgmr.msra.gmra.mrb[4].mxu0 %v584_v59  ;;  %v1358_v58 = vpack.c.bf16 %v909_v53, %v905_v52 }
  0x66   :  { %795 = vmatmul.mubr.f32.vlgmr.msra.gmra.mrb[4].mxu1 %v584_v59  ;;  %1337 = vmatpush1.bf16.msra.mxu0 %v1336_v60  ;;  %v904_v59 = vld [vmem:[%s2378_s3 + $0x180] sm:$0xff] }
  0x67   :  { %1369 = vmatpush1.bf16.msra.mxu1 %v1368_v61  ;;  %1339 = vmatprep.subr.bf16.mxu0 %v1338_v62  ;;  %v908_v60 = vld [vmem:[%s2378_s3 + $0x1a0] sm:$0xff]  ;;  %v906_v61 = vld [vmem:[%s2378_s3 + $0x190] sm:$0xff]  ;;  %v1390_v62 = vpack.c.bf16 %v911_v55, %v907_v54 }
  0x68   :  { %1371 = vmatprep.subr.bf16.mxu1 %v1370_v2  ;;  %994 = vmatprep.mubr.f32.mxu0 %v1467_v3  ;;  %v915_v2 = vld [vmem:[%s2378_s3 + $0x1d8] sm:$0xff]  ;;  %v1360_v5 = vpack.c.bf16 %v908_v60, %v904_v59  ;;  %v1392_v6 = vpack.c.bf16 %v910_v63, %v906_v61 }
  0x69   :  { %1065 = vmatprep.mubr.f32.mxu1 %v1467_v3  ;;  %v1378_v3 = vpack.c.bf16 %v887_v20, %v883_v19 }
  0x6a   :  { %1341 = vmatpush1.bf16.msra.mxu0 %v1340_v9  ;;  %v916_v9 = vld [vmem:[%s2378_s3 + $0x1e0] sm:$0xff] }
  0x6b   :  { %1373 = vmatpush1.bf16.msra.mxu1 %v1372_v10  ;;  %1343 = vmatprep.subr.bf16.mxu0 %v1342_v11  ;;  %v1394_v10 = vpack.c.bf16 %v919_v4, %v915_v2  ;;  %v914_v11 = vld [vmem:[%s2378_s3 + $0x1d0] sm:$0xff]  ;;  %v1364_v13 = vpack.c.bf16 %v916_v9, %v912_v8 }
  0x6c   :  { %1375 = vmatprep.subr.bf16.mxu1 %v1374_v15  ;;  %v1396_v14 = vpack.c.bf16 %v918_v12, %v914_v11  ;;  %v855_v15 = vld [vmem:[%s2380_s7] sm:$0x1] }
  0x6e   :  { %1345 = vmatpush1.bf16.msra.mxu0 %v1344_v21 }
  0x6f   :  { %1377 = vmatpush1.bf16.msra.mxu1 %v1376_v22  ;;  %1347 = vmatprep.subr.bf16.mxu0 %v1346_v23 }
  0x70   :  { %1379 = vmatprep.subr.bf16.mxu1 %v1378_v3 }
  0x72   :  { %1349 = vmatpush1.bf16.msra.mxu0 %v1348_v32 }
  0x73   :  { %1381 = vmatpush1.bf16.msra.mxu1 %v1380_v33  ;;  %1351 = vmatprep.subr.bf16.mxu0 %v1350_v34 }
  0x74   :  { %1383 = vmatprep.subr.bf16.mxu1 %v1382_v38 }
  0x76   :  { %1353 = vmatpush1.bf16.msra.mxu0 %v1352_v44  ;;  %v1469_v44 = vmov 1966171168  }
  0x77   :  { %1385 = vmatpush1.bf16.msra.mxu1 %v1384_v45  ;;  %1355 = vmatprep.subr.bf16.mxu0 %v1354_v46  ;;  %v286_v45 = vunpack.c.l.s4 %v1469_v44 }
  0x78   :  { %1387 = vmatprep.subr.bf16.mxu1 %v1386_v50 }
  0x79   :  { %v287_v47 = vunpack.c.0.s8 %v286_v45 }
  0x7a   :  { %1357 = vmatpush1.bf16.msra.mxu0 %v1356_v56 }
  0x7b   :  { %1389 = vmatpush1.bf16.msra.mxu1 %v1388_v57  ;;  %1359 = vmatprep.subr.bf16.mxu0 %v1358_v58  ;;  %v2331_v51 = vsub.s32 %v287_v47, %v110_v17 }
  0x7c   :  { %1391 = vmatprep.subr.bf16.mxu1 %v1390_v62 }
  0x7e   :  { %1361 = vmatpush1.bf16.msra.mxu0 %v1360_v5 }
  0x7f   :  { %1393 = vmatpush1.bf16.msra.mxu1 %v1392_v6  ;;  %1363 = vmatprep.subr.bf16.mxu0 %v1362_v7 }
  0x80   :  { %1395 = vmatprep.subr.bf16.mxu1 %v1394_v10 }
  0x82   :  { %1365 = vmatpush1.bf16.msra.mxu0 %v1364_v13 }
  0x83   :  { %1397 = vmatpush1.bf16.msra.mxu1 %v1396_v14 }
  0x85   :  { %995 = vmatmul.mubr.f32.vlgmr.msra.gmra.mrb[6].mxu0 %v855_v15 }
  0x86   :  { %1066 = vmatmul.mubr.f32.vlgmr.msra.gmra.mrb[6].mxu1 %v855_v15 }
  0xb9   :  { %v107_v19 = vpop.permute.xlu0 %106 }
  0xba   :  { %v112_v20 = vrot.slane %v107_v19, %v2327_v18 }
  0xbf   :  { %v382_v46 = vpop.permute.xlu0 %381 }
  0xc0   :  { %v387_v48 = vrot.slane %v382_v46, %v2327_v18 }
  0xf8   :  { %v179_v21 = vpop.f32.mrb[0].mxu0 }
  0xf9   :  { %v180_v22 = vadd.f32 %v179_v21, %v112_v20  ;;  %v250_v23 = vpop.f32.mrb[0].mxu1  ;;  %v181_v24 = vpop.f32.mrb[1].mxu0 }
  0xfa   :  { %v251_v25 = vadd.f32 %v250_v23, %v112_v20  ;;  %v182_v26 = vadd.f32 %v181_v24, %v112_v20  ;;  %v252_v3 = vpop.f32.mrb[1].mxu1  ;;  %v653_v23 = vpop.permute.xlu1 %652 }
  0xfb   :  { %v255_v27 = vsub.f32 0.0, %v180_v22  ;;  %v253_v28 = vadd.f32 %v252_v3, %v112_v20  ;;  %v658_v24 = vrot.slane %v653_v23, %v2327_v18 }
  0xfc   :  { %v257_v29 = vsub.f32 0.0, %v251_v25  ;;  %v256_v30 = vsub.f32 0.0, %v182_v26 }
  0xfd   :  { %v259_v31 = vmul.f32 1.442695, %v255_v27  ;;  %v258_v32 = vsub.f32 0.0, %v253_v28 }
  0xfe   :  { %v263_v33 = vmul.f32 1.442695, %v257_v29  ;;  %v261_v34 = vmul.f32 1.442695, %v256_v30 }
  0xff   :  { %1403 = vpow2.f32 %v259_v31  ;;  %v265_v35 = vmul.f32 1.442695, %v258_v32 }
 0x100   :  { %1405 = vpow2.f32 %v263_v33 }
 0x101   :  { %1407 = vpow2.f32 %v261_v34 }
 0x102   :  { %1409 = vpow2.f32 %v265_v35 }
 0x109   :  { %v1404_v36 = vpop.eup %1403 }
 0x10a   :  { %v1406_v37 = vpop.eup %1405  ;;  %v267_v38 = vadd.f32 1.0, %v1404_v36 }
 0x10b   :  { %v1408_v39 = vpop.eup %1407  ;;  %v269_v40 = vadd.f32 1.0, %v1406_v37 }
 0x10c   :  { %v1410_v41 = vpop.eup %1409  ;;  %1411 = vrcp.f32 %v267_v38  ;;  %v268_v42 = vadd.f32 1.0, %v1408_v39 }
 0x10d   :  { %1413 = vrcp.f32 %v269_v40  ;;  %v270_v43 = vadd.f32 1.0, %v1410_v41 }
 0x10e   :  { %1415 = vrcp.f32 %v268_v42 }
 0x10f   :  { %1417 = vrcp.f32 %v270_v43 }
 0x116   :  { %v1412_v49 = vpop.eup %1411 }
 0x117   :  { %v1414_v50 = vpop.eup %1413 }
 0x118   :  { %v1416_v52 = vpop.eup %1415  ;;  %v454_v53 = vpop.f32.mrb[2].mxu0 }
 0x119   :  { %v1418_v54 = vpop.eup %1417  ;;  %v283_v55 = vcombine.low %v1412_v49, %v1416_v52  ;;  %v455_v56 = vadd.f32 %v454_v53, %v387_v48  ;;  %v525_v57 = vpop.f32.mrb[2].mxu1 }
 0x11a   :  { %v456_v58 = vpop.f32.mrb[3].mxu0  ;;  %v284_v59 = vcombine.low %v1414_v50, %v1418_v54  ;;  %v526_v60 = vadd.f32 %v525_v57, %v387_v48  ;;  %v527_v62 = vpop.f32.mrb[3].mxu1 }
 0x11b   :  { %v457_v61 = vadd.f32 %v456_v58, %v387_v48  ;;  %v291_v63 = vrot.slane %v283_v55, %v2331_v51  ;;  %v530_v0 = vsub.f32 0.0, %v455_v56  ;;  %v528_v1 = vadd.f32 %v527_v62, %v387_v48 }
 0x11c   :  { %v298_v2 = vrot.slane %v284_v59, %v2331_v51  ;;  %v532_v4 = vsub.f32 0.0, %v526_v60  ;;  %v924_v59 = vpop.permute.xlu1 %923 }
 0x11d   :  { %v531_v5 = vsub.f32 0.0, %v457_v61  ;;  %v534_v6 = vmul.f32 1.442695, %v530_v0  ;;  %v533_v7 = vsub.f32 0.0, %v528_v1  ;;  %v929_v62 = vrot.slane %v924_v59, %v2327_v18 }
 0x11e   :  { %v299_v8 = vcombine.low %v291_v63, %v298_v2  ;;  %v538_v9 = vmul.f32 1.442695, %v532_v4 }
 0x11f   :  { %v536_v10 = vmul.f32 1.442695, %v531_v5  ;;  %1419 = vpow2.f32 %v534_v6  ;;  %v540_v12 = vmul.f32 1.442695, %v533_v7 }
 0x120   :  { %v306_v13 = vrot.slane %v299_v8, %v2331_v51  ;;  %1421 = vpow2.f32 %v538_v9 }
 0x121   :  { %1423 = vpow2.f32 %v536_v10 }
 0x122   :  { %312 = vst.msk [vmem:[%s2381_s9] sm:$0xf] %vm2336_vm0, %v306_v13  ;;  %1425 = vpow2.f32 %v540_v12 }
 0x129   :  { %v1420_v14 = vpop.eup %1419 }
 0x12a   :  { %v1422_v15 = vpop.eup %1421  ;;  %v542_v17 = vadd.f32 1.0, %v1420_v14 }
 0x12b   :  { %v1424_v16 = vpop.eup %1423  ;;  %v544_v19 = vadd.f32 1.0, %v1422_v15 }
 0x12c   :  { %v1426_v20 = vpop.eup %1425  ;;  %1427 = vrcp.f32 %v542_v17  ;;  %v543_v21 = vadd.f32 1.0, %v1424_v16 }
 0x12d   :  { %1429 = vrcp.f32 %v544_v19  ;;  %v545_v22 = vadd.f32 1.0, %v1426_v20 }
 0x12e   :  { %1431 = vrcp.f32 %v543_v21 }
 0x12f   :  { %1433 = vrcp.f32 %v545_v22 }
 0x136   :  { %v1428_v25 = vpop.eup %1427 }
 0x137   :  { %v1430_v26 = vpop.eup %1429 }
 0x138   :  { %v1432_v3 = vpop.eup %1431  ;;  %v725_v27 = vpop.f32.mrb[4].mxu0 }
 0x139   :  { %v1434_v28 = vpop.eup %1433  ;;  %v558_v29 = vcombine.low %v1428_v25, %v1432_v3  ;;  %v726_v30 = vadd.f32 %v725_v27, %v658_v24  ;;  %v796_v31 = vpop.f32.mrb[4].mxu1 }
 0x13a   :  { %v727_v32 = vpop.f32.mrb[5].mxu0  ;;  %v559_v33 = vcombine.low %v1430_v26, %v1434_v28  ;;  %v797_v34 = vadd.f32 %v796_v31, %v658_v24  ;;  %v798_v36 = vpop.f32.mrb[5].mxu1 }
 0x13b   :  { %v728_v35 = vadd.f32 %v727_v32, %v658_v24  ;;  %v566_v37 = vrot.slane %v558_v29, %v2331_v51  ;;  %v801_v38 = vsub.f32 0.0, %v726_v30  ;;  %v799_v39 = vadd.f32 %v798_v36, %v658_v24 }
 0x13c   :  { %v573_v40 = vrot.slane %v559_v33, %v2331_v51  ;;  %v803_v41 = vsub.f32 0.0, %v797_v34 }
 0x13d   :  { %v802_v42 = vsub.f32 0.0, %v728_v35  ;;  %v805_v43 = vmul.f32 1.442695, %v801_v38  ;;  %v804_v44 = vsub.f32 0.0, %v799_v39 }
 0x13e   :  { %v574_v45 = vcombine.low %v566_v37, %v573_v40  ;;  %v809_v46 = vmul.f32 1.442695, %v803_v41 }
 0x13f   :  { %v807_v47 = vmul.f32 1.442695, %v802_v42  ;;  %1435 = vpow2.f32 %v805_v43  ;;  %v811_v48 = vmul.f32 1.442695, %v804_v44 }
 0x140   :  { %v581_v49 = vrot.slane %v574_v45, %v2331_v51  ;;  %1437 = vpow2.f32 %v809_v46 }
 0x141   :  { %1439 = vpow2.f32 %v807_v47 }
 0x142   :  { %583 = vst.msk [vmem:[%s2382_s10] sm:$0xf] %vm2336_vm0, %v581_v49  ;;  %1441 = vpow2.f32 %v811_v48 }
 0x149   :  { %v1436_v50 = vpop.eup %1435 }
 0x14a   :  { %v1438_v52 = vpop.eup %1437  ;;  %v813_v53 = vadd.f32 1.0, %v1436_v50 }
 0x14b   :  { %v1440_v54 = vpop.eup %1439  ;;  %v815_v55 = vadd.f32 1.0, %v1438_v52 }
 0x14c   :  { %v1442_v56 = vpop.eup %1441  ;;  %1443 = vrcp.f32 %v813_v53  ;;  %v814_v57 = vadd.f32 1.0, %v1440_v54 }
 0x14d   :  { %1445 = vrcp.f32 %v815_v55  ;;  %v816_v58 = vadd.f32 1.0, %v1442_v56 }
 0x14e   :  { %1447 = vrcp.f32 %v814_v57 }
 0x14f   :  { %1449 = vrcp.f32 %v816_v58 }
 0x156   :  { %v1444_v60 = vpop.eup %1443 }
 0x157   :  { %v1446_v61 = vpop.eup %1445 }
 0x158   :  { %v1448_v63 = vpop.eup %1447  ;;  %v996_v0 = vpop.f32.mrb[6].mxu0 }
 0x159   :  { %v1450_v1 = vpop.eup %1449  ;;  %v829_v2 = vcombine.low %v1444_v60, %v1448_v63  ;;  %v997_v4 = vadd.f32 %v996_v0, %v929_v62  ;;  %v1067_v5 = vpop.f32.mrb[6].mxu1 }
 0x15a   :  { %v998_v6 = vpop.f32.mrb[7].mxu0  ;;  %v830_v7 = vcombine.low %v1446_v61, %v1450_v1  ;;  %v1068_v8 = vadd.f32 %v1067_v5, %v929_v62  ;;  %v1069_v10 = vpop.f32.mrb[7].mxu1 }
 0x15b   :  { %v999_v9 = vadd.f32 %v998_v6, %v929_v62  ;;  %v837_v12 = vrot.slane %v829_v2, %v2331_v51  ;;  %v1072_v13 = vsub.f32 0.0, %v997_v4  ;;  %v1070_v14 = vadd.f32 %v1069_v10, %v929_v62 }
 0x15c   :  { %v844_v15 = vrot.slane %v830_v7, %v2331_v51  ;;  %v1074_v17 = vsub.f32 0.0, %v1068_v8 }
 0x15d   :  { %v1073_v16 = vsub.f32 0.0, %v999_v9  ;;  %v1076_v18 = vmul.f32 1.442695, %v1072_v13  ;;  %v1075_v19 = vsub.f32 0.0, %v1070_v14 }
 0x15e   :  { %v845_v20 = vcombine.low %v837_v12, %v844_v15  ;;  %v1080_v21 = vmul.f32 1.442695, %v1074_v17 }
 0x15f   :  { %v1078_v22 = vmul.f32 1.442695, %v1073_v16  ;;  %1451 = vpow2.f32 %v1076_v18  ;;  %v1082_v23 = vmul.f32 1.442695, %v1075_v19 }
 0x160   :  { %v852_v24 = vrot.slane %v845_v20, %v2331_v51  ;;  %1453 = vpow2.f32 %v1080_v21 }
 0x161   :  { %1455 = vpow2.f32 %v1078_v22 }
 0x162   :  { %854 = vst.msk [vmem:[%s2383_s11] sm:$0xf] %vm2336_vm0, %v852_v24  ;;  %1457 = vpow2.f32 %v1082_v23 }
 0x169   :  { %v1452_v25 = vpop.eup %1451 }
 0x16a   :  { %v1454_v26 = vpop.eup %1453  ;;  %v1084_v3 = vadd.f32 1.0, %v1452_v25 }
 0x16b   :  { %v1456_v27 = vpop.eup %1455  ;;  %v1086_v28 = vadd.f32 1.0, %v1454_v26 }
 0x16c   :  { %v1458_v29 = vpop.eup %1457  ;;  %1459 = vrcp.f32 %v1084_v3  ;;  %v1085_v30 = vadd.f32 1.0, %v1456_v27 }
 0x16d   :  { %1461 = vrcp.f32 %v1086_v28  ;;  %v1087_v31 = vadd.f32 1.0, %v1458_v29 }
 0x16e   :  { %1463 = vrcp.f32 %v1085_v30 }
 0x16f   :  { %1465 = vrcp.f32 %v1087_v31 }
 0x176   :  { %v1460_v32 = vpop.eup %1459 }
 0x177   :  { %v1462_v33 = vpop.eup %1461 }
 0x178   :  { %v1464_v34 = vpop.eup %1463 }
 0x179   :  { %v1466_v35 = vpop.eup %1465  ;;  %v1100_v36 = vcombine.low %v1460_v32, %v1464_v34 }
 0x17a   :  { %v1101_v37 = vcombine.low %v1462_v33, %v1466_v35 }
 0x17b   :  { %v1108_v38 = vrot.slane %v1100_v36, %v2331_v51 }
 0x17c   :  { %v1115_v39 = vrot.slane %v1101_v37, %v2331_v51 }
 0x17e   :  { %v1116_v40 = vcombine.low %v1108_v38, %v1115_v39 }
 0x180   :  { %v1123_v41 = vrot.slane %v1116_v40, %v2331_v51 }
 0x182   :  { %1125 = vst.msk [vmem:[%s2384_s12] sm:$0xf] %vm2336_vm0, %v1123_v41 }

</bundles_post_ra>
